<compile_context>
chip_gen: v7x
topology: tpu7x:2x2x1
jax: 0.10.0
libtpu: 0.0.40
codegen_flags: <defaults>
</compile_context>

<pallas_src>
import functools
import math

import jax
import jax.numpy as jnp
from jax.experimental import pallas as pl
from jax.experimental.pallas import tpu as pltpu


# ----------------------------- Pallas kernel -------------------------------


def _gtconv_branch_kernel(x_ref, w_ref, b_ref, o_ref, xpad_ref, *,
                          kH, kW, sh, sw, dh, dw, ph, pw,
                          H, W, TOH, OW, Cin, Coutp):
    """Grid = (N, OH // TOH).  One image per n, one output-row tile per t.

    x_ref   : (1, H, W, Cin)        un-padded input image (VMEM)
    w_ref   : (kH*kW*Cin, Coutp)    im2col weight, Cout padded to lane width
    b_ref   : (1, Coutp)            f32 bias row (zeros if module has no bias)
    o_ref   : (1, TOH, OW, Coutp)   lane-dense output row tile
    xpad_ref: (H+2ph, W+2pw, Cin)   VMEM scratch holding the padded image
    """
    t = pl.program_id(1)

    # Zero-pad in VMEM once per image (no jnp.pad HBM pass in the wrapper);
    # the padded image stays resident across the output row-tile axis.
    @pl.when(t == 0)
    def _():
        xpad_ref[...] = jnp.zeros(xpad_ref.shape, xpad_ref.dtype)
        xpad_ref[ph:ph + H, pw:pw + W, :] = x_ref[0]

    step = TOH * sh
    oh0 = t * step                           # first padded input row of tile
    if step % 8 == 0:
        oh0 = pl.multiple_of(oh0, 8)         # sublane-aligned dynamic start

    # Load one row-block per kernel row (kH reads), then slice the kw taps out
    # of the loaded value (overlapping windows are read from VMEM only once).
    taps = []
    for kh in range(kH):
        r0 = oh0 + kh * dh
        if sh == 1:
            rows = xpad_ref[pl.ds(r0, TOH), :, :]
        else:
            # TODO(synk): stride > 1 uses a strided VMEM slice (untested path).
            rows = xpad_ref[pl.ds(r0, TOH, stride=sh), :, :]
        for kw in range(kW):
            c0 = kw * dw
            if sw == 1:
                taps.append(rows[:, c0:c0 + OW, :])
            else:
                taps.append(jax.lax.slice_in_dim(
                    rows, c0, c0 + (OW - 1) * sw + 1, sw, axis=1))

    # im2col slab -> one deep-K MXU contraction (instead of kH*kW K=Cin dots).
    slab = jnp.concatenate(taps, axis=-1).reshape(TOH * OW, kH * kW * Cin)
    acc = jnp.dot(slab, w_ref[...], preferred_element_type=jnp.float32)
    acc = acc + b_ref[...]                   # fused bias epilogue (f32)
    o_ref[...] = acc.reshape(1, TOH, OW, Coutp).astype(o_ref.dtype)


def _pick_tile_oh(OH, OW, tile_oh):
    """Choose an output-row tile that divides OH; target ~512 rows*cols per dot."""
    if tile_oh is not None:
        assert OH % tile_oh == 0, "tile_oh must divide OH"
        return int(tile_oh)
    target = max(1, 512 // max(OW, 1))
    best = 1
    for d in range(1, OH + 1):
        if OH % d == 0 and d <= target:
            best = d
    return best


def conv2d_pallas(x_nhwc, w_hwio, bias=None, *, stride, padding, dilation,
                  tile_oh=None):
    """Dense 2-D convolution (cross-correlation, PyTorch semantics) in Pallas."""
    N, H, W, Cin = x_nhwc.shape
    kH, kW, wCin, Cout = w_hwio.shape
    assert wCin == Cin
    sh, sw = stride
    ph, pw = padding
    dh, dw = dilation
    OH = (H + 2 * ph - (dh * (kH - 1) + 1)) // sh + 1
    OW = (W + 2 * pw - (dw * (kW - 1) + 1)) // sw + 1
    assert OH > 0 and OW > 0

    Hp, Wp = H + 2 * ph, W + 2 * pw
    K = kH * kW * Cin
    Coutp = ((Cout + 127) // 128) * 128      # lane-dense output channels

    # im2col weight: (kH, kW, Cin, Cout) -> (kH*kW*Cin, Cout_pad), cast to the
    # activation dtype so bf16 activations drive the bf16 MXU path.
    w2d = w_hwio.reshape(K, Cout).astype(x_nhwc.dtype)
    w2d = jnp.pad(w2d, ((0, 0), (0, Coutp - Cout)))

    b_row = jnp.zeros((1, Coutp), jnp.float32)
    if bias is not None:
        b_row = b_row.at[0, :Cout].set(bias.astype(jnp.float32))

    TOH = _pick_tile_oh(OH, OW, tile_oh)
    n_tiles = OH // TOH

    kernel = functools.partial(
        _gtconv_branch_kernel, kH=kH, kW=kW, sh=sh, sw=sw, dh=dh, dw=dw,
        ph=ph, pw=pw, H=H, W=W, TOH=TOH, OW=OW, Cin=Cin, Coutp=Coutp)

    out = pl.pallas_call(
        kernel,
        out_shape=jax.ShapeDtypeStruct((N, OH, OW, Coutp), x_nhwc.dtype),
        grid_spec=pltpu.PrefetchScalarGridSpec(
            num_scalar_prefetch=0,
            grid=(N, n_tiles),
            in_specs=[
                pl.BlockSpec((1, H, W, Cin), lambda n, t: (n, 0, 0, 0)),
                pl.BlockSpec((K, Coutp), lambda n, t: (0, 0)),
                pl.BlockSpec((1, Coutp), lambda n, t: (0, 0)),
            ],
            out_specs=pl.BlockSpec((1, TOH, OW, Coutp),
                                   lambda n, t: (n, t, 0, 0)),
            scratch_shapes=[pltpu.VMEM((Hp, Wp, Cin), x_nhwc.dtype)],
        ),
        compiler_params=pltpu.CompilerParams(
            # t must be "arbitrary": the padded-image scratch is filled at t==0
            # and reused across the tile axis.
            dimension_semantics=("parallel", "arbitrary")),
    )(x_nhwc, w2d, b_row)

    return out[..., :Cout]                   # drop lane padding


# ------------------------------ GTConv module ------------------------------


def _pair(v):
    return tuple(v) if isinstance(v, (tuple, list)) else (v, v)


class GTConvPallas:
    """JAX/Pallas port of GTConv.

    The reference's injected `gconv` with norm=None / activation=None reduces
    to a plain conv2d over (groups*in_channels) channels using the shared
    weight; that is what is implemented here.
    """

    def __init__(self, in_channels, out_channels, kernel_size, groups,
                 stride=1, paddings=0, dilations=1, num_branch=1,
                 test_branch_idx=-1, bias=False, norm=None, activation=None,
                 key=None, tile_oh=None):
        self.in_channels = in_channels
        self.out_channels = out_channels
        self.kernel_size = _pair(kernel_size)
        self.num_branch = num_branch
        self.stride = _pair(stride)
        self.groups = groups
        self.with_bias = bias
        if isinstance(paddings, int):
            paddings = [paddings] * num_branch
        if isinstance(dilations, int):
            dilations = [dilations] * num_branch
        self.paddings = [_pair(p) for p in paddings]
        self.dilations = [_pair(d) for d in dilations]
        self.test_branch_idx = test_branch_idx
        self.norm = norm            # TODO(synk): norm is None in this config; BN not fused.
        self.activation = activation
        self.tile_oh = tile_oh

        assert len({num_branch, len(self.paddings), len(self.dilations)}) == 1

        if key is None:
            key = jax.random.PRNGKey(0)
        kH, kW = self.kernel_size
        cin_eff = groups * in_channels
        # TODO(synk): grouped-conv semantics of the injected gconv are not
        # specified; a dense conv over groups*in_channels is implemented.
        # Deterministic kaiming_uniform_(nonlinearity='relu'):
        fan_in = cin_eff * kH * kW
        bound = math.sqrt(2.0) * math.sqrt(3.0 / fan_in)
        wkey, _ = jax.random.split(key)
        # PyTorch layout: (out_channels, groups*in_channels, kH, kW)
        self.weight = jax.random.uniform(
            wkey, (out_channels, cin_eff, kH, kW),
            minval=-bound, maxval=bound, dtype=jnp.float32)
        self.bias = jnp.zeros((out_channels,), jnp.float32) if bias else None

    def __call__(self, inputs, training=True):
        num_branch = (self.num_branch
                      if training or self.test_branch_idx == -1 else 1)
        assert len(inputs) == num_branch

        # TODO(synk): the reference's empty-input (_NewEmptyTensorOp) fast path
        # is not implemented.

        w_hwio = jnp.transpose(self.weight, (2, 3, 1, 0))  # OIHW -> HWIO

        def run(x_nchw, padding, dilation):
            x_nhwc = jnp.transpose(x_nchw, (0, 2, 3, 1))
            y = conv2d_pallas(x_nhwc, w_hwio, self.bias,
                              stride=self.stride, padding=padding,
                              dilation=dilation, tile_oh=self.tile_oh)
            # norm / activation are None in this module config -> identity
            return jnp.transpose(y, (0, 3, 1, 2))          # back to NCHW

        if training or self.test_branch_idx == -1:
            return [run(x, p, d) for x, d, p in
                    zip(inputs, self.dilations, self.paddings)]
        return [run(inputs[0], self.paddings[self.test_branch_idx],
                    self.dilations[self.test_branch_idx])]


# --------------------------------- main ------------------------------------


def _reference_conv(x_nchw, w_oihw, bias, stride, padding, dilation):
    y = jax.lax.conv_general_dilated(
        x_nchw, w_oihw,
        window_strides=stride,
        padding=[(padding[0], padding[0]), (padding[1], padding[1])],
        rhs_dilation=dilation,
        dimension_numbers=('NCHW', 'OIHW', 'NCHW'))
    if bias is not None:
        y = y + bias.reshape(1, -1, 1, 1)
    return y


if __name__ == "__main__":
    key = jax.random.PRNGKey(0)

    # Small configuration consistent with the module's __init__:
    batch = 2
    in_channels = 4
    groups = 2          # oriented-conv group order -> effective input chans = 8
    out_channels = 8
    H = W = 16
    num_branch = 2
    paddings = [1, 2]
    dilations = [1, 2]

    mod = GTConvPallas(in_channels, out_channels, kernel_size=3, groups=groups,
                       stride=1, paddings=paddings, dilations=dilations,
                       num_branch=num_branch, test_branch_idx=-1, bias=True,
                       key=key, tile_oh=None)   # auto tile: whole 16-row image

    # Give the (zero-initialised) bias non-trivial values so the fused bias
    # epilogue is actually exercised by the numeric check.
    bkey, key = jax.random.split(key)
    mod.bias = jax.random.normal(bkey, (out_channels,), dtype=jnp.float32)

    xkeys = jax.random.split(key, num_branch)
    inputs = [jax.random.normal(k, (batch, groups * in_channels, H, W),
                                dtype=jnp.float32) for k in xkeys]

    outputs = mod(inputs, training=True)
    outputs = [jax.block_until_ready(o) for o in outputs]

    # Cross-check against XLA's conv for each branch.
    ok = True
    for br in range(num_branch):
        ref = _reference_conv(inputs[br], mod.weight, mod.bias, mod.stride,
                              mod.paddings[br], mod.dilations[br])
        ref = jax.block_until_ready(ref)
        if outputs[br].shape != ref.shape:
            ok = False
            break
        if not jnp.allclose(outputs[br], ref, rtol=1e-4, atol=1e-4):
            ok = False
            break

    print("KERNEL_OK" if ok else "KERNEL_MISMATCH")
</pallas_src>

<mosaic_0001>
module attributes {stable_mosaic.version = 11 : i64} {
  func.func @_gtconv_branch_kernel(%arg0: i32, %arg1: i32, %arg2: memref<1x16x16x8xf32, #tpu.memory_space<vmem>>, %arg3: memref<72x128xf32, #tpu.memory_space<vmem>>, %arg4: memref<1x128xf32, #tpu.memory_space<vmem>>, %arg5: memref<1x16x16x128xf32, #tpu.memory_space<vmem>>, %arg6: memref<18x18x8xf32, #tpu.memory_space<vmem>>) attributes {dimension_semantics = [#tpu.dimension_semantics<parallel>, #tpu.dimension_semantics<arbitrary>], iteration_bounds = array<i64: 2, 1>, scalar_prefetch = 0 : i64, scratch_operands = 1 : i64, tpu.core_type = #tpu.core_type<tc>, window_params = [{transform_indices = @transform_0, window_bounds = array<i64: 1, 16, 16, 8>}, {pipeline_mode = #tpu.pipeline_mode<synchronous>, transform_indices = @transform_1, window_bounds = array<i64: 72, 128>}, {pipeline_mode = #tpu.pipeline_mode<synchronous>, transform_indices = @transform_2, window_bounds = array<i64: 1, 128>}, {transform_indices = @transform_3, window_bounds = array<i64: 1, 16, 16, 128>}]} {
    %c0_i32 = arith.constant 0 : i32
    %0 = arith.cmpi eq, %arg1, %c0_i32 : i32
    %1 = arith.extui %0 : i1 to i32
    %c0_i32_0 = arith.constant 0 : i32
    %2 = arith.cmpi ne, %1, %c0_i32_0 : i32
    scf.if %2 {
      %cst_15 = arith.constant 0.000000e+00 : f32
      %32 = vector.broadcast %cst_15 : f32 to vector<18x18x8xf32>
      %c0_16 = arith.constant 0 : index
      %c0_17 = arith.constant 0 : index
      %c0_18 = arith.constant 0 : index
      %33 = vector.load %arg6[%c0_16, %c0_17, %c0_18] : memref<18x18x8xf32, #tpu.memory_space<vmem>>, vector<18x18x8xf32>
      tpu.vector_store %arg6[%c0_16, %c0_17, %c0_18], %32 {strides = array<i32>} : memref<18x18x8xf32, #tpu.memory_space<vmem>>, vector<18x18x8xf32>,
      %c0_19 = arith.constant 0 : index
      %c0_20 = arith.constant 0 : index
      %c0_21 = arith.constant 0 : index
      %c0_22 = arith.constant 0 : index
      %34 = vector.load %arg2[%c0_19, %c0_20, %c0_21, %c0_22] : memref<1x16x16x8xf32, #tpu.memory_space<vmem>>, vector<1x16x16x8xf32>
      %35 = vector.shape_cast %34 : vector<1x16x16x8xf32> to vector<16x16x8xf32>
      %c1 = arith.constant 1 : index
      %c1_23 = arith.constant 1 : index
      %c0_24 = arith.constant 0 : index
      %36 = vector.load %arg6[%c1, %c1_23, %c0_24] : memref<18x18x8xf32, #tpu.memory_space<vmem>>, vector<16x16x8xf32>
      tpu.vector_store %arg6[%c1, %c1_23, %c0_24], %35 {strides = array<i32>} : memref<18x18x8xf32, #tpu.memory_space<vmem>>, vector<16x16x8xf32>,
    } else {
    }
    %c16_i32 = arith.constant 16 : i32
    %3 = arith.muli %arg1, %c16_i32 : i32
    %4 = tpu.assume_multiple %3, 8 : i32
    %c0_i32_1 = arith.constant 0 : i32
    %5 = arith.addi %4, %c0_i32_1 : i32
    %6 = arith.index_cast %5 : i32 to index
    %c0 = arith.constant 0 : index
    %c0_2 = arith.constant 0 : index
    %7 = vector.load %arg6[%6, %c0, %c0_2] : memref<18x18x8xf32, #tpu.memory_space<vmem>>, vector<16x18x8xf32>
    %8 = vector.extract_strided_slice %7 {offsets = [0, 0, 0], sizes = [16, 16, 8], strides = [1, 1, 1]} : vector<16x18x8xf32> to vector<16x16x8xf32>
    %9 = vector.extract_strided_slice %7 {offsets = [0, 1, 0], sizes = [16, 16, 8], strides = [1, 1, 1]} : vector<16x18x8xf32> to vector<16x16x8xf32>
    %10 = vector.extract_strided_slice %7 {offsets = [0, 2, 0], sizes = [16, 16, 8], strides = [1, 1, 1]} : vector<16x18x8xf32> to vector<16x16x8xf32>
    %c1_i32 = arith.constant 1 : i32
    %11 = arith.addi %4, %c1_i32 : i32
    %12 = arith.index_cast %11 : i32 to index
    %c0_3 = arith.constant 0 : index
    %c0_4 = arith.constant 0 : index
    %13 = vector.load %arg6[%12, %c0_3, %c0_4] : memref<18x18x8xf32, #tpu.memory_space<vmem>>, vector<16x18x8xf32>
    %14 = vector.extract_strided_slice %13 {offsets = [0, 0, 0], sizes = [16, 16, 8], strides = [1, 1, 1]} : vector<16x18x8xf32> to vector<16x16x8xf32>
    %15 = vector.extract_strided_slice %13 {offsets = [0, 1, 0], sizes = [16, 16, 8], strides = [1, 1, 1]} : vector<16x18x8xf32> to vector<16x16x8xf32>
    %16 = vector.extract_strided_slice %13 {offsets = [0, 2, 0], sizes = [16, 16, 8], strides = [1, 1, 1]} : vector<16x18x8xf32> to vector<16x16x8xf32>
    %c2_i32 = arith.constant 2 : i32
    %17 = arith.addi %4, %c2_i32 : i32
    %18 = arith.index_cast %17 : i32 to index
    %c0_5 = arith.constant 0 : index
    %c0_6 = arith.constant 0 : index
    %19 = vector.load %arg6[%18, %c0_5, %c0_6] : memref<18x18x8xf32, #tpu.memory_space<vmem>>, vector<16x18x8xf32>
    %20 = vector.extract_strided_slice %19 {offsets = [0, 0, 0], sizes = [16, 16, 8], strides = [1, 1, 1]} : vector<16x18x8xf32> to vector<16x16x8xf32>
    %21 = vector.extract_strided_slice %19 {offsets = [0, 1, 0], sizes = [16, 16, 8], strides = [1, 1, 1]} : vector<16x18x8xf32> to vector<16x16x8xf32>
    %22 = vector.extract_strided_slice %19 {offsets = [0, 2, 0], sizes = [16, 16, 8], strides = [1, 1, 1]} : vector<16x18x8xf32> to vector<16x16x8xf32>
    %23 = tpu.concatenate %8, %9, %10, %14, %15, %16, %20, %21, %22 in 2 : vector<16x16x8xf32>, vector<16x16x8xf32>, vector<16x16x8xf32>, vector<16x16x8xf32>, vector<16x16x8xf32>, vector<16x16x8xf32>, vector<16x16x8xf32>, vector<16x16x8xf32>, vector<16x16x8xf32> -> vector<16x16x72xf32>
    %24 = vector.shape_cast %23 : vector<16x16x72xf32> to vector<256x72xf32>
    %c0_7 = arith.constant 0 : index
    %c0_8 = arith.constant 0 : index
    %25 = vector.load %arg3[%c0_7, %c0_8] : memref<72x128xf32, #tpu.memory_space<vmem>>, vector<72x128xf32>
    %cst = arith.constant dense<0.000000e+00> : vector<256x128xf32>
    %26 = tpu.matmul %24, %25, %cst {dimension_numbers = #tpu.dot_dimension_numbers<[1], [0], [0], [1], [0, 0, 1, 1], [], []>} : vector<256x72xf32>, vector<72x128xf32>, vector<256x128xf32> -> vector<256x128xf32>
    %c0_9 = arith.constant 0 : index
    %c0_10 = arith.constant 0 : index
    %27 = vector.load %arg4[%c0_9, %c0_10] : memref<1x128xf32, #tpu.memory_space<vmem>>, vector<1x128xf32>
    %28 = vector.broadcast %27 : vector<1x128xf32> to vector<256x128xf32>
    %29 = arith.addf %26, %28 : vector<256x128xf32>
    %30 = vector.shape_cast %29 : vector<256x128xf32> to vector<1x16x16x128xf32>
    %c0_11 = arith.constant 0 : index
    %c0_12 = arith.constant 0 : index
    %c0_13 = arith.constant 0 : index
    %c0_14 = arith.constant 0 : index
    %31 = vector.load %arg5[%c0_11, %c0_12, %c0_13, %c0_14] : memref<1x16x16x128xf32, #tpu.memory_space<vmem>>, vector<1x16x16x128xf32>
    tpu.vector_store %arg5[%c0_11, %c0_12, %c0_13, %c0_14], %30 {strides = array<i32>} : memref<1x16x16x128xf32, #tpu.memory_space<vmem>>, vector<1x16x16x128xf32>,
    return
  }
  func.func @transform_0(%arg0: i32, %arg1: i32) -> (i32, i32, i32, i32) {
    %c0_i32 = arith.constant 0 : i32
    %c0_i32_0 = arith.constant 0 : i32
    %c0_i32_1 = arith.constant 0 : i32
    %c0_i32_2 = arith.constant 0 : i32
    return %arg0, %c0_i32, %c0_i32_0, %c0_i32_1 : i32, i32, i32, i32
  }
  func.func @transform_1(%arg0: i32, %arg1: i32) -> (i32, i32) {
    %c0_i32 = arith.constant 0 : i32
    %c0_i32_0 = arith.constant 0 : i32
    %c0_i32_1 = arith.constant 0 : i32
    return %c0_i32, %c0_i32_0 : i32, i32
  }
  func.func @transform_2(%arg0: i32, %arg1: i32) -> (i32, i32) {
    %c0_i32 = arith.constant 0 : i32
    %c0_i32_0 = arith.constant 0 : i32
    %c0_i32_1 = arith.constant 0 : i32
    return %c0_i32, %c0_i32_0 : i32, i32
  }
  func.func @transform_3(%arg0: i32, %arg1: i32) -> (i32, i32, i32, i32) {
    %c0_i32 = arith.constant 0 : i32
    %c0_i32_0 = arith.constant 0 : i32
    %c0_i32_1 = arith.constant 0 : i32
    return %arg0, %arg1, %c0_i32, %c0_i32_0 : i32, i32, i32, i32
  }
}

</mosaic_0001>

<bundles_post_ra>
// kernel: tpu_custom_call.1
= control target key start
LH: loop header
LB: loop body
LE: loop exit
PB: predicated region body
PF: predicated region fallthrough
CT: control target
= control target key end

     0   :  { %8 = vsyncpa [#allocation4], 0  ;;  %s5265_s0 = inlined_call_operand.vmem [shape: f32[2,16,16,8], index: 0, kind: input, shape index: {}]   ;;  %s5266_s1 = inlined_call_operand.vmem [shape: f32[72,128], index: 1, kind: input, shape index: {}]   ;;  %s5267_s2 = inlined_call_operand.vmem [shape: f32[1,128], index: 2, kind: input, shape index: {}]   ;;  %s5268_s3 = inlined_call_operand.hbm [shape: f32[2,16,16,128], index: 3, kind: output, shape index: {}]  }
   0x1   :  { %10 = vsyncpa [#allocation4 + $0x1], 0  ;;  %s3077_s12 = smov 0   ;;  %s3079_s13 = smov 0  }
   0x2   :  { %s3081_s14 = smov 0   ;;  %s3083_s15 = smov 0  }
   0x3   :  { %s3085_s16 = smov 0   ;;  %s3087_s17 = smov 0  }
   0x4 LB: > { %s2590_s18 = sadd.s32 4294967295, %s3044_s17   ;;  %s2591_s19 = sadd.s32 4294967294, %s3044_s17   ;;  %s3044_s17 = sphi %s3087_s17, %s16_s17   ;;  %s3040_s16 = sphi %s3085_s16, %s5538_s16   ;;  %s3036_s15 = sphi %s3083_s15, %s5537_s15   ;;  %s3032_s14 = sphi %s3081_s14, %s5536_s14   ;;  %s3028_s13 = sphi %s3079_s13, %s5535_s13   ;;  %s3024_s12 = sphi %s3077_s12, %s5534_s12  }
   0x5   : > { %s28_s20 = sadd.s32 1, %s3040_s16  ;;  %s105_s21 = sadd.s32 1, %s3032_s14 }
   0x6   : > { %p30_p0 = scmp.ge.s32.totalorder %s28_s20, 2  ;;  %p115_p1 = scmp.ne.s32.totalorder %s3032_s14, %s3028_s13 }
   0x7   : > { %p116_p2 = scmp.eq.s32.totalorder %s2590_s18, 1  ;;  %p121_p3 = scmp.ne.s32.totalorder %s3028_s13, %s3024_s12 }
   0x8   : > { %s5540_s20 = smov (%p30_p0, %s28_s20), 0  ;;  %p122_p5 = scmp.eq.s32.totalorder %s2591_s19, 1 }
   0x9   : > { %p3117_p4 = por %p116_p2, %p115_p1  ;;  %s100_s23 = ssub.s32 %s3040_s16, %s5540_s20 }
   0xa   : > { %p2594_p6 = scmp.ge.s32.totalorder %s3044_s17, 1  ;;  %p103_p7 = scmp.eq.s32.totalorder %s100_s23, 0 }
   0xb   : > { %p3124_p8 = por %p122_p5, %p121_p3  ;;  %p154_p9 = scmp.lt.s32.totalorder %s3044_s17, 3 }
   0xc   : > { %s3130_s25 = scalar_select %p103_p7, %s3032_s14, %s105_s21  }
   0xd   : > { %p155_p10 = pnand %p2594_p6, %p154_p9 }
   0xf   : > { %158 = sbr.rel (%p155_p10) target bundleno = 915 (0x393), region = 32 }
  0x16   : > { %vm188_vm0 = vcmask 64512   ;;  %vm191_vm1 = vcmask 58368   ;;  %p178_p11 = scmp.lt.s32.totalorder %s3036_s15, 1  ;;  %v3046_v0 = vmov 0.0   ;;  %vm510_vm2 = vcmask 1046528   ;;  %s3047_s4 = smov 8  }
  0x17   : > { %189 = vst.msk [vmem:[#allocation2] sm:$0xff] %vm188_vm0, %v3046_v0  ;;  %190 = vst.msk [vmem:[#allocation2 + $0x8] sm:$0xff] %vm188_vm0, %v3046_v0  ;;  %vm687_vm3 = vcmask 1045504   ;;  %s3048_s5 = smov 16   ;;  %s3049_s6 = smov 24   ;;  %vm1889_vm4 = vcmask 130048  }
  0x18   : > { %193 = vst.msk [vmem:[#allocation2 + $0x18] sm:$0xff] %vm188_vm0, %v3046_v0  ;;  %194 = vst.msk [vmem:[#allocation2 + $0x20] sm:$0xff] %vm188_vm0, %v3046_v0  ;;  %s179_s26 = scalar_select %p178_p11, %s3036_s15, 1  ;;  %vm1922_vm5 = vcmask 195584   ;;  %vm1955_vm6 = vcmask 261120   ;;  %vm1988_vm7 = vcmask 326656  }
  0x19   : > { %196 = vst.msk [vmem:[#allocation2 + $0x30] sm:$0xff] %vm188_vm0, %v3046_v0  ;;  %197 = vst.msk [vmem:[#allocation2 + $0x38] sm:$0xff] %vm188_vm0, %v3046_v0  ;;  %s3050_s7 = smov 32   ;;  %s3051_s8 = smov 40   ;;  %vm2021_vm8 = vcmask 392192   ;;  %vm2054_vm9 = vcmask 457728  }
  0x1a   : > { %199 = vst.msk [vmem:[#allocation2 + $0x48] sm:$0xff] %vm188_vm0, %v3046_v0  ;;  %200 = vst.msk [vmem:[#allocation2 + $0x50] sm:$0xff] %vm188_vm0, %v3046_v0  ;;  %s2732_s27 = sshll.u32 %s179_s26, 8  ;;  %s3053_s18 = smov 56   ;;  %vm2087_vm10 = vcmask 523264   ;;  %vm2136_vm11 = vcmask 588800  }
  0x1b   : > { %202 = vst.msk [vmem:[#allocation2 + $0x60] sm:$0xff] %vm188_vm0, %v3046_v0  ;;  %203 = vst.msk [vmem:[#allocation2 + $0x68] sm:$0xff] %vm188_vm0, %v3046_v0  ;;  %s3193_s30 = scalar_lea.vmem %s5265_s0, %s2732_s27  ;;  %s3052_s27 = smov 48  }
  0x1c   : > { %205 = vst.msk [vmem:[#allocation2 + $0x78] sm:$0xff] %vm188_vm0, %v3046_v0  ;;  %206 = vst.msk [vmem:[#allocation2 + $0x80] sm:$0xff] %vm188_vm0, %v3046_v0  ;;  %v244_v1 = vld [vmem:[%s3193_s30] sm:$0xff]  ;;  %v245_v2 = vld [vmem:[%s3193_s30 + $0x8] sm:$0xff]  ;;  %s3054_s23 = smov 64   ;;  %s2733_s29 = sshll.u32 %s3036_s15, 12 }
  0x1d   : > { %208 = vst.msk [vmem:[#allocation2 + $0x90] sm:$0xff] %vm188_vm0, %v3046_v0  ;;  %209 = vst.msk [vmem:[#allocation2 + $0x98] sm:$0xff] %vm188_vm0, %v3046_v0  ;;  %v246_v3 = vld [vmem:[%s3193_s30 + $0x10] sm:$0xff]  ;;  %v247_v4 = vld [vmem:[%s3193_s30 + $0x18] sm:$0xff]  ;;  %s5209_s9 = scalar_lea.hbm %s5268_s3, %s2733_s29  ;;  %s3055_s11 = smov [#allocation3]  }
  0x1e   : > { %211 = vst.msk [vmem:[#allocation2 + $0xa8] sm:$0xff] %vm188_vm0, %v3046_v0  ;;  %212 = vst.msk [vmem:[#allocation2 + $0xb0] sm:$0xff] %vm188_vm0, %v3046_v0  ;;  %v248_v5 = vld [vmem:[%s3193_s30 + $0x20] sm:$0xff]  ;;  %v249_v6 = vld [vmem:[%s3193_s30 + $0x28] sm:$0xff] }
  0x1f   : > { %214 = vst.msk [vmem:[#allocation2 + $0xc0] sm:$0xff] %vm188_vm0, %v3046_v0  ;;  %215 = vst.msk [vmem:[#allocation2 + $0xc8] sm:$0xff] %vm188_vm0, %v3046_v0  ;;  %v3204_v7 = vld [vmem:[#allocation2] sm:$0xff]  ;;  %v3206_v8 = vld [vmem:[#allocation2 + $0x8] sm:$0xff] }
  0x20   : > { %217 = vst.msk [vmem:[#allocation2 + $0xd8] sm:$0xff] %vm188_vm0, %v3046_v0  ;;  %218 = vst.msk [vmem:[#allocation2 + $0xe0] sm:$0xff] %vm188_vm0, %v3046_v0  ;;  %v511_v10 = vrot.slane %v3204_v7, 1  ;;  %v512_v11 = vrot.slane %v3206_v8, 1  ;;  %v250_v13 = vld [vmem:[%s3193_s30 + $0x30] sm:$0xff]  ;;  %v251_v14 = vld [vmem:[%s3193_s30 + $0x38] sm:$0xff] }
  0x21   : > { %220 = vst.msk [vmem:[#allocation2 + $0xf0] sm:$0xff] %vm188_vm0, %v3046_v0  ;;  %221 = vst.msk [vmem:[#allocation2 + $0xf8] sm:$0xff] %vm188_vm0, %v3046_v0  ;;  %v252_v15 = vld [vmem:[%s3193_s30 + $0x40] sm:$0xff]  ;;  %v253_v16 = vld [vmem:[%s3193_s30 + $0x48] sm:$0xff] }
  0x22   : > { %223 = vst.msk [vmem:[#allocation2 + $0x108] sm:$0xff] %vm188_vm0, %v3046_v0  ;;  %224 = vst.msk [vmem:[#allocation2 + $0x110] sm:$0xff] %vm188_vm0, %v3046_v0  ;;  %v254_v17 = vld [vmem:[%s3193_s30 + $0x50] sm:$0xff]  ;;  %v255_v18 = vld [vmem:[%s3193_s30 + $0x58] sm:$0xff]  ;;  %v513_v19 = vsel %vm510_vm2, %v511_v10, %v512_v11 }
  0x23   : > { %226 = vst.msk [vmem:[#allocation2 + $0x120] sm:$0xff] %vm188_vm0, %v3046_v0  ;;  %227 = vst.msk [vmem:[#allocation2 + $0x128] sm:$0xff] %vm188_vm0, %v3046_v0  ;;  %v256_v20 = vld [vmem:[%s3193_s30 + $0x60] sm:$0xff]  ;;  %v257_v21 = vld [vmem:[%s3193_s30 + $0x68] sm:$0xff]  ;;  %591 = vrot.lane.b32.xlu0 %v513_v19, %s3047_s4 }
  0x24   : > { %229 = vst.msk [vmem:[#allocation2 + $0x138] sm:$0xff] %vm188_vm0, %v3046_v0  ;;  %230 = vst.msk [vmem:[#allocation2 + $0x140] sm:$0xff] %vm188_vm0, %v3046_v0  ;;  %v258_v22 = vld [vmem:[%s3193_s30 + $0x70] sm:$0xff]  ;;  %v259_v23 = vld [vmem:[%s3193_s30 + $0x78] sm:$0xff] }
  0x25   : > { %232 = vst.msk [vmem:[#allocation2 + $0x150] sm:$0xff] %vm188_vm0, %v3046_v0  ;;  %233 = vst.msk [vmem:[#allocation2 + $0x158] sm:$0xff] %vm188_vm0, %v3046_v0  ;;  %v260_v24 = vld [vmem:[%s3193_s30 + $0x80] sm:$0xff]  ;;  %v261_v25 = vld [vmem:[%s3193_s30 + $0x88] sm:$0xff] }
  0x26   : > { %235 = vst.msk [vmem:[#allocation2 + $0x168] sm:$0xff] %vm188_vm0, %v3046_v0  ;;  %236 = vst.msk [vmem:[#allocation2 + $0x170] sm:$0xff] %vm188_vm0, %v3046_v0  ;;  %v262_v27 = vld [vmem:[%s3193_s30 + $0x90] sm:$0xff]  ;;  %v263_v28 = vld [vmem:[%s3193_s30 + $0x98] sm:$0xff] }
  0x27   : > { %238 = vst.msk [vmem:[#allocation2 + $0x180] sm:$0xff] %vm188_vm0, %v3046_v0  ;;  %239 = vst.msk [vmem:[#allocation2 + $0x188] sm:$0xff] %vm188_vm0, %v3046_v0  ;;  %v264_v29 = vld [vmem:[%s3193_s30 + $0xa0] sm:$0xff]  ;;  %v265_v60 = vld [vmem:[%s3193_s30 + $0xa8] sm:$0xff] }
  0x28   : > { %241 = vst.msk [vmem:[#allocation2 + $0x198] sm:$0xff] %vm188_vm0, %v3046_v0  ;;  %242 = vst.msk [vmem:[#allocation2 + $0x1a0] sm:$0xff] %vm188_vm0, %v3046_v0  ;;  %v269_v10 = vld [vmem:[%s3193_s30 + $0xc8] sm:$0xff] }
  0x29   : > { %192 = vst.msk [vmem:[#allocation2 + $0x10] sm:$0x3] %vm191_vm1, %v3046_v0  ;;  %195 = vst.msk [vmem:[#allocation2 + $0x28] sm:$0x3] %vm191_vm1, %v3046_v0 }
  0x2a   : > { %198 = vst.msk [vmem:[#allocation2 + $0x40] sm:$0x3] %vm191_vm1, %v3046_v0  ;;  %201 = vst.msk [vmem:[#allocation2 + $0x58] sm:$0x3] %vm191_vm1, %v3046_v0 }
  0x2b   : > { %204 = vst.msk [vmem:[#allocation2 + $0x70] sm:$0x3] %vm191_vm1, %v3046_v0  ;;  %207 = vst.msk [vmem:[#allocation2 + $0x88] sm:$0x3] %vm191_vm1, %v3046_v0 }
  0x2c   : > { %210 = vst.msk [vmem:[#allocation2 + $0xa0] sm:$0x3] %vm191_vm1, %v3046_v0  ;;  %213 = vst.msk [vmem:[#allocation2 + $0xb8] sm:$0x3] %vm191_vm1, %v3046_v0 }
  0x2d   : > { %216 = vst.msk [vmem:[#allocation2 + $0xd0] sm:$0x3] %vm191_vm1, %v3046_v0  ;;  %219 = vst.msk [vmem:[#allocation2 + $0xe8] sm:$0x3] %vm191_vm1, %v3046_v0 }
  0x2e   : > { %222 = vst.msk [vmem:[#allocation2 + $0x100] sm:$0x3] %vm191_vm1, %v3046_v0  ;;  %225 = vst.msk [vmem:[#allocation2 + $0x118] sm:$0x3] %vm191_vm1, %v3046_v0 }
  0x2f   : > { %228 = vst.msk [vmem:[#allocation2 + $0x130] sm:$0x3] %vm191_vm1, %v3046_v0  ;;  %231 = vst.msk [vmem:[#allocation2 + $0x148] sm:$0x3] %vm191_vm1, %v3046_v0 }
  0x30   : > { %234 = vst.msk [vmem:[#allocation2 + $0x160] sm:$0x3] %vm191_vm1, %v3046_v0  ;;  %237 = vst.msk [vmem:[#allocation2 + $0x178] sm:$0x3] %vm191_vm1, %v3046_v0  ;;  %v3208_v9 = vld [vmem:[#allocation2 + $0x10] sm:$0x3] }
  0x31   : > { %240 = vst.msk [vmem:[#allocation2 + $0x190] sm:$0x3] %vm191_vm1, %v3046_v0  ;;  %243 = vst.msk [vmem:[#allocation2 + $0x1a8] sm:$0x3] %vm191_vm1, %v3046_v0  ;;  %v514_v12 = vrot.slane %v3208_v9, 1 }
  0x32   : > { %277 = vst.msk [vmem:[#allocation2 + $0x19] sm:$0xff] %vm188_vm0, %v244_v1  ;;  %278 = vst.msk [vmem:[#allocation2 + $0x21] sm:$0xff] %vm188_vm0, %v245_v2  ;;  %v266_v2 = vld [vmem:[%s3193_s30 + $0xb0] sm:$0xff] }
  0x33   : > { %279 = vst.msk [vmem:[#allocation2 + $0x31] sm:$0xff] %vm188_vm0, %v246_v3  ;;  %280 = vst.msk [vmem:[#allocation2 + $0x39] sm:$0xff] %vm188_vm0, %v247_v4  ;;  %v515_v26 = vsel %vm510_vm2, %v512_v11, %v514_v12  ;;  %v267_v3 = vld [vmem:[%s3193_s30 + $0xb8] sm:$0xff]  ;;  %v268_v4 = vld [vmem:[%s3193_s30 + $0xc0] sm:$0xff] }
  0x34   : > { %281 = vst.msk [vmem:[#allocation2 + $0x49] sm:$0xff] %vm188_vm0, %v248_v5  ;;  %282 = vst.msk [vmem:[#allocation2 + $0x51] sm:$0xff] %vm188_vm0, %v249_v6  ;;  %593 = vrot.lane.b32.xlu0 %v515_v26, %s3047_s4  ;;  %v270_v11 = vld [vmem:[%s3193_s30 + $0xd0] sm:$0xff]  ;;  %v271_v12 = vld [vmem:[%s3193_s30 + $0xd8] sm:$0xff] }
  0x35   : > { %283 = vst.msk [vmem:[#allocation2 + $0x61] sm:$0xff] %vm188_vm0, %v250_v13  ;;  %284 = vst.msk [vmem:[#allocation2 + $0x69] sm:$0xff] %vm188_vm0, %v251_v14  ;;  %v272_v14 = vld [vmem:[%s3193_s30 + $0xe0] sm:$0xff] }
  0x36   : > { %285 = vst.msk [vmem:[#allocation2 + $0x79] sm:$0xff] %vm188_vm0, %v252_v15  ;;  %286 = vst.msk [vmem:[#allocation2 + $0x81] sm:$0xff] %vm188_vm0, %v253_v16  ;;  %v273_v15 = vld [vmem:[%s3193_s30 + $0xe8] sm:$0xff] }
  0x37   : > { %287 = vst.msk [vmem:[#allocation2 + $0x91] sm:$0xff] %vm188_vm0, %v254_v17  ;;  %288 = vst.msk [vmem:[#allocation2 + $0x99] sm:$0xff] %vm188_vm0, %v255_v18 }
  0x38   : > { %289 = vst.msk [vmem:[#allocation2 + $0xa9] sm:$0xff] %vm188_vm0, %v256_v20  ;;  %290 = vst.msk [vmem:[#allocation2 + $0xb1] sm:$0xff] %vm188_vm0, %v257_v21 }
  0x39   : > { %291 = vst.msk [vmem:[#allocation2 + $0xc1] sm:$0xff] %vm188_vm0, %v258_v22  ;;  %292 = vst.msk [vmem:[#allocation2 + $0xc9] sm:$0xff] %vm188_vm0, %v259_v23  ;;  %v3246_v30 = vld [vmem:[#allocation2 + $0x18] sm:$0xff]  ;;  %v3248_v31 = vld [vmem:[#allocation2 + $0x20] sm:$0xff] }
  0x3a   : > { %293 = vst.msk [vmem:[#allocation2 + $0xd9] sm:$0xff] %vm188_vm0, %v260_v24  ;;  %294 = vst.msk [vmem:[#allocation2 + $0xe1] sm:$0xff] %vm188_vm0, %v261_v25  ;;  %v3250_v32 = vld [vmem:[#allocation2 + $0x30] sm:$0xff]  ;;  %v516_v33 = vrot.slane %v3246_v30, 1  ;;  %v3257_v34 = vrot.slane %v3248_v31, 1  ;;  %v3259_v35 = vld [vmem:[#allocation2 + $0x38] sm:$0xff] }
  0x3b   : > { %295 = vst.msk [vmem:[#allocation2 + $0xf1] sm:$0xff] %vm188_vm0, %v262_v27  ;;  %296 = vst.msk [vmem:[#allocation2 + $0xf9] sm:$0xff] %vm188_vm0, %v263_v28  ;;  %v521_v36 = vrot.slane %v3250_v32, 1  ;;  %v3262_v37 = vld [vmem:[#allocation2 + $0x28] sm:$0x3]  ;;  %v3266_v38 = vrot.slane %v3259_v35, 1 }
  0x3c   : > { %297 = vst.msk [vmem:[#allocation2 + $0x109] sm:$0xff] %vm188_vm0, %v264_v29  ;;  %v519_v39 = vrot.slane %v3262_v37, 1  ;;  %v3269_v40 = vld [vmem:[#allocation2 + $0x48] sm:$0xff]  ;;  %v3271_v41 = vld [vmem:[#allocation2 + $0x50] sm:$0xff]  ;;  %v3273_v42 = vld [vmem:[#allocation2 + $0x40] sm:$0x3]  ;;  %v3277_v43 = vsel %vm510_vm2, %v516_v33, %v3257_v34 }
  0x3d   : > { %5312 = vst [vmem:[#allocation6_spill] sm:$0xff] %v3266_v38  ;;  %v526_v44 = vrot.slane %v3269_v40, 1  ;;  %v3281_v45 = vrot.slane %v3271_v41, 1  ;;  %595 = vrot.lane.b32.xlu1 %v3277_v43, %s3047_s4  ;;  %v3287_v46 = vsel %vm510_vm2, %v521_v36, %v3266_v38  ;;  %v3289_v47 = vld [vmem:[#allocation2 + $0x60] sm:$0xff]  ;;  %v3291_v48 = vld [vmem:[#allocation2 + $0x68] sm:$0xff]  ;;  %v524_v50 = vrot.slane %v3273_v42, 1 }
  0x3e   : > { %v520_v49 = vsel %vm510_vm2, %v3257_v34, %v519_v39  ;;  %599 = vrot.lane.b32.xlu0 %v3287_v46, %s3047_s4  ;;  %v3298_v51 = vld [vmem:[#allocation2 + $0x58] sm:$0x3]  ;;  %v531_v53 = vrot.slane %v3289_v47, 1  ;;  %v3306_v54 = vrot.slane %v3291_v48, 1  ;;  %v3311_v56 = vld [vmem:[#allocation2 + $0x80] sm:$0xff]  ;;  %v3329_v0 = vld [vmem:[#allocation2 + $0x90] sm:$0xff] }
  0x3f   : > { %5313 = vst [vmem:[#allocation7_spill] sm:$0xff] %v3281_v45  ;;  %v3302_v52 = vsel %vm510_vm2, %v526_v44, %v3281_v45  ;;  %v3309_v55 = vld [vmem:[#allocation2 + $0x78] sm:$0xff]  ;;  %v525_v57 = vsel %vm510_vm2, %v3266_v38, %v524_v50  ;;  %v529_v58 = vrot.slane %v3298_v51, 1  ;;  %v3318_v59 = vld [vmem:[#allocation2 + $0x70] sm:$0x3]  ;;  %v3327_v63 = vrot.slane %v3311_v56, 1 }
  0x40   : > { %5314 = vst [vmem:[#allocation8_spill] sm:$0xff] %v3302_v52  ;;  %5315 = vst [vmem:[#allocation9_spill] sm:$0xff] %v3306_v54  ;;  %v3323_v61 = vsel %vm510_vm2, %v531_v53, %v3306_v54  ;;  %v536_v62 = vrot.slane %v3309_v55, 1  ;;  %v3331_v1 = vld [vmem:[#allocation2 + $0x98] sm:$0xff]  ;;  %v534_v6 = vrot.slane %v3318_v59, 1  ;;  %v541_v17 = vrot.slane %v3329_v0, 1 }
  0x41   : > { %597 = vrot.lane.b32.xlu1 %v520_v49, %s3047_s4  ;;  %5316 = vst [vmem:[#allocation10_spill] sm:$0xff] %v3323_v61  ;;  %5317 = vst [vmem:[#allocation11_spill] sm:$0xff] %v3327_v63  ;;  %v530_v5 = vsel %vm510_vm2, %v3281_v45, %v529_v58  ;;  %v3349_v13 = vld [vmem:[#allocation2 + $0x88] sm:$0x3]  ;;  %v3362_v18 = vrot.slane %v3331_v1, 1  ;;  %v3369_v20 = vld [vmem:[#allocation2 + $0xb0] sm:$0xff] }
  0x42   : > { %603 = vrot.lane.b32.xlu0 %v3302_v52, %s3047_s4  ;;  %298 = vst.msk [vmem:[#allocation2 + $0x111] sm:$0xff] %vm188_vm0, %v265_v60  ;;  %299 = vst.msk [vmem:[#allocation2 + $0x121] sm:$0xff] %vm188_vm0, %v266_v2  ;;  %v3358_v16 = vsel %vm510_vm2, %v536_v62, %v3327_v63  ;;  %v3367_v19 = vld [vmem:[#allocation2 + $0xa8] sm:$0xff]  ;;  %v535_v21 = vsel %vm510_vm2, %v3306_v54, %v534_v6  ;;  %v539_v22 = vrot.slane %v3349_v13, 1  ;;  %v3376_v23 = vld [vmem:[#allocation2 + $0xa0] sm:$0x3] }
  0x43   : > { %300 = vst.msk [vmem:[#allocation2 + $0x129] sm:$0xff] %vm188_vm0, %v267_v3  ;;  %301 = vst.msk [vmem:[#allocation2 + $0x139] sm:$0xff] %vm188_vm0, %v268_v4  ;;  %v3380_v24 = vsel %vm510_vm2, %v541_v17, %v3362_v18  ;;  %v546_v25 = vrot.slane %v3367_v19, 1  ;;  %v3384_v26 = vrot.slane %v3369_v20, 1  ;;  %v3387_v27 = vld [vmem:[#allocation2 + $0xc0] sm:$0xff]  ;;  %v3389_v28 = vld [vmem:[#allocation2 + $0xc8] sm:$0xff] }
  0x44   : > { %302 = vst.msk [vmem:[#allocation2 + $0x141] sm:$0xff] %vm188_vm0, %v269_v10  ;;  %303 = vst.msk [vmem:[#allocation2 + $0x151] sm:$0xff] %vm188_vm0, %v270_v11  ;;  %v540_v29 = vsel %vm510_vm2, %v3327_v63, %v539_v22  ;;  %v544_v33 = vrot.slane %v3376_v23, 1  ;;  %v3396_v36 = vld [vmem:[#allocation2 + $0xb8] sm:$0x3]  ;;  %v551_v44 = vrot.slane %v3387_v27, 1 }
  0x45   : > { %601 = vrot.lane.b32.xlu1 %v525_v57, %s3047_s4  ;;  %304 = vst.msk [vmem:[#allocation2 + $0x159] sm:$0xff] %vm188_vm0, %v271_v12  ;;  %5318 = vst [vmem:[#allocation12_spill] sm:$0xff] %v3358_v16  ;;  %v3400_v39 = vsel %vm510_vm2, %v546_v25, %v3384_v26  ;;  %v3404_v49 = vrot.slane %v3389_v28, 1  ;;  %v3407_v50 = vld [vmem:[#allocation2 + $0xd8] sm:$0xff]  ;;  %v3409_v53 = vld [vmem:[#allocation2 + $0xe0] sm:$0xff]  ;;  %v549_v58 = vrot.slane %v3396_v36, 1 }
  0x46   : > { %607 = vrot.lane.b32.xlu0 %v3323_v61, %s3047_s4  ;;  %5319 = vst [vmem:[#allocation13_spill] sm:$0xff] %v3362_v18  ;;  %305 = vst.msk [vmem:[#allocation2 + $0x169] sm:$0xff] %vm188_vm0, %v272_v14  ;;  %v545_v57 = vsel %vm510_vm2, %v3362_v18, %v544_v33  ;;  %v3416_v60 = vld [vmem:[#allocation2 + $0xd0] sm:$0x3]  ;;  %v556_v2 = vrot.slane %v3407_v50, 1  ;;  %v3424_v3 = vrot.slane %v3409_v53, 1 }
  0x47   : > { %306 = vst.msk [vmem:[#allocation2 + $0x171] sm:$0xff] %vm188_vm0, %v273_v15  ;;  %5320 = vst [vmem:[#allocation14_spill] sm:$0xff] %v3380_v24  ;;  %v3420_v62 = vsel %vm510_vm2, %v551_v44, %v3404_v49  ;;  %v3427_v4 = vld [vmem:[#allocation2 + $0xf0] sm:$0xff]  ;;  %v550_v6 = vsel %vm510_vm2, %v3384_v26, %v549_v58  ;;  %v554_v10 = vrot.slane %v3416_v60, 1  ;;  %v3436_v11 = vld [vmem:[#allocation2 + $0xe8] sm:$0x3] }
  0x48   : > { %5321 = vst [vmem:[#allocation15_spill] sm:$0xff] %v3384_v26  ;;  %5322 = vst [vmem:[#allocation16_spill] sm:$0xff] %v3400_v39  ;;  %v3440_v12 = vsel %vm510_vm2, %v556_v2, %v3424_v3  ;;  %v561_v14 = vrot.slane %v3427_v4, 1  ;;  %v3447_v17 = vld [vmem:[#allocation2 + $0x108] sm:$0xff]  ;;  %v559_v25 = vrot.slane %v3436_v11, 1  ;;  %v689_v52 = vrot.slane %v3206_v8, 2 }
  0x49   : > { %605 = vrot.lane.b32.xlu1 %v530_v5, %s3047_s4  ;;  %5323 = vst [vmem:[#allocation17_spill] sm:$0xff] %v3404_v49  ;;  %5324 = vst [vmem:[#allocation18_spill] sm:$0xff] %v3420_v62  ;;  %v3429_v5 = vld [vmem:[#allocation2 + $0xf8] sm:$0xff]  ;;  %v555_v22 = vsel %vm510_vm2, %v3404_v49, %v554_v10  ;;  %v566_v44 = vrot.slane %v3447_v17, 1  ;;  %v3467_v58 = vld [vmem:[#allocation2 + $0x120] sm:$0xff]  ;;  %v3573_v8 = vrot.slane %v3248_v31, 2 }
  0x4a   : > { %611 = vrot.lane.b32.xlu0 %v3358_v16, %s3047_s4  ;;  %5325 = vst [vmem:[#allocation19_spill] sm:$0xff] %v3424_v3  ;;  %5326 = vst [vmem:[#allocation20_spill] sm:$0xff] %v3440_v12  ;;  %v3444_v15 = vrot.slane %v3429_v5, 1  ;;  %v3469_v2 = vld [vmem:[#allocation2 + $0x128] sm:$0xff]  ;;  %v3487_v26 = vld [vmem:[#allocation2 + $0x138] sm:$0xff] }
  0x4b   : > { %v275_v38 = vld [vmem:[%s3193_s30 + $0xf8] sm:$0xff] }
  0x4c   : > { %5327 = vst [vmem:[#allocation21_spill] sm:$0xff] %v3444_v15  ;;  %v3460_v33 = vsel %vm510_vm2, %v561_v14, %v3444_v15  ;;  %v3476_v14 = vld [vmem:[#allocation2 + $0x118] sm:$0x3]  ;;  %308 = vst.msk [vmem:[#allocation2 + $0x189] sm:$0xff] %vm188_vm0, %v275_v38 }
  0x4d   : > { %609 = vrot.lane.b32.xlu1 %v535_v21, %s3047_s4  ;;  %v3449_v21 = vld [vmem:[#allocation2 + $0x110] sm:$0xff]  ;;  %5328 = vst [vmem:[#allocation22_spill] sm:$0xff] %v3460_v33  ;;  %v569_v18 = vrot.slane %v3476_v14, 1  ;;  %v3509_v16 = vld [vmem:[#allocation2 + $0x158] sm:$0xff] }
  0x4e   : > { %615 = vrot.lane.b32.xlu0 %v3380_v24, %s3047_s4 }
  0x51   : > { %613 = vrot.lane.b32.xlu1 %v540_v29, %s3047_s4  ;;  %v3456_v29 = vld [vmem:[#allocation2 + $0x100] sm:$0x3] }
  0x52   : > { %619 = vrot.lane.b32.xlu0 %v3400_v39, %s3047_s4  ;;  %v564_v10 = vrot.slane %v3456_v29, 1 }
  0x54   : > { %v565_v39 = vsel %vm510_vm2, %v3444_v15, %v564_v10  ;;  %v3507_v10 = vld [vmem:[#allocation2 + $0x150] sm:$0xff]  ;;  %v3524_v15 = vrot.slane %v3509_v16, 1 }
  0x55   : > { %617 = vrot.lane.b32.xlu1 %v545_v57, %s3047_s4  ;;  %v3464_v57 = vrot.slane %v3449_v21, 1 }
  0x56   : > { %623 = vrot.lane.b32.xlu0 %v3420_v62, %s3047_s4  ;;  %v3484_v62 = vrot.slane %v3469_v2, 1  ;;  %5335 = vst [vmem:[#allocation29_spill] sm:$0xff] %v3524_v15 }
  0x57   : > { %5329 = vst [vmem:[#allocation23_spill] sm:$0xff] %v3464_v57  ;;  %v3480_v49 = vsel %vm510_vm2, %v566_v44, %v3464_v57  ;;  %v3496_v44 = vld [vmem:[#allocation2 + $0x130] sm:$0x3]  ;;  %v570_v54 = vsel %vm510_vm2, %v3464_v57, %v569_v18 }
  0x58   : > { %5330 = vst [vmem:[#allocation24_spill] sm:$0xff] %v3480_v49  ;;  %5331 = vst [vmem:[#allocation25_spill] sm:$0xff] %v3484_v62  ;;  %v574_v61 = vrot.slane %v3496_v44, 1  ;;  %v3529_v18 = vld [vmem:[#allocation2 + $0x170] sm:$0xff] }
  0x59   : > { %621 = vrot.lane.b32.xlu1 %v550_v6, %s3047_s4  ;;  %v560_v6 = vsel %vm510_vm2, %v3424_v3, %v559_v25  ;;  %v3489_v25 = vld [vmem:[#allocation2 + $0x140] sm:$0xff]  ;;  %v274_v3 = vld [vmem:[%s3193_s30 + $0xf0] sm:$0xff]  ;;  %v3546_v45 = vrot.slane %v3529_v18, 1 }
  0x5a   : > { %627 = vrot.lane.b32.xlu0 %v3440_v12, %s3047_s4  ;;  %v3504_v63 = vrot.slane %v3489_v25, 1  ;;  %307 = vst.msk [vmem:[#allocation2 + $0x181] sm:$0xff] %vm188_vm0, %v274_v3  ;;  %v3554_v3 = vld [vmem:[#allocation2 + $0x178] sm:$0x3] }
  0x5b   : > { %5337 = vst [vmem:[#allocation31_spill] sm:$0xff] %v3546_v45 }
  0x5c   : > { %5333 = vst [vmem:[#allocation27_spill] sm:$0xff] %v3504_v63 }
  0x5d   : > { %625 = vrot.lane.b32.xlu1 %v555_v22, %s3047_s4  ;;  %v571_v22 = vrot.slane %v3467_v58, 1 }
  0x5e   : > { %631 = vrot.lane.b32.xlu0 %v3460_v33, %s3047_s4  ;;  %v3527_v33 = vld [vmem:[#allocation2 + $0x168] sm:$0xff] }
  0x5f   : > { %v3500_v24 = vsel %vm510_vm2, %v571_v22, %v3484_v62  ;;  %v3516_v22 = vld [vmem:[#allocation2 + $0x148] sm:$0x3]  ;;  %v586_v12 = vrot.slane %v3527_v33, 1 }
  0x60   : > { %5332 = vst [vmem:[#allocation26_spill] sm:$0xff] %v3500_v24  ;;  %v579_v57 = vrot.slane %v3516_v22, 1 }
  0x61   : > { %629 = vrot.lane.b32.xlu1 %v560_v6, %s3047_s4  ;;  %v576_v6 = vrot.slane %v3487_v26, 1 }
  0x62   : > { %635 = vrot.lane.b32.xlu0 %v3480_v49, %s3047_s4 }
  0x63   : > { %v3520_v49 = vsel %vm510_vm2, %v576_v6, %v3504_v63  ;;  %v3537_v6 = vld [vmem:[#allocation2 + $0x160] sm:$0x3] }
  0x64   : > { %5334 = vst [vmem:[#allocation28_spill] sm:$0xff] %v3520_v49 }
  0x65   : > { %633 = vrot.lane.b32.xlu1 %v565_v39, %s3047_s4  ;;  %v581_v39 = vrot.slane %v3507_v10, 1 }
  0x66   : > { %639 = vrot.lane.b32.xlu0 %v3500_v24, %s3047_s4  ;;  %v575_v24 = vsel %vm510_vm2, %v3484_v62, %v574_v61  ;;  %v580_v61 = vsel %vm510_vm2, %v3504_v63, %v579_v57  ;;  %v688_v62 = vrot.slane %v3204_v7, 2  ;;  %v589_v57 = vrot.slane %v3554_v3, 1 }
  0x67   : > { %v693_v7 = vrot.slane %v3246_v30, 2  ;;  %v3769_v63 = vrot.slane %v3529_v18, 2 }
  0x68   : > { %v590_v38 = vsel %vm510_vm2, %v3546_v45, %v589_v57  ;;  %v696_v57 = vrot.slane %v3262_v37, 2 }
  0x69   : > { %637 = vrot.lane.b32.xlu1 %v570_v54, %s3047_s4  ;;  %v3542_v54 = vsel %vm510_vm2, %v581_v39, %v3524_v15  ;;  %v3558_v39 = vsel %vm510_vm2, %v586_v12, %v3546_v45  ;;  %v690_v12 = vsel %vm687_vm3, %v688_v62, %v689_v52  ;;  %v698_v62 = vrot.slane %v3250_v32, 2  ;;  %5350 = vst [vmem:[#allocation44_spill] sm:$0xff] %v3769_v63 }
  0x6a   : > { %643 = vrot.lane.b32.xlu0 %v3520_v49, %s3047_s4  ;;  %5336 = vst [vmem:[#allocation30_spill] sm:$0xff] %v3542_v54  ;;  %v584_v49 = vrot.slane %v3537_v6, 1  ;;  %5338 = vst [vmem:[#allocation32_spill] sm:$0xff] %v3558_v39  ;;  %v3627_v45 = vrot.slane %v3311_v56, 2 }
  0x6c   : > { %5339 = vst [vmem:[#allocation33_spill] sm:$0xff] %v3627_v45 }
  0x6d   : > { %641 = vrot.lane.b32.xlu1 %v575_v24, %s3047_s4  ;;  %v585_v24 = vsel %vm510_vm2, %v3524_v15, %v584_v49  ;;  %v3582_v49 = vsel %vm687_vm3, %v693_v7, %v3573_v8  ;;  %v3599_v7 = vrot.slane %v3271_v41, 2  ;;  %v3641_v15 = vrot.slane %v3331_v1, 2 }
  0x6e   : > { %647 = vrot.lane.b32.xlu0 %v3542_v54, %s3047_s4  ;;  %v3655_v54 = vrot.slane %v3369_v20, 2 }
  0x6f   : > { %5341 = vst [vmem:[#allocation35_spill] sm:$0xff] %v3641_v15 }
  0x70   : > { %5343 = vst [vmem:[#allocation37_spill] sm:$0xff] %v3655_v54 }
  0x71   : > { %645 = vrot.lane.b32.xlu1 %v580_v61, %s3047_s4  ;;  %v691_v61 = vrot.slane %v3208_v9, 2 }
  0x72   : > { %651 = vrot.lane.b32.xlu0 %v3558_v39, %s3047_s4  ;;  %v3586_v39 = vrot.slane %v3259_v35, 2 }
  0x74   : > { %v3595_v9 = vsel %vm687_vm3, %v698_v62, %v3586_v39  ;;  %v3613_v62 = vrot.slane %v3291_v48, 2 }
  0x75   : > { %649 = vrot.lane.b32.xlu1 %v585_v24, %s3047_s4  ;;  %v692_v24 = vsel %vm687_vm3, %v689_v52, %v691_v61  ;;  %v701_v52 = vrot.slane %v3273_v42, 2  ;;  %v708_v61 = vrot.slane %v3289_v47, 2 }
  0x76   : > { %768 = vrot.lane.b32.xlu0 %v690_v12, %s3048_s5  ;;  %v703_v12 = vrot.slane %v3269_v40, 2 }
  0x77   : > { %v3623_v42 = vsel %vm687_vm3, %v708_v61, %v3613_v62  ;;  %v718_v61 = vrot.slane %v3329_v0, 2 }
  0x78   : > { %v3609_v37 = vsel %vm687_vm3, %v703_v12, %v3599_v7  ;;  %v713_v12 = vrot.slane %v3309_v55, 2 }
  0x79   : > { %653 = vrot.lane.b32.xlu1 %v590_v38, %s3047_s4  ;;  %v697_v38 = vsel %vm687_vm3, %v3573_v8, %v696_v57  ;;  %v706_v57 = vrot.slane %v3298_v51, 2 }
  0x7a   : > { %772 = vrot.lane.b32.xlu0 %v3582_v49, %s3048_s5  ;;  %v3637_v51 = vsel %vm687_vm3, %v713_v12, %v3627_v45  ;;  %v723_v12 = vrot.slane %v3367_v19, 2 }
  0x7b   : > { %5340 = vst [vmem:[#allocation34_spill] sm:$0xff] %v3637_v51 }
  0x7d   : > { %770 = vrot.lane.b32.xlu1 %v692_v24, %s3048_s5  ;;  %v702_v24 = vsel %vm687_vm3, %v3586_v39, %v701_v52  ;;  %v711_v52 = vrot.slane %v3318_v59, 2  ;;  %v3651_v59 = vsel %vm687_vm3, %v718_v61, %v3641_v15  ;;  %v728_v61 = vrot.slane %v3387_v27, 2 }
  0x7e   : > { %776 = vrot.lane.b32.xlu0 %v3595_v9, %s3048_s5  ;;  %5342 = vst [vmem:[#allocation36_spill] sm:$0xff] %v3651_v59 }
  0x81   : > { %774 = vrot.lane.b32.xlu1 %v697_v38, %s3048_s5  ;;  %v707_v38 = vsel %vm687_vm3, %v3599_v7, %v706_v57  ;;  %v716_v57 = vrot.slane %v3349_v13, 2  ;;  %v3665_v13 = vsel %vm687_vm3, %v723_v12, %v3655_v54  ;;  %v733_v12 = vrot.slane %v3407_v50, 2 }
  0x82   : > { %780 = vrot.lane.b32.xlu0 %v3609_v37, %s3048_s5  ;;  %5344 = vst [vmem:[#allocation38_spill] sm:$0xff] %v3665_v13 }
  0x85   : > { %778 = vrot.lane.b32.xlu1 %v702_v24, %s3048_s5  ;;  %v712_v24 = vsel %vm687_vm3, %v3613_v62, %v711_v52  ;;  %v721_v52 = vrot.slane %v3376_v23, 2 }
  0x86   : > { %784 = vrot.lane.b32.xlu0 %v3623_v42, %s3048_s5 }
  0x89   : > { %782 = vrot.lane.b32.xlu1 %v707_v38, %s3048_s5  ;;  %v717_v38 = vsel %vm687_vm3, %v3627_v45, %v716_v57  ;;  %v726_v57 = vrot.slane %v3396_v36, 2 }
  0x8a   : > { %788 = vrot.lane.b32.xlu0 %v3637_v51, %s3048_s5  ;;  %v3669_v51 = vrot.slane %v3389_v28, 2 }
  0x8c   : > { %5345 = vst [vmem:[#allocation39_spill] sm:$0xff] %v3669_v51  ;;  %v3679_v23 = vsel %vm687_vm3, %v728_v61, %v3669_v51  ;;  %v738_v61 = vrot.slane %v3427_v4, 2 }
  0x8d   : > { %786 = vrot.lane.b32.xlu1 %v712_v24, %s3048_s5  ;;  %v722_v24 = vsel %vm687_vm3, %v3641_v15, %v721_v52  ;;  %5346 = vst [vmem:[#allocation40_spill] sm:$0xff] %v3679_v23  ;;  %v731_v52 = vrot.slane %v3416_v60, 2  ;;  %v3753_v15 = vrot.slane %v3509_v16, 2 }
  0x8e   : > { %792 = vrot.lane.b32.xlu0 %v3651_v59, %s3048_s5  ;;  %v3683_v59 = vrot.slane %v3409_v53, 2 }
  0x90   : > { %v3693_v36 = vsel %vm687_vm3, %v733_v12, %v3683_v59  ;;  %v743_v12 = vrot.slane %v3447_v17, 2 }
  0x91   : > { %790 = vrot.lane.b32.xlu1 %v717_v38, %s3048_s5  ;;  %v727_v38 = vsel %vm687_vm3, %v3655_v54, %v726_v57  ;;  %v736_v57 = vrot.slane %v3436_v11, 2  ;;  %v3739_v54 = vrot.slane %v3489_v25, 2 }
  0x92   : > { %796 = vrot.lane.b32.xlu0 %v3665_v13, %s3048_s5  ;;  %v3697_v13 = vrot.slane %v3429_v5, 2 }
  0x94   : > { %v3707_v60 = vsel %vm687_vm3, %v738_v61, %v3697_v13  ;;  %v748_v61 = vrot.slane %v3467_v58, 2 }
  0x95   : > { %794 = vrot.lane.b32.xlu1 %v722_v24, %s3048_s5  ;;  %v732_v24 = vsel %vm687_vm3, %v3669_v51, %v731_v52  ;;  %v741_v52 = vrot.slane %v3456_v29, 2  ;;  %v3725_v51 = vrot.slane %v3469_v2, 2  ;;  %v3755_v45 = vpop.permute.xlu0 %591 }
  0x96   : > { %800 = vrot.lane.b32.xlu0 %v3679_v23, %s3048_s5  ;;  %v3711_v23 = vrot.slane %v3449_v21, 2  ;;  %5348 = vst [vmem:[#allocation42_spill] sm:$0xff] %v3755_v45 }
  0x97   : > { %v3735_v29 = vsel %vm687_vm3, %v748_v61, %v3725_v51  ;;  %v758_v61 = vrot.slane %v3507_v10, 2 }
  0x98   : > { %v3721_v11 = vsel %vm687_vm3, %v743_v12, %v3711_v23  ;;  %v753_v12 = vrot.slane %v3487_v26, 2 }
  0x99   : > { %798 = vrot.lane.b32.xlu1 %v727_v38, %s3048_s5  ;;  %v737_v38 = vsel %vm687_vm3, %v3683_v59, %v736_v57  ;;  %v746_v57 = vrot.slane %v3476_v14, 2 }
  0x9a   : > { %804 = vrot.lane.b32.xlu0 %v3693_v36, %s3048_s5  ;;  %v3749_v14 = vsel %vm687_vm3, %v753_v12, %v3739_v54  ;;  %v763_v12 = vrot.slane %v3527_v33, 2 }
  0x9b   : > { %5347 = vst [vmem:[#allocation41_spill] sm:$0xff] %v3749_v14 }
  0x9d   : > { %802 = vrot.lane.b32.xlu1 %v732_v24, %s3048_s5  ;;  %v742_v24 = vsel %vm687_vm3, %v3697_v13, %v741_v52  ;;  %v751_v52 = vrot.slane %v3496_v44, 2  ;;  %v756_v44 = vrot.slane %v3516_v22, 2  ;;  %v761_v22 = vrot.slane %v3537_v6, 2 }
  0x9e   : > { %808 = vrot.lane.b32.xlu0 %v3707_v60, %s3048_s5 }
  0xa1   : > { %806 = vrot.lane.b32.xlu1 %v737_v38, %s3048_s5  ;;  %v747_v38 = vsel %vm687_vm3, %v3711_v23, %v746_v57  ;;  %v3765_v57 = vsel %vm687_vm3, %v758_v61, %v3753_v15  ;;  %v3783_v61 = vsel %vm687_vm3, %v763_v12, %v3769_v63 }
  0xa2   : > { %812 = vrot.lane.b32.xlu0 %v3721_v11, %s3048_s5  ;;  %5349 = vst [vmem:[#allocation43_spill] sm:$0xff] %v3765_v57  ;;  %5351 = vst [vmem:[#allocation45_spill] sm:$0xff] %v3783_v61 }
  0xa5   : > { %810 = vrot.lane.b32.xlu1 %v742_v24, %s3048_s5  ;;  %v752_v24 = vsel %vm687_vm3, %v3725_v51, %v751_v52 }
  0xa6   : > { %816 = vrot.lane.b32.xlu0 %v3735_v29, %s3048_s5  ;;  %v3771_v45 = vpop.permute.xlu0 %593 }
  0xa9   : > { %814 = vrot.lane.b32.xlu1 %v747_v38, %s3048_s5  ;;  %v757_v38 = vsel %vm687_vm3, %v3739_v54, %v756_v44  ;;  %v766_v44 = vrot.slane %v3554_v3, 2 }
  0xaa   : > { %820 = vrot.lane.b32.xlu0 %v3749_v14, %s3048_s5 }
  0xab   : > { %v767_v12 = vsel %vm687_vm3, %v3769_v63, %v766_v44 }
  0xad   : > { %818 = vrot.lane.b32.xlu1 %v752_v24, %s3048_s5  ;;  %v762_v24 = vsel %vm687_vm3, %v3753_v15, %v761_v22 }
  0xae   : > { %824 = vrot.lane.b32.xlu0 %v3765_v57, %s3048_s5 }
  0xaf   : > { %v3779_v52 = vpop.permute.xlu1 %595 }
  0xb0   : > { %v3785_v14 = vpop.permute.xlu0 %599 }
  0xb1   : > { %822 = vrot.lane.b32.xlu1 %v757_v38, %s3048_s5 }
  0xb2   : > { %828 = vrot.lane.b32.xlu0 %v3783_v61, %s3048_s5 }
  0xb3   : > { %v3793_v6 = vpop.permute.xlu1 %597 }
  0xb4   : > { %v3795_v57 = vpop.permute.xlu0 %603 }
  0xb5   : > { %5352 = vst [vmem:[#allocation46_spill] sm:$0xff] %v3795_v57  ;;  %826 = vrot.lane.b32.xlu1 %v762_v24, %s3048_s5 }
  0xb6   : > { %896 = vrot.lane.b32.xlu0 %v3246_v30, %s3049_s6 }
  0xb7   : > { %v3802_v38 = vpop.permute.xlu1 %601 }
  0xb8   : > { %5353 = vst [vmem:[#allocation47_spill] sm:$0xff] %v3802_v38  ;;  %v3804_v22 = vpop.permute.xlu0 %607  ;;  %v4291_v38 = vld [vmem:[#allocation2 + $0x88] sm:$0x3] }
  0xb9   : > { %5354 = vst [vmem:[#allocation48_spill] sm:$0xff] %v3804_v22  ;;  %830 = vrot.lane.b32.xlu1 %v767_v12, %s3048_s5 }
  0xba   : > { %900 = vrot.lane.b32.xlu0 %v3250_v32, %s3049_s6 }
  0xbb   : > { %v3809_v3 = vpop.permute.xlu1 %605 }
  0xbc   : > { %5355 = vst [vmem:[#allocation49_spill] sm:$0xff] %v3809_v3  ;;  %v3811_v57 = vpop.permute.xlu0 %611 }
  0xbd   : > { %5356 = vst [vmem:[#allocation50_spill] sm:$0xff] %v3811_v57  ;;  %898 = vrot.lane.b32.xlu1 %v3248_v31, %s3049_s6 }
  0xbe   : > { %904 = vrot.lane.b32.xlu0 %v3269_v40, %s3049_s6 }
  0xbf   : > { %v3817_v30 = vpop.permute.xlu1 %609 }
  0xc0   : > { %5357 = vst [vmem:[#allocation51_spill] sm:$0xff] %v3817_v30  ;;  %v3819_v24 = vpop.permute.xlu0 %615 }
  0xc1   : > { %5358 = vst [vmem:[#allocation52_spill] sm:$0xff] %v3819_v24  ;;  %902 = vrot.lane.b32.xlu1 %v3259_v35, %s3049_s6  ;;  %v5380_v24 = vld [vmem:[#allocation6_spill] sm:$0xff] }
  0xc2   : > { %908 = vrot.lane.b32.xlu0 %v3289_v47, %s3049_s6 }
  0xc3   : > { %v3825_v32 = vpop.permute.xlu1 %613 }
  0xc4   : > { %5359 = vst [vmem:[#allocation53_spill] sm:$0xff] %v3825_v32  ;;  %v3827_v44 = vpop.permute.xlu0 %619  ;;  %v2624_v32 = vld [vmem:[#allocation2 + $0xe8] sm:$0x3] }
  0xc5   : > { %5360 = vst [vmem:[#allocation54_spill] sm:$0xff] %v3827_v44  ;;  %906 = vrot.lane.b32.xlu1 %v3271_v41, %s3049_s6  ;;  %v1051_v57 = vrot.slane %v2624_v32, 1 }
  0xc6   : > { %912 = vrot.lane.b32.xlu0 %v3309_v55, %s3049_s6 }
  0xc7   : > { %v3833_v31 = vpop.permute.xlu1 %617 }
  0xc8   : > { %5361 = vst [vmem:[#allocation55_spill] sm:$0xff] %v3833_v31  ;;  %v3835_v40 = vpop.permute.xlu0 %623 }
  0xc9   : > { %910 = vrot.lane.b32.xlu1 %v3291_v48, %s3049_s6 }
  0xca   : > { %916 = vrot.lane.b32.xlu0 %v3329_v0, %s3049_s6 }
  0xcb   : > { %v3841_v35 = vpop.permute.xlu1 %621 }
  0xcc   : > { %5362 = vst [vmem:[#allocation56_spill] sm:$0xff] %v3841_v35  ;;  %v3843_v47 = vpop.permute.xlu0 %627 }
  0xcd   : > { %914 = vrot.lane.b32.xlu1 %v3311_v56, %s3049_s6 }
  0xce   : > { %920 = vrot.lane.b32.xlu0 %v3367_v19, %s3049_s6 }
  0xcf   : > { %v3849_v41 = vpop.permute.xlu1 %625 }
  0xd0   : > { %v3851_v55 = vpop.permute.xlu0 %631 }
  0xd1   : > { %5363 = vst [vmem:[#allocation57_spill] sm:$0xff] %v3851_v55  ;;  %918 = vrot.lane.b32.xlu1 %v3331_v1, %s3049_s6  ;;  %v2933_v55 = vld [vmem:[#allocation2 + $0xc0] sm:$0xff] }
  0xd2   : > { %924 = vrot.lane.b32.xlu0 %v3387_v27, %s3049_s6 }
  0xd3   : > { %v3857_v48 = vpop.permute.xlu1 %629 }
  0xd4   : > { %v3859_v0 = vpop.permute.xlu0 %635 }
  0xd5   : > { %5364 = vst [vmem:[#allocation58_spill] sm:$0xff] %v3859_v0  ;;  %922 = vrot.lane.b32.xlu1 %v3369_v20, %s3049_s6 }
  0xd6   : > { %928 = vrot.lane.b32.xlu0 %v3407_v50, %s3049_s6 }
  0xd7   : > { %v3865_v56 = vpop.permute.xlu1 %633 }
  0xd8   : > { %5365 = vst [vmem:[#allocation59_spill] sm:$0xff] %v3865_v56  ;;  %v3867_v19 = vpop.permute.xlu0 %639  ;;  %v4284_v56 = vld [vmem:[#allocation2 + $0x148] sm:$0x3] }
  0xd9   : > { %5366 = vst [vmem:[#allocation60_spill] sm:$0xff] %v3867_v19  ;;  %926 = vrot.lane.b32.xlu1 %v3389_v28, %s3049_s6  ;;  %v5395_v19 = vld [vmem:[#allocation22_spill] sm:$0xff] }
  0xda   : > { %932 = vrot.lane.b32.xlu0 %v3427_v4, %s3049_s6 }
  0xdb   : > { %v3873_v1 = vpop.permute.xlu1 %637 }
  0xdc   : > { %5367 = vst [vmem:[#allocation61_spill] sm:$0xff] %v3873_v1  ;;  %v3875_v27 = vpop.permute.xlu0 %643 }
  0xdd   : > { %5368 = vst [vmem:[#allocation62_spill] sm:$0xff] %v3875_v27  ;;  %930 = vrot.lane.b32.xlu1 %v3409_v53, %s3049_s6  ;;  %v5384_v27 = vld [vmem:[#allocation7_spill] sm:$0xff] }
  0xde   : > { %936 = vrot.lane.b32.xlu0 %v3447_v17, %s3049_s6 }
  0xdf   : > { %v3881_v20 = vpop.permute.xlu1 %641 }
  0xe0   : > { %5369 = vst [vmem:[#allocation63_spill] sm:$0xff] %v3881_v20  ;;  %v3883_v50 = vpop.permute.xlu0 %647 }
  0xe1   : > { %5370 = vst [vmem:[#allocation64_spill] sm:$0xff] %v3883_v50  ;;  %934 = vrot.lane.b32.xlu1 %v3429_v5, %s3049_s6  ;;  %v3942_v50 = vld [vmem:[#allocation2 + $0x58] sm:$0x3] }
  0xe2   : > { %940 = vrot.lane.b32.xlu0 %v3467_v58, %s3049_s6 }
  0xe3   : > { %v3889_v28 = vpop.permute.xlu1 %645 }
  0xe4   : > { %5371 = vst [vmem:[#allocation65_spill] sm:$0xff] %v3889_v28  ;;  %v3891_v12 = vpop.permute.xlu0 %651 }
  0xe5   : > { %5372 = vst [vmem:[#allocation66_spill] sm:$0xff] %v3891_v12  ;;  %938 = vrot.lane.b32.xlu1 %v3449_v21, %s3049_s6  ;;  %v2643_v21 = vld [vmem:[#allocation2 + $0x180] sm:$0xff] }
  0xe6   : > { %944 = vrot.lane.b32.xlu0 %v3487_v26, %s3049_s6 }
  0xe7   : > { %v3897_v53 = vpop.permute.xlu1 %649 }
  0xe8   : > { %5373 = vst [vmem:[#allocation67_spill] sm:$0xff] %v3897_v53  ;;  %v3899_v17 = vpop.permute.xlu0 %768  ;;  %v3930_v53 = vld [vmem:[#allocation2 + $0x40] sm:$0x3] }
  0xe9   : > { %942 = vrot.lane.b32.xlu1 %v3469_v2, %s3049_s6  ;;  %v1016_v31 = vrot.slane %v3930_v53, 1 }
  0xea   : > { %948 = vrot.lane.b32.xlu0 %v3507_v10, %s3049_s6  ;;  %v2600_v10 = vld [vmem:[#allocation2 + $0x28] sm:$0x3] }
  0xeb   : > { %v3905_v58 = vpop.permute.xlu1 %653  ;;  %v1017_v28 = vsel %vm510_vm2, %v5380_v24, %v1016_v31  ;;  %v1187_v31 = vrot.slane %v2600_v10, 2 }
  0xec   : > { %5374 = vst [vmem:[#allocation68_spill] sm:$0xff] %v3905_v58  ;;  %v3907_v35 = vpop.permute.xlu0 %772 }
  0xed   : > { %946 = vrot.lane.b32.xlu1 %v3489_v25, %s3049_s6  ;;  %v2644_v25 = vld [vmem:[#allocation2 + $0x188] sm:$0xff] }
  0xee   : > { %952 = vrot.lane.b32.xlu0 %v3527_v33, %s3049_s6  ;;  %v1011_v33 = vrot.slane %v2600_v10, 1  ;;  %v1227_v10 = vrot.slane %v2624_v32, 2  ;;  %v3992_v32 = vld [vmem:[#allocation2 + $0x38] sm:$0xff] }
  0xef   : > { %v3913_v26 = vpop.permute.xlu1 %770 }
  0xf0   : > { %v3915_v12 = vpop.permute.xlu0 %776 }
  0xf1   : > { %950 = vrot.lane.b32.xlu1 %v3509_v16, %s3049_s6 }
  0xf2   : > { %956 = vrot.lane.b32.xlu0 %v2643_v21, %s3049_s6  ;;  %v1012_v21 = vsel %vm510_vm2, %v3257_v34, %v1011_v33  ;;  %v5381_v34 = vld [vmem:[#allocation8_spill] sm:$0xff] }
  0xf3   : > { %v3920_v2 = vpop.permute.xlu1 %774 }
  0xf4   : > { %v3922_v58 = vpop.permute.xlu0 %780 }
  0xf5   : > { %5375 = vst [vmem:[#allocation69_spill] sm:$0xff] %v3922_v58  ;;  %954 = vrot.lane.b32.xlu1 %v3529_v18, %s3049_s6  ;;  %v2630_v58 = vld [vmem:[#allocation2 + $0x118] sm:$0x3] }
  0xf6   : > { %1088 = vrot.lane.b32.xlu0 %v3277_v43, %s3050_s7 }
  0xf7   : > { %v3928_v44 = vpop.permute.xlu1 %778 }
  0xf8   : > { %5376 = vst [vmem:[#allocation70_spill] sm:$0xff] %v3928_v44  ;;  %v3932_v16 = vpop.permute.xlu0 %784 }
  0xf9   : > { %5377 = vst [vmem:[#allocation71_spill] sm:$0xff] %v3932_v16  ;;  %958 = vrot.lane.b32.xlu1 %v2644_v25, %s3049_s6  ;;  %v1021_v25 = vrot.slane %v3942_v50, 1 }
  0xfa   : > { %1092 = vrot.lane.b32.xlu0 %v3287_v46, %s3050_s7 }
  0xfb   : > { %v3940_v18 = vpop.permute.xlu1 %782 }
  0xfc   : > { %5378 = vst [vmem:[#allocation72_spill] sm:$0xff] %v3940_v18  ;;  %v3944_v43 = vpop.permute.xlu0 %788 }
  0xfd   : > { %5379 = vst [vmem:[#allocation73_spill] sm:$0xff] %v3944_v43  ;;  %1090 = vrot.lane.b32.xlu1 %v1012_v21, %s3050_s7  ;;  %v1022_v43 = vsel %vm510_vm2, %v5384_v27, %v1021_v25  ;;  %v5385_v21 = vld [vmem:[#allocation20_spill] sm:$0xff]  ;;  %v1188_v27 = vsel %vm687_vm3, %v3573_v8, %v1187_v31  ;;  %v2122_v31 = vld [vmem:[%s5266_s1 + $0x10] sm:$0xff] }
  0xfe   : > { %1096 = vrot.lane.b32.xlu0 %v5381_v34, %s3050_s7  ;;  %v5388_v34 = vld [vmem:[#allocation19_spill] sm:$0xff] }
  0xff   : > { %v3952_v33 = vpop.permute.xlu1 %786 }
 0x100   : > { %5382 = vst [vmem:[#allocation6_spill] sm:$0xff] %v3952_v33  ;;  %v3954_v46 = vpop.permute.xlu0 %792  ;;  %v1052_v33 = vsel %vm510_vm2, %v5388_v34, %v1051_v57  ;;  %v2121_v57 = vld [vmem:[%s5266_s1 + $0x8] sm:$0xff]  ;;  %v3986_v34 = vld [vmem:[#allocation2 + $0x30] sm:$0xff] }
 0x101   : > { %5383 = vst [vmem:[#allocation8_spill] sm:$0xff] %v3954_v46  ;;  %1094 = vrot.lane.b32.xlu1 %v1017_v28, %s3050_s7  ;;  %v2126_v46 = vld [vmem:[%s5266_s1 + $0x30] sm:$0xff] }
 0x102   : > { %1120 = vrot.lane.b32.xlu0 %v5385_v21, %s3050_s7 }
 0x103   : > { %v3961_v24 = vpop.permute.xlu1 %790 }
 0x104   : > { %5386 = vst [vmem:[#allocation7_spill] sm:$0xff] %v3961_v24  ;;  %v3963_v20 = vpop.permute.xlu0 %796  ;;  %v2127_v24 = vld [vmem:[%s5266_s1 + $0x38] sm:$0xff] }
 0x105   : > { %5387 = vst [vmem:[#allocation20_spill] sm:$0xff] %v3963_v20  ;;  %1098 = vrot.lane.b32.xlu1 %v1022_v43, %s3050_s7  ;;  %v2120_v43 = vld [vmem:[%s5266_s1] sm:$0xff]  ;;  %v2125_v20 = vld [vmem:[%s5266_s1 + $0x28] sm:$0xff] }
 0x106   : > { %1264 = vrot.lane.b32.xlu0 %v3582_v49, %s3051_s8  ;;  %v2841_v21 = vpack.c.bf16 %v2121_v57, %v2120_v43 }
 0x107   : > { %v3970_v28 = vpop.permute.xlu1 %794 }
 0x108   : > { %5389 = vst [vmem:[#allocation19_spill] sm:$0xff] %v3970_v28  ;;  %v3974_v25 = vpop.permute.xlu0 %800  ;;  %2842 = vmatprep.subr.bf16.mxu0 %v2841_v21  ;;  %2857 = vmatprep.subr.bf16.mxu1 %v2841_v21  ;;  %v2672_v28 = vld [vmem:[#allocation2 + $0x100] sm:$0x3] }
 0x109   : > { %1122 = vrot.lane.b32.xlu1 %v1052_v33, %s3050_s7  ;;  %v1228_v33 = vsel %vm687_vm3, %v3683_v59, %v1227_v10  ;;  %2844 = vmatpush3.bf16.msra.mxu0 %v2841_v21  ;;  %v1504_v59 = vrot.slane %v3986_v34, 1  ;;  %v1505_v10 = vrot.slane %v3992_v32, 1 }
 0x10a   : > { %1266 = vrot.lane.b32.xlu0 %v1188_v27, %s3051_s8  ;;  %v2123_v27 = vld [vmem:[%s5266_s1 + $0x18] sm:$0xff]  ;;  %2862 = vmatpush3.bf16.msra.mxu1 %v2841_v21 }
 0x10b   : > { %v3984_v49 = vpop.permute.xlu1 %798  ;;  %v2845_v43 = vpack.c.bf16 %v2123_v27, %v2122_v31 }
 0x10c   : > { %5390 = vst [vmem:[#allocation74_spill] sm:$0xff] %v3984_v49  ;;  %v3988_v8 = vpop.permute.xlu0 %804  ;;  %v2124_v49 = vld [vmem:[%s5266_s1 + $0x20] sm:$0xff] }
 0x10d   : > { %1296 = vrot.lane.b32.xlu1 %v3693_v36, %s3051_s8  ;;  %2846 = vmatprep.subr.bf16.mxu0 %v2845_v43  ;;  %v2849_v31 = vpack.c.bf16 %v2125_v20, %v2124_v49  ;;  %v2648_v49 = vld [vmem:[#allocation2 + $0x40] sm:$0x3] }
 0x10e   : > { %1392 = vrot.lane.b32.xlu0 %v3986_v34, %s3052_s27  ;;  %2848 = vmatpush3.bf16.msra.mxu0 %v2845_v43  ;;  %v1507_v30 = vrot.slane %v2648_v49, 1 }
 0x10f   : > { %v4004_v36 = vpop.permute.xlu1 %802  ;;  %2858 = vmatprep.subr.bf16.mxu1 %v2845_v43  ;;  %2850 = vmatprep.subr.bf16.mxu0 %v2849_v31 }
 0x110   : > { %v4008_v57 = vpop.permute.xlu0 %808  ;;  %2863 = vmatpush3.bf16.msra.mxu1 %v2845_v43  ;;  %v2853_v43 = vpack.c.bf16 %v2127_v24, %v2126_v46  ;;  %v2128_v24 = vld [vmem:[%s5266_s1 + $0x40] sm:$0xff]  ;;  %v1508_v22 = vsel %vm510_vm2, %v1505_v10, %v1507_v30 }
 0x111   : > { %5391 = vst [vmem:[#allocation75_spill] sm:$0xff] %v4008_v57  ;;  %1298 = vrot.lane.b32.xlu1 %v1228_v33, %s3051_s8  ;;  %v1506_v33 = vsel %vm510_vm2, %v1504_v59, %v1505_v10  ;;  %2859 = vmatprep.subr.bf16.mxu1 %v2849_v31 }
 0x112   : > { %1394 = vrot.lane.b32.xlu0 %v3992_v32, %s3052_s27  ;;  %2852 = vmatpush3.bf16.msra.mxu0 %v2849_v31 }
 0x113   : > { %v4019_v21 = vpop.permute.xlu1 %806  ;;  %2854 = vmatprep.subr.bf16.mxu0 %v2853_v43 }
 0x114   : > { %v4022_v27 = vpop.permute.xlu0 %812  ;;  %2864 = vmatpush3.bf16.msra.mxu1 %v2849_v31 }
 0x115   : > { %5392 = vst [vmem:[#allocation76_spill] sm:$0xff] %v4022_v27  ;;  %1424 = vrot.lane.b32.xlu1 %v3427_v4, %s3052_s27  ;;  %v1547_v4 = vrot.slane %v2672_v28, 1  ;;  %2860 = vmatprep.subr.bf16.mxu1 %v2853_v43 }
 0x116   : > { %1584 = vrot.lane.b32.xlu0 %v1506_v33, %s3053_s18  ;;  %2856 = vmatpush3.bf16.msra.mxu0 %v2853_v43  ;;  %v5397_v33 = vld [vmem:[#allocation21_spill] sm:$0xff] }
 0x117   : > { %v4033_v20 = vpop.permute.xlu1 %810  ;;  %v1548_v46 = vsel %vm510_vm2, %v5397_v33, %v1547_v4  ;;  %2791 = vmatprep.subr.mxu0 %v2128_v24  ;;  %v2627_v4 = vld [vmem:[#allocation2 + $0x100] sm:$0x3] }
 0x118   : > { %5393 = vst [vmem:[#allocation77_spill] sm:$0xff] %v4033_v20  ;;  %v4035_v59 = vpop.permute.xlu0 %816  ;;  %2865 = vmatpush3.bf16.msra.mxu1 %v2853_v43 }
 0x119   : > { %5394 = vst [vmem:[#allocation78_spill] sm:$0xff] %v4035_v59  ;;  %1426 = vrot.lane.b32.xlu1 %v3429_v5, %s3052_s27  ;;  %v1680_v5 = vrot.slane %v3986_v34, 2  ;;  %v1681_v59 = vrot.slane %v3992_v32, 2  ;;  %2861 = vmatprep.subr.mxu1 %v2128_v24  ;;  %v1683_v34 = vrot.slane %v2648_v49, 2  ;;  %v1723_v49 = vrot.slane %v2672_v28, 2  ;;  %v2649_v28 = vld [vmem:[#allocation2 + $0x48] sm:$0xff] }
 0x11a   : > { %1124 = vrot.lane.b32.xlu0 %v5395_v19, %s3050_s7  ;;  %2792 = vmatpush3.msra.mxu0 %v2128_v24 }
 0x11b   : > { %v4041_v16 = vpop.permute.xlu1 %814 }
 0x11c   : > { %5396 = vst [vmem:[#allocation22_spill] sm:$0xff] %v4041_v16  ;;  %v4048_v31 = vpop.permute.xlu0 %820  ;;  %2866 = vmatpush3.msra.mxu1 %v2128_v24  ;;  %v1192_v24 = vrot.slane %v3930_v53, 2  ;;  %v1232_v53 = vrot.slane %v2627_v4, 2 }
 0x11d   : > { %5398 = vst [vmem:[#allocation21_spill] sm:$0xff] %v4048_v31  ;;  %1616 = vrot.lane.b32.xlu1 %v5395_v19, %s3053_s18  ;;  %v1682_v19 = vsel %vm687_vm3, %v1680_v5, %v1681_v59  ;;  %v1056_v31 = vrot.slane %v2627_v4, 1 }
 0x11e   : > { %1618 = vrot.lane.b32.xlu0 %v1548_v46, %s3053_s18  ;;  %v1684_v46 = vsel %vm687_vm3, %v1681_v59, %v1683_v34 }
 0x11f   : > { %v4056_v43 = vpop.permute.xlu1 %818  ;;  %v1057_v10 = vsel %vm510_vm2, %v5397_v33, %v1056_v31  ;;  %v1193_v33 = vsel %vm687_vm3, %v3586_v39, %v1192_v24  ;;  %v1233_v39 = vsel %vm687_vm3, %v3697_v13, %v1232_v53 }
 0x120   : > { %5399 = vst [vmem:[#allocation79_spill] sm:$0xff] %v4056_v43  ;;  %v4058_v16 = vpop.permute.xlu0 %824 }
 0x121   : > { %5400 = vst [vmem:[#allocation80_spill] sm:$0xff] %v4058_v16  ;;  %1586 = vrot.lane.b32.xlu1 %v1508_v22, %s3053_s18 }
 0x122   : > { %1792 = vrot.lane.b32.xlu0 %v3707_v60, %s3054_s23 }
 0x123   : > { %v4064_v30 = vpop.permute.xlu1 %822 }
 0x124   : > { %5401 = vst [vmem:[#allocation81_spill] sm:$0xff] %v4064_v30  ;;  %v4066_v32 = vpop.permute.xlu0 %828 }
 0x125   : > { %5402 = vst [vmem:[#allocation82_spill] sm:$0xff] %v4066_v32  ;;  %1760 = vrot.lane.b32.xlu1 %v1682_v19, %s3054_s23 }
 0x126   : > { %1268 = vrot.lane.b32.xlu0 %v3595_v9, %s3051_s8  ;;  %v1724_v9 = vsel %vm687_vm3, %v3697_v13, %v1723_v49  ;;  %v2673_v49 = vld [vmem:[#allocation2 + $0x108] sm:$0xff]  ;;  %v2675_v13 = vld [vmem:[#allocation2 + $0x118] sm:$0x3] }
 0x127   : > { %v4073_v22 = vpop.permute.xlu1 %826  ;;  %v1549_v53 = vrot.slane %v2673_v49, 1  ;;  %v1552_v30 = vrot.slane %v2675_v13, 1  ;;  %v1725_v3 = vrot.slane %v2673_v49, 2 }
 0x128   : > { %5403 = vst [vmem:[#allocation83_spill] sm:$0xff] %v4073_v22  ;;  %v4077_v5 = vpop.permute.xlu0 %896 }
 0x129   : > { %1126 = vrot.lane.b32.xlu1 %v1057_v10, %s3050_s7  ;;  %v2650_v10 = vld [vmem:[#allocation2 + $0x50] sm:$0xff] }
 0x12a   : > { %1762 = vrot.lane.b32.xlu0 %v1684_v46, %s3054_s23  ;;  %v1509_v46 = vrot.slane %v2649_v28, 1  ;;  %v1510_v24 = vrot.slane %v2650_v10, 1 }
 0x12b   : > { %v4081_v19 = vpop.permute.xlu1 %830 }
 0x12c   : > { %5404 = vst [vmem:[#allocation84_spill] sm:$0xff] %v4081_v19  ;;  %v4085_v31 = vpop.permute.xlu0 %900  ;;  %v1511_v19 = vsel %vm510_vm2, %v1509_v46, %v1510_v24 }
 0x12d   : > { %1300 = vrot.lane.b32.xlu1 %v3707_v60, %s3051_s8 }
 0x12e   : > { %1270 = vrot.lane.b32.xlu0 %v1193_v33, %s3051_s8 }
 0x12f   : > { %v4092_v59 = vpop.permute.xlu1 %898 }
 0x130   : > { %v4094_v34 = vpop.permute.xlu0 %904 }
 0x131   : > { %1794 = vrot.lane.b32.xlu1 %v1724_v9, %s3054_s23  ;;  %v2674_v9 = vld [vmem:[#allocation2 + $0x110] sm:$0xff] }
 0x132   : > { %1396 = vrot.lane.b32.xlu0 %v2649_v28, %s3052_s27  ;;  %v1550_v22 = vrot.slane %v2674_v9, 1  ;;  %v1726_v27 = vrot.slane %v2674_v9, 2 }
 0x133   : > { %v4100_v60 = vpop.permute.xlu1 %902 }
 0x134   : > { %v4102_v4 = vpop.permute.xlu0 %908  ;;  %v1551_v1 = vsel %vm510_vm2, %v1549_v53, %v1550_v22 }
 0x135   : > { %5405 = vst [vmem:[#allocation85_spill] sm:$0xff] %v4102_v4  ;;  %1302 = vrot.lane.b32.xlu1 %v1233_v39, %s3051_s8  ;;  %v2651_v39 = vld [vmem:[#allocation2 + $0x58] sm:$0x3] }
 0x136   : > { %1398 = vrot.lane.b32.xlu0 %v2650_v10, %s3052_s27  ;;  %v1512_v46 = vrot.slane %v2651_v39, 1 }
 0x137   : > { %v4106_v33 = vpop.permute.xlu1 %906 }
 0x138   : > { %5406 = vst [vmem:[#allocation86_spill] sm:$0xff] %v4106_v33  ;;  %v4109_v32 = vpop.permute.xlu0 %912  ;;  %v1513_v4 = vsel %vm510_vm2, %v1510_v24, %v1512_v46  ;;  %v5416_v24 = vld [vmem:[#allocation23_spill] sm:$0xff] }
 0x139   : > { %5407 = vst [vmem:[#allocation87_spill] sm:$0xff] %v4109_v32  ;;  %1428 = vrot.lane.b32.xlu1 %v2673_v49, %s3052_s27  ;;  %v5410_v32 = vld [vmem:[#allocation24_spill] sm:$0xff] }
 0x13a   : > { %1588 = vrot.lane.b32.xlu0 %v1511_v19, %s3053_s18  ;;  %v1553_v19 = vsel %vm510_vm2, %v1550_v22, %v1552_v30  ;;  %v1061_v22 = vrot.slane %v2630_v58, 1 }
 0x13b   : > { %v4113_v16 = vpop.permute.xlu1 %910 }
 0x13c   : > { %5408 = vst [vmem:[#allocation88_spill] sm:$0xff] %v4113_v16  ;;  %v4115_v43 = vpop.permute.xlu0 %916  ;;  %v1685_v16 = vrot.slane %v2649_v28, 2  ;;  %v1688_v28 = vrot.slane %v2651_v39, 2  ;;  %v1062_v49 = vsel %vm510_vm2, %v5416_v24, %v1061_v22  ;;  %v1728_v39 = vrot.slane %v2675_v13, 2  ;;  %v2652_v13 = vld [vmem:[#allocation2 + $0x60] sm:$0xff]  ;;  %v2653_v22 = vld [vmem:[#allocation2 + $0x68] sm:$0xff] }
 0x13d   : > { %5409 = vst [vmem:[#allocation89_spill] sm:$0xff] %v4115_v43  ;;  %1430 = vrot.lane.b32.xlu1 %v2674_v9, %s3052_s27  ;;  %v1686_v43 = vrot.slane %v2650_v10, 2  ;;  %v2676_v24 = vld [vmem:[#allocation2 + $0x120] sm:$0xff] }
 0x13e   : > { %1128 = vrot.lane.b32.xlu0 %v5410_v32, %s3050_s7  ;;  %v1727_v32 = vsel %vm687_vm3, %v1725_v3, %v1726_v27 }
 0x13f   : > { %v4121_v18 = vpop.permute.xlu1 %914  ;;  %v1687_v30 = vsel %vm687_vm3, %v1685_v16, %v1686_v43  ;;  %v1689_v16 = vsel %vm687_vm3, %v1686_v43, %v1688_v28 }
 0x140   : > { %5411 = vst [vmem:[#allocation24_spill] sm:$0xff] %v4121_v18  ;;  %v4124_v0 = vpop.permute.xlu0 %920 }
 0x141   : > { %5412 = vst [vmem:[#allocation90_spill] sm:$0xff] %v4124_v0  ;;  %1620 = vrot.lane.b32.xlu1 %v1551_v1, %s3053_s18  ;;  %v2678_v0 = vld [vmem:[#allocation2 + $0x130] sm:$0x3] }
 0x142   : > { %1622 = vrot.lane.b32.xlu0 %v1553_v19, %s3053_s18 }
 0x143   : > { %v4129_v53 = vpop.permute.xlu1 %918 }
 0x144   : > { %5413 = vst [vmem:[#allocation91_spill] sm:$0xff] %v4129_v53  ;;  %v4132_v18 = vpop.permute.xlu0 %924  ;;  %v1690_v53 = vrot.slane %v2652_v13, 2 }
 0x145   : > { %5414 = vst [vmem:[#allocation92_spill] sm:$0xff] %v4132_v18  ;;  %1590 = vrot.lane.b32.xlu1 %v1513_v4, %s3053_s18  ;;  %v1197_v4 = vrot.slane %v3942_v50, 2  ;;  %v1237_v50 = vrot.slane %v2630_v58, 2 }
 0x146   : > { %1796 = vrot.lane.b32.xlu0 %v1727_v32, %s3054_s23 }
 0x147   : > { %v4137_v1 = vpop.permute.xlu1 %922  ;;  %v1198_v19 = vsel %vm687_vm3, %v3599_v7, %v1197_v4  ;;  %v1238_v7 = vsel %vm687_vm3, %v3711_v23, %v1237_v50  ;;  %v2654_v23 = vld [vmem:[#allocation2 + $0x70] sm:$0x3] }
 0x148   : > { %5415 = vst [vmem:[#allocation93_spill] sm:$0xff] %v4137_v1  ;;  %v4139_v10 = vpop.permute.xlu0 %928 }
 0x149   : > { %1764 = vrot.lane.b32.xlu1 %v1687_v30, %s3054_s23 }
 0x14a   : > { %1272 = vrot.lane.b32.xlu0 %v3609_v37, %s3051_s8  ;;  %v1729_v37 = vsel %vm687_vm3, %v1726_v27, %v1728_v39  ;;  %v1515_v27 = vrot.slane %v2653_v22, 1 }
 0x14b   : > { %v4146_v3 = vpop.permute.xlu1 %926 }
 0x14c   : > { %5417 = vst [vmem:[#allocation23_spill] sm:$0xff] %v4146_v3  ;;  %v4150_v9 = vpop.permute.xlu0 %932 }
 0x14d   : > { %1130 = vrot.lane.b32.xlu1 %v1062_v49, %s3050_s7 }
 0x14e   : > { %1766 = vrot.lane.b32.xlu0 %v1689_v16, %s3054_s23  ;;  %v2677_v16 = vld [vmem:[#allocation2 + $0x128] sm:$0xff] }
 0x14f   : > { %v4154_v46 = vpop.permute.xlu1 %930 }
 0x150   : > { %v4158_v32 = vpop.permute.xlu0 %936 }
 0x151   : > { %5418 = vst [vmem:[#allocation94_spill] sm:$0xff] %v4158_v32  ;;  %1304 = vrot.lane.b32.xlu1 %v3721_v11, %s3051_s8  ;;  %v1514_v11 = vrot.slane %v2652_v13, 1  ;;  %v2932_v32 = vld [vmem:[#allocation2] sm:$0xff] }
 0x152   : > { %1274 = vrot.lane.b32.xlu0 %v1198_v19, %s3051_s8  ;;  %v1554_v19 = vrot.slane %v2676_v24, 1 }
 0x153   : > { %v4164_v43 = vpop.permute.xlu1 %934  ;;  %v1516_v4 = vsel %vm510_vm2, %v1514_v11, %v1515_v27  ;;  %v5426_v11 = vld [vmem:[#allocation10_spill] sm:$0xff] }
 0x154   : > { %v4166_v30 = vpop.permute.xlu0 %940 }
 0x155   : > { %5419 = vst [vmem:[#allocation95_spill] sm:$0xff] %v4166_v30  ;;  %1798 = vrot.lane.b32.xlu1 %v1729_v37, %s3054_s23  ;;  %v1555_v37 = vrot.slane %v2677_v16, 1 }
 0x156   : > { %1400 = vrot.lane.b32.xlu0 %v2652_v13, %s3052_s27  ;;  %v5430_v13 = vld [vmem:[#allocation26_spill] sm:$0xff] }
 0x157   : > { %v4172_v28 = vpop.permute.xlu1 %938  ;;  %v1556_v18 = vsel %vm510_vm2, %v1554_v19, %v1555_v37 }
 0x158   : > { %5420 = vst [vmem:[#allocation96_spill] sm:$0xff] %v4172_v28  ;;  %v4174_v58 = vpop.permute.xlu0 %944  ;;  %v5436_v28 = vld [vmem:[#allocation12_spill] sm:$0xff] }
 0x159   : > { %5421 = vst [vmem:[#allocation97_spill] sm:$0xff] %v4174_v58  ;;  %1306 = vrot.lane.b32.xlu1 %v1238_v7, %s3051_s8  ;;  %v1517_v7 = vrot.slane %v2654_v23, 1 }
 0x15a   : > { %1402 = vrot.lane.b32.xlu0 %v2653_v22, %s3052_s27 }
 0x15b   : > { %v4178_v49 = vpop.permute.xlu1 %942  ;;  %v1518_v58 = vsel %vm510_vm2, %v1515_v27, %v1517_v7  ;;  %v1731_v27 = vrot.slane %v2677_v16, 2 }
 0x15c   : > { %5422 = vst [vmem:[#allocation98_spill] sm:$0xff] %v4178_v49  ;;  %v4181_v39 = vpop.permute.xlu0 %948 }
 0x15d   : > { %5423 = vst [vmem:[#allocation99_spill] sm:$0xff] %v4181_v39  ;;  %1432 = vrot.lane.b32.xlu1 %v2676_v24, %s3052_s27  ;;  %v1691_v39 = vrot.slane %v2653_v22, 2  ;;  %v1730_v22 = vrot.slane %v2676_v24, 2 }
 0x15e   : > { %1592 = vrot.lane.b32.xlu0 %v1516_v4, %s3053_s18 }
 0x15f   : > { %v4185_v50 = vpop.permute.xlu1 %946  ;;  %v1692_v19 = vsel %vm687_vm3, %v1690_v53, %v1691_v39  ;;  %v1732_v53 = vsel %vm687_vm3, %v1730_v22, %v1731_v27 }
 0x160   : > { %5424 = vst [vmem:[#allocation100_spill] sm:$0xff] %v4185_v50  ;;  %v4187_v3 = vpop.permute.xlu0 %952  ;;  %v2609_v50 = vld [vmem:[#allocation2 + $0x70] sm:$0x3] }
 0x161   : > { %5425 = vst [vmem:[#allocation101_spill] sm:$0xff] %v4187_v3  ;;  %1434 = vrot.lane.b32.xlu1 %v2677_v16, %s3052_s27  ;;  %v1557_v3 = vrot.slane %v2678_v0, 1  ;;  %v1202_v22 = vrot.slane %v2609_v50, 2 }
 0x162   : > { %1100 = vrot.lane.b32.xlu0 %v5426_v11, %s3050_s7  ;;  %v1026_v11 = vrot.slane %v2609_v50, 1 }
 0x163   : > { %v4193_v1 = vpop.permute.xlu1 %950  ;;  %v1558_v7 = vsel %vm510_vm2, %v1555_v37, %v1557_v3  ;;  %v1693_v3 = vrot.slane %v2654_v23, 2  ;;  %v5434_v37 = vld [vmem:[#allocation25_spill] sm:$0xff] }
 0x164   : > { %5427 = vst [vmem:[#allocation10_spill] sm:$0xff] %v4193_v1  ;;  %v4196_v4 = vpop.permute.xlu0 %956 }
 0x165   : > { %5428 = vst [vmem:[#allocation102_spill] sm:$0xff] %v4196_v4  ;;  %1624 = vrot.lane.b32.xlu1 %v1556_v18, %s3053_s18  ;;  %v2633_v4 = vld [vmem:[#allocation2 + $0x130] sm:$0x3] }
 0x166   : > { %1594 = vrot.lane.b32.xlu0 %v1518_v58, %s3053_s18  ;;  %v5432_v58 = vld [vmem:[#allocation9_spill] sm:$0xff]  ;;  %v1066_v63 = vrot.slane %v2633_v4, 1 }
 0x167   : > { %v4200_v49 = vpop.permute.xlu1 %954 }
 0x168   : > { %5429 = vst [vmem:[#allocation103_spill] sm:$0xff] %v4200_v49  ;;  %v4203_v30 = vpop.permute.xlu0 %1088  ;;  %v1027_v49 = vsel %vm510_vm2, %v5432_v58, %v1026_v11 }
 0x169   : > { %1132 = vrot.lane.b32.xlu1 %v5430_v13, %s3050_s7  ;;  %v1694_v13 = vsel %vm687_vm3, %v1691_v39, %v1693_v3  ;;  %v1242_v39 = vrot.slane %v2633_v4, 2  ;;  %v4249_v3 = vld [vmem:[#allocation2 + $0x80] sm:$0xff] }
 0x16a   : > { %1768 = vrot.lane.b32.xlu0 %v1692_v19, %s3054_s23  ;;  %v1067_v19 = vsel %vm510_vm2, %v5434_v37, %v1066_v63  ;;  %v1203_v63 = vsel %vm687_vm3, %v3613_v62, %v1202_v22  ;;  %v1520_v4 = vrot.slane %v4249_v3, 1  ;;  %v4264_v22 = vld [vmem:[#allocation2 + $0x140] sm:$0xff]  ;;  %v1696_v33 = vrot.slane %v4249_v3, 2 }
 0x16b   : > { %v4209_v18 = vpop.permute.xlu1 %958  ;;  %v1243_v62 = vsel %vm687_vm3, %v3725_v51, %v1242_v39  ;;  %v1560_v39 = vrot.slane %v4264_v22, 1 }
 0x16c   : > { %5431 = vst [vmem:[#allocation26_spill] sm:$0xff] %v4209_v18  ;;  %v4213_v1 = vpop.permute.xlu0 %1092 }
 0x16d   : > { %1626 = vrot.lane.b32.xlu1 %v1558_v7, %s3053_s18 }
 0x16e   : > { %1102 = vrot.lane.b32.xlu0 %v1027_v49, %s3050_s7  ;;  %v1733_v49 = vrot.slane %v2678_v0, 2  ;;  %v2655_v0 = vld [vmem:[#allocation2 + $0x78] sm:$0xff] }
 0x16f   : > { %v4218_v24 = vpop.permute.xlu1 %1090  ;;  %v1519_v37 = vrot.slane %v2655_v0, 1 }
 0x170   : > { %v4220_v16 = vpop.permute.xlu0 %1096 }
 0x171   : > { %5433 = vst [vmem:[#allocation9_spill] sm:$0xff] %v4220_v16  ;;  %1800 = vrot.lane.b32.xlu1 %v1732_v53, %s3054_s23  ;;  %v1521_v51 = vsel %vm510_vm2, %v1519_v37, %v1520_v4  ;;  %v1031_v16 = vrot.slane %v4291_v38, 1 }
 0x172   : > { %1276 = vrot.lane.b32.xlu0 %v3623_v42, %s3051_s8  ;;  %v1734_v42 = vsel %vm687_vm3, %v1731_v27, %v1733_v49 }
 0x173   : > { %v4227_v11 = vpop.permute.xlu1 %1094 }
 0x174   : > { %v4230_v7 = vpop.permute.xlu0 %1120 }
 0x175   : > { %1134 = vrot.lane.b32.xlu1 %v1067_v19, %s3050_s7  ;;  %v4258_v19 = vld [vmem:[#allocation2 + $0x138] sm:$0xff] }
 0x176   : > { %1770 = vrot.lane.b32.xlu0 %v1694_v13, %s3054_s23 }
 0x177   : > { %v4234_v23 = vpop.permute.xlu1 %1098 }
 0x178   : > { %5435 = vst [vmem:[#allocation25_spill] sm:$0xff] %v4234_v23  ;;  %v4238_v58 = vpop.permute.xlu0 %1264  ;;  %v1695_v23 = vrot.slane %v2655_v0, 2 }
 0x179   : > { %1308 = vrot.lane.b32.xlu1 %v3735_v29, %s3051_s8 }
 0x17a   : > { %1278 = vrot.lane.b32.xlu0 %v1203_v63, %s3051_s8  ;;  %v4271_v63 = vld [vmem:[#allocation2 + $0x88] sm:$0x3] }
 0x17b   : > { %v4244_v50 = vpop.permute.xlu1 %1122  ;;  %v1522_v18 = vrot.slane %v4271_v63, 1 }
 0x17c   : > { %v4246_v53 = vpop.permute.xlu0 %1266 }
 0x17d   : > { %1802 = vrot.lane.b32.xlu1 %v1734_v42, %s3054_s23  ;;  %v1559_v42 = vrot.slane %v4258_v19, 1 }
 0x17e   : > { %1404 = vrot.lane.b32.xlu0 %v2655_v0, %s3052_s27  ;;  %v1873_v0 = vsel %vm188_vm0, %v2933_v55, %v3835_v40 }
 0x17f   : > { %v1297_v29 = vpop.permute.xlu1 %1296  ;;  %v1561_v37 = vsel %vm510_vm2, %v1559_v42, %v1560_v39  ;;  %v1562_v42 = vrot.slane %v4284_v56, 1 }
 0x180   : > { %v4255_v27 = vpop.permute.xlu0 %1392 }
 0x181   : > { %1310 = vrot.lane.b32.xlu1 %v1243_v62, %s3051_s8 }
 0x182   : > { %1406 = vrot.lane.b32.xlu0 %v4249_v3, %s3052_s27  ;;  %v1738_v3 = vrot.slane %v4284_v56, 2  ;;  %v5443_v56 = vld [vmem:[#allocation41_spill] sm:$0xff] }
 0x183   : > { %v4262_v13 = vpop.permute.xlu1 %1298 }
 0x184   : > { %v4267_v49 = vpop.permute.xlu0 %1394 }
 0x185   : > { %1436 = vrot.lane.b32.xlu1 %v4258_v19, %s3052_s27 }
 0x186   : > { %1596 = vrot.lane.b32.xlu0 %v1521_v51, %s3053_s18  ;;  %v1523_v51 = vsel %vm510_vm2, %v1520_v4, %v1522_v18  ;;  %v1906_v4 = vsel %vm1889_vm4, %v1873_v0, %v3974_v25  ;;  %v1563_v0 = vsel %vm510_vm2, %v1560_v39, %v1562_v42 }
 0x187   : > { %v1425_v62 = vpop.permute.xlu1 %1424  ;;  %v1939_v40 = vsel %vm1922_vm5, %v1906_v4, %v4139_v10  ;;  %v4322_v4 = vld [vmem:[#allocation2 + $0x148] sm:$0x3] }
 0x188   : > { %v1585_v61 = vpop.permute.xlu0 %1584  ;;  %v1972_v25 = vsel %vm1955_vm6, %v1939_v40, %v4230_v7  ;;  %v2934_v40 = vld [vmem:[#allocation2 + $0x8] sm:$0xff] }
 0x189   : > { %1438 = vrot.lane.b32.xlu1 %v4264_v22, %s3052_s27 }
 0x18a   : > { %1104 = vrot.lane.b32.xlu0 %v5436_v28, %s3050_s7  ;;  %v5437_v28 = vld [vmem:[#allocation42_spill] sm:$0xff] }
 0x18b   : > { %v4282_v20 = vpop.permute.xlu1 %1426  ;;  %v1857_v57 = vsel %vm188_vm0, %v2932_v32, %v5437_v28  ;;  %v1736_v28 = vrot.slane %v4264_v22, 2  ;;  %v5439_v22 = vld [vmem:[#allocation11_spill] sm:$0xff] }
 0x18c   : > { %v4288_v44 = vpop.permute.xlu0 %1124  ;;  %v1890_v32 = vsel %vm1889_vm4, %v1857_v57, %v3899_v17  ;;  %v2005_v57 = vsel %vm1988_vm7, %v1972_v25, %v1297_v29  ;;  %v1032_v39 = vsel %vm510_vm2, %v5439_v22, %v1031_v16  ;;  %v1858_v16 = vsel %vm188_vm0, %v2934_v40, %v3771_v45 }
 0x18d   : > { %1628 = vrot.lane.b32.xlu1 %v1561_v37, %s3053_s18  ;;  %v1697_v37 = vsel %vm687_vm3, %v1695_v23, %v1696_v33  ;;  %v1735_v23 = vrot.slane %v4258_v19, 2  ;;  %v1923_v17 = vsel %vm1922_vm5, %v1890_v32, %v4077_v5  ;;  %v2038_v19 = vsel %vm2021_vm8, %v2005_v57, %v1425_v62 }
 0x18e   : > { %1598 = vrot.lane.b32.xlu0 %v1523_v51, %s3053_s18  ;;  %v5438_v51 = vld [vmem:[#allocation28_spill] sm:$0xff]  ;;  %v1956_v7 = vsel %vm1955_vm6, %v1923_v17, %v4203_v30  ;;  %v1071_v62 = vrot.slane %v4322_v4, 1  ;;  %v1698_v25 = vrot.slane %v4271_v63, 2  ;;  %v5441_v63 = vld [vmem:[#allocation34_spill] sm:$0xff] }
 0x18f   : > { %v1617_v18 = vpop.permute.xlu1 %1616  ;;  %v1989_v5 = vsel %vm1988_vm7, %v1956_v7, %v4238_v58  ;;  %v1737_v30 = vsel %vm687_vm3, %v1735_v23, %v1736_v28 }
 0x190   : > { %v4309_v55 = vpop.permute.xlu0 %1618  ;;  %v2071_v29 = vsel %vm2054_vm9, %v2038_v19, %v1617_v18  ;;  %v1699_v7 = vsel %vm687_vm3, %v1696_v33, %v1698_v25  ;;  %v2935_v19 = vld [vmem:[#allocation2 + $0xc8] sm:$0xff] }
 0x191   : > { %1136 = vrot.lane.b32.xlu1 %v5438_v51, %s3050_s7  ;;  %v1874_v22 = vsel %vm188_vm0, %v2935_v19, %v3849_v41  ;;  %v5444_v19 = vld [vmem:[#allocation14_spill] sm:$0xff] }
 0x192   : > { %1772 = vrot.lane.b32.xlu0 %v1697_v37, %s3054_s23  ;;  %v2022_v37 = vsel %vm2021_vm8, %v1989_v5, %v4255_v27  ;;  %v1891_v27 = vsel %vm1889_vm4, %v1858_v16, %v3913_v26  ;;  %v1907_v5 = vsel %vm1889_vm4, %v1874_v22, %v4004_v36  ;;  %v4401_v16 = vld [vmem:[#allocation2 + $0x98] sm:$0xff] }
 0x193   : > { %v1587_v10 = vpop.permute.xlu1 %1586  ;;  %v2055_v58 = vsel %vm2054_vm9, %v2022_v37, %v1585_v61  ;;  %v1924_v23 = vsel %vm1922_vm5, %v1891_v27, %v4092_v59  ;;  %v5440_v61 = vld [vmem:[#allocation27_spill] sm:$0xff]  ;;  %v1940_v33 = vsel %vm1922_vm5, %v1907_v5, %v4154_v46  ;;  %v1739_v37 = vsel %vm687_vm3, %v1736_v28, %v1738_v3 }
 0x194   : > { %v1793_v42 = vpop.permute.xlu0 %1792  ;;  %v1957_v45 = vsel %vm1955_vm6, %v1924_v23, %v4218_v24  ;;  %v1072_v17 = vsel %vm510_vm2, %v5440_v61, %v1071_v62  ;;  %v1207_v24 = vrot.slane %v4291_v38, 2  ;;  %v1973_v41 = vsel %vm1955_vm6, %v1940_v33, %v4244_v50  ;;  %v2658_v62 = vld [vmem:[#allocation2 + $0x90] sm:$0xff]  ;;  %v4421_v23 = vld [vmem:[#allocation2 + $0xa0] sm:$0x3]  ;;  %v2937_v33 = vld [vmem:[#allocation2 + $0x18] sm:$0xff] }
 0x195   : > { %1630 = vrot.lane.b32.xlu1 %v1563_v0, %s3053_s18  ;;  %v2104_v32 = vsel %vm2087_vm10, %v2071_v29, %v1793_v42  ;;  %v1990_v26 = vsel %vm1988_vm7, %v1957_v45, %v4246_v53  ;;  %v2006_v36 = vsel %vm1988_vm7, %v1973_v41, %v4262_v13  ;;  %v1700_v5 = vrot.slane %v2658_v62, 2 }
 0x196   : > { %1106 = vrot.lane.b32.xlu0 %v1032_v39, %s3050_s7  ;;  %2817 = vmatprep.mubr.msk.f32.mxu1 %vm2136_vm11, %v2104_v32  ;;  %v2023_v59 = vsel %vm2021_vm8, %v1990_v26, %v4267_v49  ;;  %v2039_v46 = vsel %vm2021_vm8, %v2006_v36, %v4282_v20  ;;  %v1247_v32 = vrot.slane %v4322_v4, 2  ;;  %v1525_v4 = vrot.slane %v4401_v16, 1 }
 0x197   : > { %v1761_v18 = vpop.permute.xlu1 %1760  ;;  %v2056_v53 = vsel %vm2054_vm9, %v2023_v59, %v1587_v10  ;;  %v5442_v10 = vld [vmem:[#allocation33_spill] sm:$0xff]  ;;  %v2072_v50 = vsel %vm2054_vm9, %v2039_v46, %v4309_v55  ;;  %v1524_v55 = vrot.slane %v2658_v62, 1  ;;  %v1527_v26 = vrot.slane %v4421_v23, 1 }
 0x198   : > { %v2088_v51 = vsel %vm2087_vm10, %v2055_v58, %v1761_v18  ;;  %v4349_v0 = vpop.permute.xlu0 %1268  ;;  %v1208_v29 = vsel %vm687_vm3, %v5442_v10, %v1207_v24  ;;  %v1248_v20 = vsel %vm687_vm3, %v3739_v54, %v1247_v32  ;;  %v4412_v18 = vld [vmem:[#allocation2 + $0x150] sm:$0xff]  ;;  %v1859_v41 = vsel %vm188_vm0, %v2937_v33, %v3779_v52  ;;  %v5447_v33 = vld [vmem:[#allocation29_spill] sm:$0xff] }
 0x199   : > { %1804 = vrot.lane.b32.xlu1 %v1737_v30, %s3054_s23  ;;  %2793 = vmatprep.mubr.msk.f32.mxu0 %vm2136_vm11, %v2088_v51  ;;  %v4416_v51 = vld [vmem:[#allocation2 + $0x158] sm:$0xff]  ;;  %v1526_v54 = vsel %vm510_vm2, %v1524_v55, %v1525_v4  ;;  %v1564_v45 = vrot.slane %v4412_v18, 1  ;;  %v1528_v3 = vsel %vm510_vm2, %v1525_v4, %v1527_v26  ;;  %v2938_v4 = vld [vmem:[#allocation2 + $0x20] sm:$0xff] }
 0x19a   : > { %1280 = vrot.lane.b32.xlu0 %v5441_v63, %s3051_s8  ;;  %v1565_v61 = vrot.slane %v4416_v51, 1 }
 0x19b   : > { %v4361_v57 = vpop.permute.xlu1 %1126 }
 0x19c   : > { %v1763_v39 = vpop.permute.xlu0 %1762  ;;  %v1566_v59 = vsel %vm510_vm2, %v1564_v45, %v1565_v61  ;;  %v5446_v45 = vld [vmem:[#allocation13_spill] sm:$0xff] }
 0x19d   : > { %1138 = vrot.lane.b32.xlu1 %v1072_v17, %s3050_s7  ;;  %v2089_v49 = vsel %vm2087_vm10, %v2056_v53, %v1763_v39  ;;  %v4438_v53 = vld [vmem:[#allocation2 + $0x160] sm:$0x3] }
 0x19e   : > { %1774 = vrot.lane.b32.xlu0 %v1699_v7, %s3054_s23  ;;  %2794 = vmatmul.mubr.msk.f32.vlgmr.msra.gmra.mrb[0].mxu0 %vm2136_vm11, %v2089_v49  ;;  %v2936_v7 = vld [vmem:[#allocation2 + $0xd8] sm:$0xff]  ;;  %v1701_v49 = vrot.slane %v4401_v16, 2 }
 0x19f   : > { %v1301_v38 = vpop.permute.xlu1 %1300  ;;  %v1875_v24 = vsel %vm188_vm0, %v2936_v7, %v3843_v47 }
 0x1a0   : > { %v4387_v42 = vpop.permute.xlu0 %1270  ;;  %v1908_v39 = vsel %vm1889_vm4, %v1875_v24, %v3988_v8  ;;  %v1892_v8 = vsel %vm1889_vm4, %v1859_v41, %v3907_v35  ;;  %v1702_v35 = vsel %vm687_vm3, %v1700_v5, %v1701_v49 }
 0x1a1   : > { %1312 = vrot.lane.b32.xlu1 %v5443_v56, %s3051_s8  ;;  %v1941_v47 = vsel %vm1922_vm5, %v1908_v39, %v4150_v9  ;;  %v1567_v56 = vrot.slane %v4438_v53, 1  ;;  %v1925_v52 = vsel %vm1922_vm5, %v1892_v8, %v4085_v31  ;;  %v1740_v31 = vrot.slane %v4412_v18, 2 }
 0x1a2   : > { %1282 = vrot.lane.b32.xlu0 %v1208_v29, %s3051_s8  ;;  %v4451_v29 = vld [vmem:[#allocation2 + $0xa0] sm:$0x3]  ;;  %v1974_v36 = vsel %vm1955_vm6, %v1941_v47, %v4288_v44 }
 0x1a3   : > { %v1795_v30 = vpop.permute.xlu1 %1794  ;;  %v2007_v46 = vsel %vm1988_vm7, %v1974_v36, %v1301_v38  ;;  %v1036_v44 = vrot.slane %v4451_v29, 1  ;;  %v1568_v55 = vsel %vm510_vm2, %v1565_v61, %v1567_v56  ;;  %v1212_v8 = vrot.slane %v4451_v29, 2  ;;  %v5449_v29 = vld [vmem:[#allocation35_spill] sm:$0xff] }
 0x1a4   : > { %v2105_v13 = vsel %vm2087_vm10, %v2072_v50, %v1795_v30  ;;  %v1397_v40 = vpop.permute.xlu0 %1396 }
 0x1a5   : > { %1806 = vrot.lane.b32.xlu1 %v1739_v37, %s3054_s23  ;;  %2818 = vmatmul.mubr.msk.f32.vlgmr.msra.gmra.mrb[0].mxu1 %vm2136_vm11, %v2105_v13  ;;  %v1958_v37 = vsel %vm1955_vm6, %v1925_v52, %v4213_v1  ;;  %v5445_v13 = vld [vmem:[#allocation30_spill] sm:$0xff]  ;;  %v1037_v61 = vsel %vm510_vm2, %v5446_v45, %v1036_v44  ;;  %v1743_v52 = vrot.slane %v4438_v53, 2 }
 0x1a6   : > { %1408 = vrot.lane.b32.xlu0 %v2658_v62, %s3052_s27  ;;  %v1991_v50 = vsel %vm1988_vm7, %v1958_v37, %v4349_v0  ;;  %v1741_v62 = vrot.slane %v4416_v51, 2  ;;  %v1860_v0 = vsel %vm188_vm0, %v2938_v4, %v3793_v6  ;;  %v2661_v37 = vld [vmem:[#allocation2 + $0xa8] sm:$0xff] }
 0x1a7   : > { %v4406_v28 = vpop.permute.xlu1 %1302  ;;  %v2024_v1 = vsel %vm2021_vm8, %v1991_v50, %v1397_v40  ;;  %v1893_v40 = vsel %vm1889_vm4, %v1860_v0, %v3920_v2 }
 0x1a8   : > { %v4409_v58 = vpop.permute.xlu0 %1398  ;;  %v1926_v26 = vsel %vm1922_vm5, %v1893_v40, %v4100_v60 }
 0x1a9   : > { %1314 = vrot.lane.b32.xlu1 %v1248_v20, %s3051_s8 }
 0x1aa   : > { %1410 = vrot.lane.b32.xlu0 %v4401_v16, %s3052_s27 }
 0x1ab   : > { %v1429_v27 = vpop.permute.xlu1 %1428 }
 0x1ac   : > { %v1589_v25 = vpop.permute.xlu0 %1588  ;;  %v2040_v32 = vsel %vm2021_vm8, %v2007_v46, %v1429_v27 }
 0x1ad   : > { %1440 = vrot.lane.b32.xlu1 %v4412_v18, %s3052_s27  ;;  %v2057_v18 = vsel %vm2054_vm9, %v2024_v1, %v1589_v25  ;;  %v1959_v25 = vsel %vm1955_vm6, %v1926_v26, %v4227_v11  ;;  %v5451_v26 = vld [vmem:[#allocation9_spill] sm:$0xff] }
 0x1ae   : > { %1600 = vrot.lane.b32.xlu0 %v1526_v54, %s3053_s18  ;;  %v2639_v54 = vld [vmem:[#allocation2 + $0x160] sm:$0x3]  ;;  %v1992_v7 = vsel %vm1988_vm7, %v1959_v25, %v4387_v42 }
 0x1af   : > { %v4426_v17 = vpop.permute.xlu1 %1430  ;;  %v1076_v2 = vrot.slane %v2639_v54, 1  ;;  %v2025_v60 = vsel %vm2021_vm8, %v1992_v7, %v4409_v58  ;;  %v1252_v53 = vrot.slane %v2639_v54, 2  ;;  %v4595_v7 = vld [vmem:[#allocation2 + $0x178] sm:$0x3] }
 0x1b0   : > { %v4429_v63 = vpop.permute.xlu0 %1128 }
 0x1b1   : > { %1442 = vrot.lane.b32.xlu1 %v4416_v51, %s3052_s27  ;;  %v1077_v41 = vsel %vm510_vm2, %v5447_v33, %v1076_v2  ;;  %v1253_v44 = vsel %vm687_vm3, %v3753_v15, %v1252_v53  ;;  %v5452_v2 = vld [vmem:[#allocation16_spill] sm:$0xff]  ;;  %v5454_v33 = vld [vmem:[#allocation75_spill] sm:$0xff] }
 0x1b2   : > { %1108 = vrot.lane.b32.xlu0 %v5444_v19, %s3050_s7  ;;  %v1703_v19 = vrot.slane %v4421_v23, 2  ;;  %v5448_v23 = vld [vmem:[#allocation36_spill] sm:$0xff] }
 0x1b3   : > { %v1621_v22 = vpop.permute.xlu1 %1620 }
 0x1b4   : > { %v4448_v10 = vpop.permute.xlu0 %1622  ;;  %v2073_v38 = vsel %vm2054_vm9, %v2040_v32, %v1621_v22  ;;  %v2939_v22 = vld [vmem:[#allocation2 + $0xe0] sm:$0xff] }
 0x1b5   : > { %1632 = vrot.lane.b32.xlu1 %v1566_v59, %s3053_s18  ;;  %v1742_v59 = vsel %vm687_vm3, %v1740_v31, %v1741_v62  ;;  %v1876_v39 = vsel %vm188_vm0, %v2939_v22, %v3857_v48  ;;  %v1529_v31 = vrot.slane %v2661_v37, 1 }
 0x1b6   : > { %1602 = vrot.lane.b32.xlu0 %v1528_v3, %s3053_s18  ;;  %v1909_v42 = vsel %vm1889_vm4, %v1876_v39, %v4019_v21  ;;  %v1704_v21 = vsel %vm687_vm3, %v1701_v49, %v1703_v19  ;;  %v2941_v39 = vld [vmem:[#allocation2 + $0xf0] sm:$0xff] }
 0x1b7   : > { %v1591_v9 = vpop.permute.xlu1 %1590  ;;  %v1942_v58 = vsel %vm1922_vm5, %v1909_v42, %v4164_v43 }
 0x1b8   : > { %v1797_v30 = vpop.permute.xlu0 %1796  ;;  %v2058_v11 = vsel %vm2054_vm9, %v2025_v60, %v1591_v9  ;;  %v1975_v47 = vsel %vm1955_vm6, %v1942_v58, %v4361_v57  ;;  %v5450_v9 = vld [vmem:[#allocation43_spill] sm:$0xff]  ;;  %v1705_v60 = vrot.slane %v2661_v37, 2 }
 0x1b9   : > { %1140 = vrot.lane.b32.xlu1 %v5445_v13, %s3050_s7  ;;  %v2106_v20 = vsel %vm2087_vm10, %v2073_v38, %v1797_v30  ;;  %v2008_v36 = vsel %vm1988_vm7, %v1975_v47, %v4406_v28  ;;  %v1213_v28 = vsel %vm687_vm3, %v5449_v29, %v1212_v8  ;;  %v4559_v13 = vld [vmem:[#allocation2 + $0x168] sm:$0xff]  ;;  %v5455_v47 = vld [vmem:[#allocation94_spill] sm:$0xff] }
 0x1ba   : > { %1776 = vrot.lane.b32.xlu0 %v1702_v35, %s3054_s23  ;;  %2820 = vmatprep.mubr.msk.f32.mxu1 %vm2136_vm11, %v2106_v20  ;;  %v2041_v56 = vsel %vm2021_vm8, %v2008_v36, %v4426_v17  ;;  %v1744_v17 = vsel %vm687_vm3, %v1741_v62, %v1743_v52  ;;  %v4552_v35 = vld [vmem:[#allocation2 + $0xb0] sm:$0xff]  ;;  %v1569_v4 = vrot.slane %v4559_v13, 1 }
 0x1bb   : > { %v1765_v27 = vpop.permute.xlu1 %1764  ;;  %v2074_v57 = vsel %vm2054_vm9, %v2041_v56, %v4448_v10  ;;  %v1530_v38 = vrot.slane %v4552_v35, 1  ;;  %v4565_v62 = vld [vmem:[#allocation2 + $0x170] sm:$0xff]  ;;  %v1706_v19 = vrot.slane %v4552_v35, 2 }
 0x1bc   : > { %v2090_v51 = vsel %vm2087_vm10, %v2057_v18, %v1765_v27  ;;  %v4491_v6 = vpop.permute.xlu0 %1272  ;;  %v1570_v0 = vrot.slane %v4565_v62, 1  ;;  %v2940_v18 = vld [vmem:[#allocation2 + $0x30] sm:$0xff] }
 0x1bd   : > { %1634 = vrot.lane.b32.xlu1 %v1568_v55, %s3053_s18  ;;  %2796 = vmatprep.mubr.msk.f32.mxu0 %vm2136_vm11, %v2090_v51  ;;  %v1531_v15 = vsel %vm510_vm2, %v1529_v31, %v1530_v38  ;;  %v4572_v55 = vld [vmem:[#allocation2 + $0xb8] sm:$0x3]  ;;  %v1861_v27 = vsel %vm188_vm0, %v2940_v18, %v3785_v14  ;;  %v1707_v56 = vsel %vm687_vm3, %v1705_v60, %v1706_v19 }
 0x1be   : > { %1110 = vrot.lane.b32.xlu0 %v1037_v61, %s3050_s7  ;;  %v1894_v40 = vsel %vm1889_vm4, %v1861_v27, %v3915_v12  ;;  %v1532_v51 = vrot.slane %v4572_v55, 1  ;;  %v1571_v14 = vsel %vm510_vm2, %v1569_v4, %v1570_v0  ;;  %v5461_v4 = vld [vmem:[#allocation25_spill] sm:$0xff] }
 0x1bf   : > { %v4501_v24 = vpop.permute.xlu1 %1130  ;;  %v1927_v45 = vsel %vm1922_vm5, %v1894_v40, %v4094_v34 }
 0x1c0   : > { %v1767_v5 = vpop.permute.xlu0 %1766  ;;  %v1960_v25 = vsel %vm1955_vm6, %v1927_v45, %v5451_v26  ;;  %v1533_v22 = vsel %vm510_vm2, %v1530_v38, %v1532_v51  ;;  %v5459_v38 = vld [vmem:[#allocation15_spill] sm:$0xff]  ;;  %v1708_v45 = vrot.slane %v4572_v55, 2 }
 0x1c1   : > { %1808 = vrot.lane.b32.xlu1 %v1742_v59, %s3054_s23  ;;  %v2091_v3 = vsel %vm2087_vm10, %v2058_v11, %v1767_v5  ;;  %v1993_v59 = vsel %vm1988_vm7, %v1960_v25, %v4491_v6  ;;  %v5453_v11 = vld [vmem:[#allocation57_spill] sm:$0xff]  ;;  %v2943_v26 = vld [vmem:[#allocation2 + $0xf8] sm:$0xff] }
 0x1c2   : > { %1284 = vrot.lane.b32.xlu0 %v5448_v23, %s3051_s8  ;;  %2797 = vmatmul.mubr.msk.f32.gmra.mrb[2].mxu0 %vm2136_vm11, %v2091_v3  ;;  %v1877_v5 = vsel %vm188_vm0, %v2941_v39, %v5453_v11  ;;  %v4604_v3 = vld [vmem:[#allocation2 + $0xb8] sm:$0x3]  ;;  %v1572_v23 = vrot.slane %v4595_v7, 1  ;;  %v5466_v11 = vld [vmem:[#allocation38_spill] sm:$0xff] }
 0x1c3   : > { %v4520_v48 = vpop.permute.xlu1 %1304  ;;  %v1041_v52 = vrot.slane %v4604_v3, 1  ;;  %v5462_v25 = vld [vmem:[#allocation59_spill] sm:$0xff] }
 0x1c4   : > { %v4530_v43 = vpop.permute.xlu0 %1274 }
 0x1c5   : > { %1142 = vrot.lane.b32.xlu1 %v1077_v41, %s3050_s7  ;;  %v1910_v41 = vsel %vm1889_vm4, %v1877_v5, %v5454_v33 }
 0x1c6   : > { %1778 = vrot.lane.b32.xlu0 %v1704_v21, %s3054_s23  ;;  %v1943_v21 = vsel %vm1922_vm5, %v1910_v41, %v5455_v47 }
 0x1c7   : > { %v1799_v16 = vpop.permute.xlu1 %1798  ;;  %v1976_v36 = vsel %vm1955_vm6, %v1943_v21, %v4429_v63  ;;  %v1573_v63 = vsel %vm510_vm2, %v1570_v0, %v1572_v23  ;;  %v1748_v23 = vrot.slane %v4595_v7, 2 }
 0x1c8   : > { %v2107_v49 = vsel %vm2087_vm10, %v2074_v57, %v1799_v16  ;;  %v1401_v46 = vpop.permute.xlu0 %1400  ;;  %v2009_v57 = vsel %vm1988_vm7, %v1976_v36, %v4520_v48  ;;  %v5468_v36 = vld [vmem:[#allocation45_spill] sm:$0xff] }
 0x1c9   : > { %1316 = vrot.lane.b32.xlu1 %v5450_v9, %s3051_s8  ;;  %2821 = vmatmul.mubr.msk.f32.gmra.mrb[2].mxu1 %vm2136_vm11, %v2107_v49  ;;  %v2026_v34 = vsel %vm2021_vm8, %v1993_v59, %v1401_v46  ;;  %v5456_v49 = vld [vmem:[#allocation32_spill] sm:$0xff]  ;;  %v1746_v46 = vrot.slane %v4565_v62, 2  ;;  %v2942_v9 = vld [vmem:[#allocation2 + $0x38] sm:$0xff] }
 0x1ca   : > { %1286 = vrot.lane.b32.xlu0 %v1213_v28, %s3051_s8  ;;  %v1745_v28 = vrot.slane %v4559_v13, 2 }
 0x1cb   : > { %v4547_v10 = vpop.permute.xlu1 %1306 }
 0x1cc   : > { %v4549_v32 = vpop.permute.xlu0 %1402  ;;  %v1747_v18 = vsel %vm687_vm3, %v1745_v28, %v1746_v46 }
 0x1cd   : > { %1810 = vrot.lane.b32.xlu1 %v1744_v17, %s3054_s23  ;;  %v5457_v17 = vld [vmem:[#allocation47_spill] sm:$0xff] }
 0x1ce   : > { %1412 = vrot.lane.b32.xlu0 %v2661_v37, %s3052_s27  ;;  %v1862_v53 = vsel %vm188_vm0, %v2942_v9, %v5457_v17  ;;  %v4704_v17 = vld [vmem:[#allocation2 + $0x180] sm:$0xff] }
 0x1cf   : > { %v1433_v50 = vpop.permute.xlu1 %1432 }
 0x1d0   : > { %v1593_v30 = vpop.permute.xlu0 %1592  ;;  %v2042_v29 = vsel %vm2021_vm8, %v2009_v57, %v1433_v50  ;;  %v4697_v57 = vld [vmem:[#allocation2 + $0xc8] sm:$0xff] }
 0x1d1   : > { %1318 = vrot.lane.b32.xlu1 %v1253_v44, %s3051_s8  ;;  %v2059_v6 = vsel %vm2054_vm9, %v2026_v34, %v1593_v30  ;;  %v5458_v44 = vld [vmem:[#allocation70_spill] sm:$0xff]  ;;  %v1042_v30 = vsel %vm510_vm2, %v5459_v38, %v1041_v52  ;;  %v5463_v34 = vld [vmem:[#allocation77_spill] sm:$0xff] }
 0x1d2   : > { %1414 = vrot.lane.b32.xlu0 %v4552_v35, %s3052_s27  ;;  %v2642_v35 = vld [vmem:[#allocation2 + $0x178] sm:$0x3]  ;;  %v1895_v31 = vsel %vm1889_vm4, %v1862_v53, %v5458_v44  ;;  %v4717_v44 = vld [vmem:[#allocation2 + $0xd0] sm:$0x3]  ;;  %v2944_v38 = vld [vmem:[#allocation2 + $0x48] sm:$0xff] }
 0x1d3   : > { %v4563_v1 = vpop.permute.xlu1 %1434  ;;  %v1081_v27 = vrot.slane %v2642_v35, 1 }
 0x1d4   : > { %v4568_v20 = vpop.permute.xlu0 %1100 }
 0x1d5   : > { %1444 = vrot.lane.b32.xlu1 %v4559_v13, %s3052_s27  ;;  %v5460_v13 = vld [vmem:[#allocation86_spill] sm:$0xff] }
 0x1d6   : > { %1604 = vrot.lane.b32.xlu0 %v1531_v15, %s3053_s18 }
 0x1d7   : > { %v1625_v54 = vpop.permute.xlu1 %1624 }
 0x1d8   : > { %v1595_v61 = vpop.permute.xlu0 %1594  ;;  %v2075_v37 = vsel %vm2054_vm9, %v2042_v29, %v1625_v54 }
 0x1d9   : > { %1446 = vrot.lane.b32.xlu1 %v4565_v62, %s3052_s27  ;;  %v1928_v62 = vsel %vm1922_vm5, %v1895_v31, %v5460_v13  ;;  %v1574_v31 = vrot.slane %v4704_v17, 1 }
 0x1da   : > { %1112 = vrot.lane.b32.xlu0 %v5452_v2, %s3050_s7  ;;  %v1961_v0 = vsel %vm1955_vm6, %v1928_v62, %v5461_v4  ;;  %v5471_v4 = vld [vmem:[#allocation69_spill] sm:$0xff] }
 0x1db   : > { %v4593_v12 = vpop.permute.xlu1 %1132  ;;  %v1994_v54 = vsel %vm1988_vm7, %v1961_v0, %v4530_v43 }
 0x1dc   : > { %v1769_v42 = vpop.permute.xlu0 %1768  ;;  %v2027_v51 = vsel %vm2021_vm8, %v1994_v54, %v4549_v32  ;;  %v5465_v32 = vld [vmem:[#allocation96_spill] sm:$0xff] }
 0x1dd   : > { %1636 = vrot.lane.b32.xlu1 %v1571_v14, %s3053_s18  ;;  %v2092_v58 = vsel %vm2087_vm10, %v2059_v6, %v1769_v42  ;;  %v1878_v14 = vsel %vm188_vm0, %v2943_v26, %v5462_v25  ;;  %v2060_v59 = vsel %vm2054_vm9, %v2027_v51, %v1595_v61  ;;  %v1709_v6 = vsel %vm687_vm3, %v1706_v19, %v1708_v45  ;;  %v4733_v45 = vld [vmem:[#allocation2 + $0x180] sm:$0xff]  ;;  %v4736_v25 = vld [vmem:[#allocation2 + $0x188] sm:$0xff] }
 0x1de   : > { %1606 = vrot.lane.b32.xlu0 %v1533_v22, %s3053_s18  ;;  %2799 = vmatprep.mubr.msk.f32.mxu0 %vm2136_vm11, %v2092_v58  ;;  %v1911_v43 = vsel %vm1889_vm4, %v1878_v14, %v5463_v34  ;;  %v5464_v22 = vld [vmem:[#allocation31_spill] sm:$0xff]  ;;  %v1217_v42 = vrot.slane %v4604_v3, 2  ;;  %v5467_v3 = vld [vmem:[#allocation37_spill] sm:$0xff]  ;;  %v1083_v26 = vrot.slane %v4733_v45, 1  ;;  %v1084_v14 = vrot.slane %v4736_v25, 1 }
 0x1df   : > { %v1627_v8 = vpop.permute.xlu1 %1626  ;;  %v1082_v39 = vsel %vm510_vm2, %v5464_v22, %v1081_v27  ;;  %v1944_v55 = vsel %vm1922_vm5, %v1911_v43, %v5465_v32  ;;  %v5472_v27 = vld [vmem:[#allocation85_spill] sm:$0xff]  ;;  %v5473_v43 = vld [vmem:[#allocation18_spill] sm:$0xff] }
 0x1e0   : > { %v4620_v16 = vpop.permute.xlu0 %1102  ;;  %v1977_v5 = vsel %vm1955_vm6, %v1944_v55, %v4501_v24  ;;  %v1218_v21 = vsel %vm687_vm3, %v5467_v3, %v1217_v42  ;;  %v4748_v22 = vld [vmem:[#allocation2 + $0x190] sm:$0x3]  ;;  %v1711_v55 = vrot.slane %v4697_v57, 2  ;;  %v5476_v3 = vld [vmem:[#allocation95_spill] sm:$0xff] }
 0x1e1   : > { %1144 = vrot.lane.b32.xlu1 %v5456_v49, %s3050_s7  ;;  %v2010_v33 = vsel %vm1988_vm7, %v1977_v5, %v4547_v10  ;;  %v5469_v49 = vld [vmem:[#allocation44_spill] sm:$0xff]  ;;  %v5474_v5 = vld [vmem:[#allocation58_spill] sm:$0xff] }
 0x1e2   : > { %1780 = vrot.lane.b32.xlu0 %v1707_v56, %s3054_s23  ;;  %v2043_v58 = vsel %vm2021_vm8, %v2010_v33, %v4563_v1  ;;  %v1749_v1 = vsel %vm687_vm3, %v1746_v46, %v1748_v23  ;;  %v1257_v56 = vrot.slane %v2642_v35, 2  ;;  %v1535_v46 = vrot.slane %v4697_v57, 1  ;;  %v4757_v33 = vld [vmem:[#allocation2 + $0xd0] sm:$0x3] }
 0x1e3   : > { %v1801_v48 = vpop.permute.xlu1 %1800  ;;  %v2076_v47 = vsel %vm2054_vm9, %v2043_v58, %v1627_v8  ;;  %v2664_v8 = vld [vmem:[#allocation2 + $0xc0] sm:$0xff] }
 0x1e4   : > { %v2108_v50 = vsel %vm2087_vm10, %v2075_v37, %v1801_v48  ;;  %v4639_v15 = vpop.permute.xlu0 %1276  ;;  %v1258_v29 = vsel %vm687_vm3, %v5469_v49, %v1257_v56  ;;  %v4710_v37 = vld [vmem:[#allocation2 + $0x188] sm:$0xff]  ;;  %v1710_v32 = vrot.slane %v2664_v8, 2  ;;  %v5475_v58 = vld [vmem:[#allocation76_spill] sm:$0xff]  ;;  %v1046_v56 = vrot.slane %v4757_v33, 1 }
 0x1e5   : > { %1638 = vrot.lane.b32.xlu1 %v1573_v63, %s3053_s18  ;;  %2823 = vmatprep.mubr.msk.f32.mxu1 %vm2136_vm11, %v2108_v50  ;;  %v1534_v63 = vrot.slane %v2664_v8, 1  ;;  %v1575_v50 = vrot.slane %v4710_v37, 1 }
 0x1e6   : > { %1114 = vrot.lane.b32.xlu0 %v1042_v30, %s3050_s7  ;;  %v5470_v30 = vld [vmem:[#allocation46_spill] sm:$0xff] }
 0x1e7   : > { %v4649_v40 = vpop.permute.xlu1 %1134  ;;  %v1536_v48 = vsel %vm510_vm2, %v1534_v63, %v1535_v46  ;;  %v1863_v13 = vsel %vm188_vm0, %v2944_v38, %v5470_v30  ;;  %v1750_v63 = vrot.slane %v4704_v17, 2  ;;  %v2645_v30 = vld [vmem:[#allocation2 + $0x190] sm:$0x3] }
 0x1e8   : > { %v1771_v2 = vpop.permute.xlu0 %1770  ;;  %v1896_v0 = vsel %vm1889_vm4, %v1863_v13, %v5471_v4  ;;  %v5478_v13 = vld [vmem:[#allocation72_spill] sm:$0xff] }
 0x1e9   : > { %1812 = vrot.lane.b32.xlu1 %v1747_v18, %s3054_s23  ;;  %v2093_v60 = vsel %vm2087_vm10, %v2060_v59, %v1771_v2  ;;  %v1537_v18 = vrot.slane %v4717_v44, 1  ;;  %v1929_v54 = vsel %vm1922_vm5, %v1896_v0, %v5472_v27  ;;  %v1576_v2 = vsel %vm510_vm2, %v1574_v31, %v1575_v50  ;;  %v5480_v0 = vld [vmem:[#allocation88_spill] sm:$0xff] }
 0x1ea   : > { %1288 = vrot.lane.b32.xlu0 %v5466_v11, %s3051_s8  ;;  %2800 = vmatmul.mubr.msk.f32.gmra.mrb[4].mxu0 %vm2136_vm11, %v2093_v60  ;;  %v1962_v59 = vsel %vm1955_vm6, %v1929_v54, %v4568_v20  ;;  %v2947_v20 = vld [vmem:[#allocation2 + $0x108] sm:$0xff]  ;;  %v1086_v54 = vrot.slane %v2645_v30, 1 }
 0x1eb   : > { %v4668_v61 = vpop.permute.xlu1 %1308  ;;  %v1995_v34 = vsel %vm1988_vm7, %v1962_v59, %v4639_v15  ;;  %v1538_v11 = vsel %vm510_vm2, %v1535_v46, %v1537_v18  ;;  %v1751_v46 = vrot.slane %v4710_v37, 2 }
 0x1ec   : > { %v4676_v41 = vpop.permute.xlu0 %1278 }
 0x1ed   : > { %1146 = vrot.lane.b32.xlu1 %v1082_v39, %s3050_s7  ;;  %v1752_v27 = vsel %vm687_vm3, %v1750_v63, %v1751_v46 }
 0x1ee   : > { %1782 = vrot.lane.b32.xlu0 %v1709_v6, %s3054_s23  ;;  %v1879_v6 = vsel %vm188_vm0, %v2947_v20, %v5474_v5  ;;  %v5482_v5 = vld [vmem:[#allocation22_spill] sm:$0xff] }
 0x1ef   : > { %v1803_v24 = vpop.permute.xlu1 %1802  ;;  %v1912_v23 = vsel %vm1889_vm4, %v1879_v6, %v5475_v58 }
 0x1f0   : > { %v2109_v19 = vsel %vm2087_vm10, %v2076_v47, %v1803_v24  ;;  %v1405_v10 = vpop.permute.xlu0 %1404  ;;  %v1085_v24 = vsel %vm510_vm2, %v1083_v26, %v1084_v14 }
 0x1f1   : > { %1320 = vrot.lane.b32.xlu1 %v5468_v36, %s3051_s8  ;;  %2824 = vmatmul.mubr.msk.f32.gmra.mrb[4].mxu1 %vm2136_vm11, %v2109_v19  ;;  %v2028_v39 = vsel %vm2021_vm8, %v1995_v34, %v1405_v10  ;;  %v1577_v19 = vrot.slane %v4748_v22, 1  ;;  %v1713_v34 = vrot.slane %v4717_v44, 2  ;;  %v1087_v44 = vsel %vm510_vm2, %v1084_v14, %v1086_v54 }
 0x1f2   : > { %1290 = vrot.lane.b32.xlu0 %v1218_v21, %s3051_s8  ;;  %v1945_v21 = vsel %vm1922_vm5, %v1912_v23, %v5476_v3  ;;  %v5485_v3 = vld [vmem:[#allocation39_spill] sm:$0xff] }
 0x1f3   : > { %v4692_v7 = vpop.permute.xlu1 %1310  ;;  %v1978_v36 = vsel %vm1955_vm6, %v1945_v21, %v4593_v12  ;;  %v1578_v12 = vsel %vm510_vm2, %v1575_v50, %v1577_v19  ;;  %v1714_v23 = vsel %vm687_vm3, %v1711_v55, %v1713_v34 }
 0x1f4   : > { %v4694_v52 = vpop.permute.xlu0 %1406 }
 0x1f5   : > { %1814 = vrot.lane.b32.xlu1 %v1749_v1, %s3054_s23  ;;  %v1712_v1 = vsel %vm687_vm3, %v1710_v32, %v1711_v55 }
 0x1f6   : > { %1416 = vrot.lane.b32.xlu0 %v2664_v8, %s3052_s27  ;;  %v2011_v8 = vsel %vm1988_vm7, %v1978_v36, %v4668_v61  ;;  %v1262_v36 = vrot.slane %v2645_v30, 2 }
 0x1f7   : > { %v1437_v28 = vpop.permute.xlu1 %1436 }
 0x1f8   : > { %v1597_v9 = vpop.permute.xlu0 %1596 }
 0x1f9   : > { %1322 = vrot.lane.b32.xlu1 %v1258_v29, %s3051_s8  ;;  %v2061_v15 = vsel %vm2054_vm9, %v2028_v39, %v1597_v9  ;;  %v2044_v29 = vsel %vm2021_vm8, %v2011_v8, %v1437_v28  ;;  %v2948_v9 = vld [vmem:[#allocation2 + $0x50] sm:$0xff]  ;;  %v5481_v39 = vld [vmem:[#allocation61_spill] sm:$0xff] }
 0x1fa   : > { %1418 = vrot.lane.b32.xlu0 %v4697_v57, %s3052_s27 }
 0x1fb   : > { %v4708_v53 = vpop.permute.xlu1 %1438 }
 0x1fc   : > { %v4713_v35 = vpop.permute.xlu0 %1104 }
 0x1fd   : > { %1448 = vrot.lane.b32.xlu1 %v4704_v17, %s3052_s27  ;;  %v5479_v17 = vld [vmem:[#allocation17_spill] sm:$0xff] }
 0x1fe   : > { %1608 = vrot.lane.b32.xlu0 %v1536_v48, %s3053_s18  ;;  %v5477_v48 = vld [vmem:[#allocation49_spill] sm:$0xff] }
 0x1ff   : > { %v1629_v62 = vpop.permute.xlu1 %1628  ;;  %v1864_v31 = vsel %vm188_vm0, %v2948_v9, %v5477_v48  ;;  %v2691_v48 = vld [vmem:[#allocation2 + $0x198] sm:$0xff] }
 0x200   : > { %v4729_v51 = vpop.permute.xlu0 %1598  ;;  %v2077_v38 = vsel %vm2054_vm9, %v2044_v29, %v1629_v62  ;;  %v1897_v4 = vsel %vm1889_vm4, %v1864_v31, %v5478_v13 }
 0x201   : > { %1450 = vrot.lane.b32.xlu1 %v4710_v37, %s3052_s27  ;;  %v1047_v37 = vsel %vm510_vm2, %v5479_v17, %v1046_v56  ;;  %v1930_v50 = vsel %vm1922_vm5, %v1897_v4, %v5480_v0  ;;  %v2668_v56 = vld [vmem:[#allocation2 + $0xe0] sm:$0xff]  ;;  %v1579_v4 = vrot.slane %v2691_v48, 1 }
 0x202   : > { %1116 = vrot.lane.b32.xlu0 %v5473_v43, %s3050_s7  ;;  %v1963_v62 = vsel %vm1955_vm6, %v1930_v50, %v4620_v16  ;;  %v2949_v43 = vld [vmem:[#allocation2 + $0x110] sm:$0xff]  ;;  %v1259_v16 = vrot.slane %v4733_v45, 2  ;;  %v2950_v17 = vld [vmem:[#allocation2 + $0x60] sm:$0xff] }
 0x203   : > { %v4746_v60 = vpop.permute.xlu1 %1136  ;;  %v1996_v26 = vsel %vm1988_vm7, %v1963_v62, %v4676_v41  ;;  %v1880_v32 = vsel %vm188_vm0, %v2949_v43, %v5481_v39  ;;  %v1260_v41 = vrot.slane %v4736_v25, 2  ;;  %v1222_v25 = vrot.slane %v4757_v33, 2  ;;  %v2693_v62 = vld [vmem:[#allocation2 + $0x1a8] sm:$0x3]  ;;  %v5488_v43 = vld [vmem:[#allocation87_spill] sm:$0xff] }
 0x204   : > { %v1773_v42 = vpop.permute.xlu0 %1772  ;;  %v1913_v6 = vsel %vm1889_vm4, %v1880_v32, %v5482_v5 }
 0x205   : > { %1640 = vrot.lane.b32.xlu1 %v1576_v2, %s3053_s18  ;;  %v2094_v47 = vsel %vm2087_vm10, %v2061_v15, %v1773_v42  ;;  %v2029_v2 = vsel %vm2021_vm8, %v1996_v26, %v4694_v52  ;;  %v5483_v15 = vld [vmem:[#allocation98_spill] sm:$0xff]  ;;  %v5484_v42 = vld [vmem:[#allocation40_spill] sm:$0xff]  ;;  %v1261_v19 = vsel %vm687_vm3, %v1259_v16, %v1260_v41  ;;  %v1263_v8 = vsel %vm687_vm3, %v1260_v41, %v1262_v36 }
 0x206   : > { %1610 = vrot.lane.b32.xlu0 %v1538_v11, %s3053_s18  ;;  %2802 = vmatprep.mubr.msk.f32.mxu0 %vm2136_vm11, %v2094_v47  ;;  %v2062_v11 = vsel %vm2054_vm9, %v2029_v2, %v4729_v51  ;;  %v1946_v45 = vsel %vm1922_vm5, %v1913_v6, %v5483_v15  ;;  %v1716_v2 = vrot.slane %v2668_v56, 2  ;;  %v2951_v6 = vld [vmem:[#allocation2 + $0x120] sm:$0xff] }
 0x207   : > { %v1631_v10 = vpop.permute.xlu1 %1630  ;;  %v1979_v58 = vsel %vm1955_vm6, %v1946_v45, %v4649_v40  ;;  %v1753_v40 = vrot.slane %v4748_v22, 2 }
 0x208   : > { %v4778_v49 = vpop.permute.xlu0 %1106  ;;  %v2012_v14 = vsel %vm1988_vm7, %v1979_v58, %v4692_v7  ;;  %v1223_v7 = vsel %vm687_vm3, %v5485_v3, %v1222_v25 }
 0x209   : > { %1148 = vrot.lane.b32.xlu1 %v1085_v24, %s3050_s7  ;;  %v2045_v24 = vsel %vm2021_vm8, %v2012_v14, %v4708_v53  ;;  %v1754_v53 = vsel %vm687_vm3, %v1751_v46, %v1753_v40  ;;  %v2669_v46 = vld [vmem:[#allocation2 + $0xe8] sm:$0x3] }
 0x20a   : > { %1784 = vrot.lane.b32.xlu0 %v1712_v1, %s3054_s23  ;;  %v2078_v57 = vsel %vm2054_vm9, %v2045_v24, %v1631_v10  ;;  %v2667_v10 = vld [vmem:[#allocation2 + $0xd8] sm:$0xff]  ;;  %v1542_v30 = vrot.slane %v2669_v46, 1  ;;  %v5491_v40 = vld [vmem:[#allocation97_spill] sm:$0xff] }
 0x20b   : > { %v1805_v61 = vpop.permute.xlu1 %1804  ;;  %v1539_v63 = vrot.slane %v2667_v10, 1  ;;  %v1715_v26 = vrot.slane %v2667_v10, 2 }
 0x20c   : > { %v2110_v28 = vsel %vm2087_vm10, %v2077_v38, %v1805_v61  ;;  %v4796_v18 = vpop.permute.xlu0 %1280  ;;  %v4866_v38 = vld [vmem:[#allocation2 + $0x1a0] sm:$0xff] }
 0x20d   : > { %1642 = vrot.lane.b32.xlu1 %v1578_v12, %s3053_s18  ;;  %2826 = vmatprep.mubr.msk.f32.mxu1 %vm2136_vm11, %v2110_v28  ;;  %v1540_v12 = vrot.slane %v2668_v56, 1  ;;  %v1580_v28 = vrot.slane %v4866_v38, 1  ;;  %v1717_v45 = vsel %vm687_vm3, %v1715_v26, %v1716_v2  ;;  %v1756_v14 = vrot.slane %v4866_v38, 2 }
 0x20e   : > { %1118 = vrot.lane.b32.xlu0 %v1047_v37, %s3050_s7  ;;  %v5486_v37 = vld [vmem:[#allocation48_spill] sm:$0xff] }
 0x20f   : > { %v4806_v59 = vpop.permute.xlu1 %1138  ;;  %v1541_v61 = vsel %vm510_vm2, %v1539_v63, %v1540_v12  ;;  %v1865_v0 = vsel %vm188_vm0, %v2950_v17, %v5486_v37  ;;  %v1543_v34 = vsel %vm510_vm2, %v1540_v12, %v1542_v30  ;;  %v2953_v37 = vld [vmem:[#allocation2 + $0x128] sm:$0xff] }
 0x210   : > { %v1775_v20 = vpop.permute.xlu0 %1774 }
 0x211   : > { %1816 = vrot.lane.b32.xlu1 %v1752_v27, %s3054_s23  ;;  %v2095_v52 = vsel %vm2087_vm10, %v2062_v11, %v1775_v20  ;;  %v5487_v27 = vld [vmem:[#allocation71_spill] sm:$0xff]  ;;  %v1581_v11 = vsel %vm510_vm2, %v1579_v4, %v1580_v28  ;;  %v1582_v20 = vrot.slane %v2693_v62, 1 }
 0x212   : > { %1292 = vrot.lane.b32.xlu0 %v5484_v42, %s3051_s8  ;;  %2803 = vmatmul.mubr.msk.f32.gmra.mrb[6].mxu0 %vm2136_vm11, %v2095_v52  ;;  %v1898_v54 = vsel %vm1889_vm4, %v1865_v0, %v5487_v27  ;;  %v5489_v52 = vld [vmem:[#allocation60_spill] sm:$0xff]  ;;  %v1718_v42 = vrot.slane %v2669_v46, 2  ;;  %v5495_v0 = vld [vmem:[#allocation63_spill] sm:$0xff] }
 0x213   : > { %v4829_v51 = vpop.permute.xlu1 %1312  ;;  %v1931_v39 = vsel %vm1922_vm5, %v1898_v54, %v5488_v43 }
 0x214   : > { %v4839_v47 = vpop.permute.xlu0 %1282  ;;  %v1964_v16 = vsel %vm1955_vm6, %v1931_v39, %v4713_v35  ;;  %v5490_v35 = vld [vmem:[#allocation78_spill] sm:$0xff]  ;;  %v1719_v3 = vsel %vm687_vm3, %v1716_v2, %v1718_v42 }
 0x215   : > { %1150 = vrot.lane.b32.xlu1 %v1087_v44, %s3050_s7  ;;  %v1997_v41 = vsel %vm1988_vm7, %v1964_v16, %v4796_v18  ;;  %v1881_v44 = vsel %vm188_vm0, %v2951_v6, %v5489_v52  ;;  %v1755_v18 = vrot.slane %v2691_v48, 2  ;;  %v5498_v42 = vld [vmem:[#allocation50_spill] sm:$0xff]  ;;  %s175_s7 = sand.u32 1, %s3028_s13  }
 0x216   : > { %1786 = vrot.lane.b32.xlu0 %v1714_v23, %s3054_s23  ;;  %v1914_v58 = vsel %vm1889_vm4, %v1881_v44, %v5490_v35  ;;  %s5218_s15 = scalar_lea.sflag [#allocation4], %s175_s7 }
 0x217   : > { %v1807_v55 = vpop.permute.xlu1 %1806  ;;  %v1757_v36 = vsel %vm687_vm3, %v1755_v18, %v1756_v14 }
 0x218   : > { %v2111_v33 = vsel %vm2087_vm10, %v2078_v57, %v1807_v55  ;;  %v1409_v21 = vpop.permute.xlu0 %1408  ;;  %v1947_v57 = vsel %vm1922_vm5, %v1914_v58, %v5491_v40  ;;  %v5499_v58 = vld [vmem:[#allocation73_spill] sm:$0xff] }
 0x219   : > { %1324 = vrot.lane.b32.xlu1 %v1261_v19, %s3051_s8  ;;  %2827 = vmatmul.mubr.msk.f32.gmra.mrb[6].mxu1 %vm2136_vm11, %v2111_v33  ;;  %v2030_v15 = vsel %vm2021_vm8, %v1997_v41, %v1409_v21  ;;  %v1583_v19 = vsel %vm510_vm2, %v1580_v28, %v1582_v20  ;;  %v1980_v33 = vsel %vm1955_vm6, %v1947_v57, %v4746_v60 }
 0x21a   : > { %1294 = vrot.lane.b32.xlu0 %v1223_v7, %s3051_s8  ;;  %v2013_v7 = vsel %vm1988_vm7, %v1980_v33, %v4829_v51  ;;  %v5501_v33 = vld [vmem:[#allocation62_spill] sm:$0xff] }
 0x21b   : > { %v4855_v22 = vpop.permute.xlu1 %1314 }
 0x21c   : > { %v4857_v1 = vpop.permute.xlu0 %1410 }
 0x21d   : > { %1818 = vrot.lane.b32.xlu1 %v1754_v53, %s3054_s23 }
 0x21e   : > { %1420 = vrot.lane.b32.xlu0 %v2667_v10, %s3052_s27  ;;  %v1758_v10 = vrot.slane %v2693_v62, 2 }
 0x21f   : > { %v1441_v29 = vpop.permute.xlu1 %1440 }
 0x220   : > { %v1601_v9 = vpop.permute.xlu0 %1600  ;;  %v2046_v53 = vsel %vm2021_vm8, %v2013_v7, %v1441_v29  ;;  %v1759_v30 = vsel %vm687_vm3, %v1756_v14, %v1758_v10 }
 0x221   : > { %1326 = vrot.lane.b32.xlu1 %v1263_v8, %s3051_s8  ;;  %v2063_v23 = vsel %vm2054_vm9, %v2030_v15, %v1601_v9  ;;  %v5492_v8 = vld [vmem:[#allocation51_spill] sm:$0xff]  ;;  %v5493_v9 = vld [vmem:[#allocation6_spill] sm:$0xff]  ;;  %s2595_s8 = sshll.u32 %s175_s7, 8 }
 0x222   : > { %1422 = vrot.lane.b32.xlu0 %v2668_v56, %s3052_s27  ;;  %v2952_v56 = vld [vmem:[#allocation2 + $0x68] sm:$0xff]  ;;  %s5029_s28 = scalar_lea.vmem [#allocation3], %s2595_s8 }
 0x223   : > { %v4864_v31 = vpop.permute.xlu1 %1442  ;;  %v1866_v63 = vsel %vm188_vm0, %v2952_v56, %v5492_v8  ;;  %v5503_v8 = vld [vmem:[#allocation99_spill] sm:$0xff]  ;;  %s2507_s30 = sshll.u32 %s5029_s28, 4  ;;  %s5212_s30 = int_to_ptr.vmem [resolvable:$true] %s2507_s30 }
 0x224   : > { %v4869_v13 = vpop.permute.xlu0 %1108  ;;  %v1899_v51 = vsel %vm1889_vm4, %v1866_v63, %v5493_v9  ;;  %s2966_s10 = scalar_lea.vmem %s5212_s30, 4096 }
 0x225   : > { %1452 = vrot.lane.b32.xlu1 %v2691_v48, %s3052_s27  ;;  %v5494_v48 = vld [vmem:[#allocation24_spill] sm:$0xff]  ;;  %p2967_p12 = scmp.ne.s32.totalorder %s5212_s30, %s2966_s10 }
 0x226   : > { %1612 = vrot.lane.b32.xlu0 %v1541_v61, %s3053_s18  ;;  %v1932_v29 = vsel %vm1922_vm5, %v1899_v51, %v5494_v48  ;;  %v5504_v48 = vld [vmem:[#allocation53_spill] sm:$0xff] }
 0x227   : > { %v1633_v50 = vpop.permute.xlu1 %1632  ;;  %v1965_v61 = vsel %vm1955_vm6, %v1932_v29, %v4778_v49  ;;  %v5496_v49 = vld [vmem:[#allocation79_spill] sm:$0xff]  ;;  %p2968_p13 = pnand %p2967_p12, %p3117_p4 }
 0x228   : > { %v1603_v32 = vpop.permute.xlu0 %1602  ;;  %v2079_v60 = vsel %vm2054_vm9, %v2046_v53, %v1633_v50  ;;  %v1998_v4 = vsel %vm1988_vm7, %v1965_v61, %v4839_v47  ;;  %v1882_v50 = vsel %vm188_vm0, %v2953_v37, %v5495_v0  ;;  %v5497_v47 = vld [vmem:[#allocation100_spill] sm:$0xff]  ;;  %v5506_v37 = vld [vmem:[#allocation91_spill] sm:$0xff] }
 0x229   : > { %1454 = vrot.lane.b32.xlu1 %v4866_v38, %s3052_s27  ;;  %v2031_v17 = vsel %vm2021_vm8, %v1998_v4, %v4857_v1  ;;  %v1915_v54 = vsel %vm1889_vm4, %v1882_v50, %v5496_v49  ;;  %p2969_p0 = pneg %p2968_p13 }
 0x22a   : > { %1614 = vrot.lane.b32.xlu0 %v1543_v34, %s3053_s18  ;;  %v2064_v62 = vsel %vm2054_vm9, %v2031_v17, %v1603_v32  ;;  %v1948_v2 = vsel %vm1922_vm5, %v1915_v54, %v5497_v47  ;;  %v2957_v54 = vld [vmem:[#allocation2 + $0x140] sm:$0xff] }
 0x22b   : > { %v4889_v5 = vpop.permute.xlu1 %1140  ;;  %v1981_v34 = vsel %vm1955_vm6, %v1948_v2, %v4806_v59 }
 0x22c   : > { %v1777_v25 = vpop.permute.xlu0 %1776  ;;  %v2014_v43 = vsel %vm1988_vm7, %v1981_v34, %v4855_v22  ;;  %v2954_v22 = vld [vmem:[#allocation2 + $0x78] sm:$0xff]  ;;  %v5508_v34 = vld [vmem:[#allocation81_spill] sm:$0xff] }
 0x22d   : > { %1644 = vrot.lane.b32.xlu1 %v1581_v11, %s3053_s18  ;;  %v2096_v24 = vsel %vm2087_vm10, %v2063_v23, %v1777_v25  ;;  %v2047_v32 = vsel %vm2021_vm8, %v2014_v43, %v4864_v31  ;;  %v1867_v35 = vsel %vm188_vm0, %v2954_v22, %v5498_v42  ;;  %v5500_v25 = vld [vmem:[#allocation89_spill] sm:$0xff] }
 0x22e   : > { %1788 = vrot.lane.b32.xlu0 %v1717_v45, %s3054_s23  ;;  %2805 = vmatprep.mubr.msk.f32.mxu0 %vm2136_vm11, %v2096_v24  ;;  %v1900_v23 = vsel %vm1889_vm4, %v1867_v35, %v5499_v58 }
 0x22f   : > { %v1635_v55 = vpop.permute.xlu1 %1634  ;;  %v1933_v18 = vsel %vm1922_vm5, %v1900_v23, %v5500_v25 }
 0x230   : > { %v4911_v21 = vpop.permute.xlu0 %1110  ;;  %v2080_v16 = vsel %vm2054_vm9, %v2047_v32, %v1635_v55  ;;  %v1966_v24 = vsel %vm1955_vm6, %v1933_v18, %v4869_v13  ;;  %v2955_v55 = vld [vmem:[#allocation2 + $0x138] sm:$0xff] }
 0x231   : > { %1646 = vrot.lane.b32.xlu1 %v1583_v19, %s3053_s18  ;;  %s2970_s18 = sshll.u32 %s3055_s11, 4  ;;  %s2971_s18 = int_to_ptr.vmem [resolvable:$false] %s2970_s18 }
 0x232   : > { %1790 = vrot.lane.b32.xlu0 %v1719_v3, %s3054_s23  ;;  %v1883_v3 = vsel %vm188_vm0, %v2955_v55, %v5501_v33  ;;  %s2972_s19 = scalar_lea.vmem %s2971_s18, 8192  ;;  %p2973_p1 = scmp.lt.s32.totalorder %s5212_s30, %s2971_s18 }
 0x233   : > { %v1809_v12 = vpop.permute.xlu1 %1808  ;;  %p2974_p2 = scmp.lt.s32.totalorder %s2972_s19, %s2966_s10 }
 0x234   : > { %v2112_v46 = vsel %vm2087_vm10, %v2079_v60, %v1809_v12  ;;  %v1285_v38 = vpop.permute.xlu0 %1284 }
 0x235   : > { %1820 = vrot.lane.b32.xlu1 %v1757_v36, %s3054_s23  ;;  %2829 = vmatprep.mubr.msk.f32.mxu1 %vm2136_vm11, %v2112_v46  ;;  %v1999_v19 = vsel %vm1988_vm7, %v1966_v24, %v1285_v38  ;;  %v5502_v36 = vld [vmem:[#allocation21_spill] sm:$0xff]  ;;  %v2956_v46 = vld [vmem:[#allocation2 + $0x80] sm:$0xff]  ;;  %p2975_p3 = por %p2974_p2, %p2973_p1 }
 0x236   : > { %v1916_v10 = vsel %vm1889_vm4, %v1883_v3, %v5502_v36  ;;  %v1868_v29 = vsel %vm188_vm0, %v2956_v46, %v5504_v48  ;;  %v5511_v3 = vld [vmem:[#allocation8_spill] sm:$0xff]  ;;  %v5512_v36 = vld [vmem:[#allocation90_spill] sm:$0xff] }
 0x237   : > { %v4932_v28 = vpop.permute.xlu1 %1142  ;;  %v1949_v13 = vsel %vm1922_vm5, %v1916_v10, %v5503_v8  ;;  %v2959_v48 = vld [vmem:[#allocation2 + $0x150] sm:$0xff]  ;;  %p2976_p5 = pnand %p2975_p3, %p2969_p0 }
 0x238   : > { %v1779_v27 = vpop.permute.xlu0 %1778  ;;  %v1982_v60 = vsel %vm1955_vm6, %v1949_v13, %v4889_v5 }
 0x239   : > { %1822 = vrot.lane.b32.xlu1 %v1759_v30, %s3054_s23  ;;  %v2097_v26 = vsel %vm2087_vm10, %v2064_v62, %v1779_v27  ;;  %v5505_v30 = vld [vmem:[#allocation7_spill] sm:$0xff] }
 0x23a   : > { %2806 = vmatmul.mubr.msk.f32.gmra.mrb[8].mxu0 %vm2136_vm11, %v2097_v26  ;;  %v1901_v4 = vsel %vm1889_vm4, %v1868_v29, %v5505_v30  ;;  %v5507_v26 = vld [vmem:[#allocation65_spill] sm:$0xff]  ;;  %v5513_v29 = vld [vmem:[#allocation64_spill] sm:$0xff] }
 0x23b   : > { %v1317_v1 = vpop.permute.xlu1 %1316  ;;  %v1934_v5 = vsel %vm1922_vm5, %v1901_v4, %v5506_v37  ;;  %v1884_v47 = vsel %vm188_vm0, %v2957_v54, %v5507_v26  ;;  %v5514_v4 = vld [vmem:[#allocation80_spill] sm:$0xff]  ;;  %v5515_v37 = vld [vmem:[#allocation101_spill] sm:$0xff]  ;;  %v2960_v26 = vld [vmem:[#allocation2 + $0x98] sm:$0xff] }
 0x23c   : > { %v1287_v39 = vpop.permute.xlu0 %1286  ;;  %v2015_v12 = vsel %vm1988_vm7, %v1982_v60, %v1317_v1  ;;  %v1967_v50 = vsel %vm1955_vm6, %v1934_v5, %v4911_v21  ;;  %v1917_v43 = vsel %vm1889_vm4, %v1884_v47, %v5508_v34  ;;  %v5509_v21 = vld [vmem:[#allocation10_spill] sm:$0xff]  ;;  %v5516_v47 = vld [vmem:[#allocation55_spill] sm:$0xff] }
 0x23d   : > { %v2000_v62 = vsel %vm1988_vm7, %v1967_v50, %v1287_v39  ;;  %v1950_v39 = vsel %vm1922_vm5, %v1917_v43, %v5509_v21  ;;  %v5517_v43 = vld [vmem:[#allocation19_spill] sm:$0xff] }
 0x23f   : > { %v1811_v11 = vpop.permute.xlu1 %1810 }
 0x240   : > { %v2113_v20 = vsel %vm2087_vm10, %v2080_v16, %v1811_v11  ;;  %v1413_v41 = vpop.permute.xlu0 %1412  ;;  %v1983_v11 = vsel %vm1955_vm6, %v1950_v39, %v4932_v28  ;;  %v5025_v28 = vld [vmem:[%s5267_s2] ss:$0 sm:$0xff]  ;;  %v5518_v39 = vld [vmem:[#allocation93_spill] sm:$0xff] }
 0x241   : > { %2830 = vmatmul.mubr.msk.f32.gmra.mrb[8].mxu1 %vm2136_vm11, %v2113_v20  ;;  %v2032_v57 = vsel %vm2021_vm8, %v1999_v19, %v1413_v41  ;;  %v2958_v19 = vld [vmem:[#allocation2 + $0x90] sm:$0xff] }
 0x243   : > { %v1319_v6 = vpop.permute.xlu1 %1318 }
 0x244   : > { %v1415_v52 = vpop.permute.xlu0 %1414  ;;  %v2016_v20 = vsel %vm1988_vm7, %v1983_v11, %v1319_v6 }
 0x245   : > { %v2033_v49 = vsel %vm2021_vm8, %v2000_v62, %v1415_v52 }
 0x247   : > { %v1445_v44 = vpop.permute.xlu1 %1444 }
 0x248   : > { %v1605_v15 = vpop.permute.xlu0 %1604  ;;  %v2048_v51 = vsel %vm2021_vm8, %v2015_v12, %v1445_v44 }
 0x249   : > { %v2065_v7 = vsel %vm2054_vm9, %v2032_v57, %v1605_v15  ;;  %v5510_v57 = vld [vmem:[#allocation52_spill] sm:$0xff] }
 0x24a   : > { %v1869_v55 = vsel %vm188_vm0, %v2958_v19, %v5510_v57 }
 0x24b   : > { %v1447_v59 = vpop.permute.xlu1 %1446 }
 0x24c   : > { %v4955_v45 = vpop.permute.xlu0 %1112  ;;  %v2049_v52 = vsel %vm2021_vm8, %v2016_v20, %v1447_v59 }
 0x24f   : > { %v1637_v31 = vpop.permute.xlu1 %1636 }
 0x250   : > { %v1607_v14 = vpop.permute.xlu0 %1606  ;;  %v2081_v38 = vsel %vm2054_vm9, %v2048_v51, %v1637_v31 }
 0x251   : > { %v2066_v2 = vsel %vm2054_vm9, %v2033_v49, %v1607_v14 }
 0x253   : > { %v4966_v40 = vpop.permute.xlu1 %1144 }
 0x254   : > { %v1781_v53 = vpop.permute.xlu0 %1780 }
 0x255   : > { %v2098_v56 = vsel %vm2087_vm10, %v2065_v7, %v1781_v53  ;;  %v1902_v7 = vsel %vm1889_vm4, %v1869_v55, %v5511_v3 }
 0x256   : > { %2808 = vmatprep.mubr.msk.f32.mxu0 %vm2136_vm11, %v2098_v56  ;;  %v1935_v10 = vsel %vm1922_vm5, %v1902_v7, %v5512_v36 }
 0x257   : > { %v1639_v63 = vpop.permute.xlu1 %1638 }
 0x258   : > { %v4981_v9 = vpop.permute.xlu0 %1114  ;;  %v2082_v44 = vsel %vm2054_vm9, %v2049_v52, %v1639_v63  ;;  %v1968_v63 = vsel %vm1955_vm6, %v1935_v10, %v4955_v45 }
 0x25b   : > { %v1813_v61 = vpop.permute.xlu1 %1812 }
 0x25c   : > { %v2114_v17 = vsel %vm2087_vm10, %v2081_v38, %v1813_v61  ;;  %v1289_v0 = vpop.permute.xlu0 %1288  ;;  %v1885_v38 = vsel %vm188_vm0, %v2959_v48, %v5513_v29  ;;  %v5523_v48 = vld [vmem:[#allocation20_spill] sm:$0xff] }
 0x25d   : > { %2832 = vmatprep.mubr.msk.f32.mxu1 %vm2136_vm11, %v2114_v17  ;;  %v2001_v12 = vsel %vm1988_vm7, %v1968_v63, %v1289_v0  ;;  %v1918_v45 = vsel %vm1889_vm4, %v1885_v38, %v5514_v4 }
 0x25e   : > { %v1951_v5 = vsel %vm1922_vm5, %v1918_v45, %v5515_v37 }
 0x25f   : > { %v4996_v27 = vpop.permute.xlu1 %1146  ;;  %v1984_v50 = vsel %vm1955_vm6, %v1951_v5, %v4966_v40 }
 0x260   : > { %v1783_v1 = vpop.permute.xlu0 %1782 }
 0x261   : > { %v2099_v32 = vsel %vm2087_vm10, %v2066_v2, %v1783_v1  ;;  %v1870_v2 = vsel %vm188_vm0, %v2960_v26, %v5516_v47  ;;  %v5526_v47 = vld [vmem:[#allocation74_spill] sm:$0xff] }
 0x262   : > { %2809 = vmatmul.mubr.msk.f32.gmra.mrb[10].mxu0 %vm2136_vm11, %v2099_v32  ;;  %v1903_v32 = vsel %vm1889_vm4, %v1870_v2, %v5517_v43  ;;  %v5527_v43 = vld [vmem:[#allocation66_spill] sm:$0xff] }
 0x263   : > { %v1321_v16 = vpop.permute.xlu1 %1320  ;;  %v1936_v40 = vsel %vm1922_vm5, %v1903_v32, %v5518_v39  ;;  %v5528_v32 = vld [vmem:[#allocation23_spill] sm:$0xff] }
 0x264   : > { %v5011_v41 = vpop.permute.xlu0 %1290  ;;  %v2017_v62 = vsel %vm1988_vm7, %v1984_v50, %v1321_v16  ;;  %v1969_v11 = vsel %vm1955_vm6, %v1936_v40, %v4981_v9  ;;  %v5521_v9 = vld [vmem:[#allocation103_spill] sm:$0xff]  ;;  %v5525_v50 = vld [vmem:[#allocation56_spill] sm:$0xff] }
 0x265   : > { %v2002_v20 = vsel %vm1988_vm7, %v1969_v11, %v5011_v41  ;;  %v5529_v11 = vld [vmem:[#allocation82_spill] sm:$0xff] }
 0x267   : > { %v1815_v15 = vpop.permute.xlu1 %1814 }
 0x268   : > { %v2115_v22 = vsel %vm2087_vm10, %v2082_v44, %v1815_v15  ;;  %v1417_v42 = vpop.permute.xlu0 %1416  ;;  %v2961_v15 = vld [vmem:[#allocation2 + $0x158] sm:$0xff] }
 0x269   : > { %2833 = vmatmul.mubr.msk.f32.gmra.mrb[10].mxu1 %vm2136_vm11, %v2115_v22  ;;  %v2034_v46 = vsel %vm2021_vm8, %v2001_v12, %v1417_v42  ;;  %v5519_v22 = vld [vmem:[#allocation67_spill] sm:$0xff] }
 0x26a   : > { %v1886_v42 = vsel %vm188_vm0, %v2961_v15, %v5519_v22  ;;  %v5530_v15 = vld [vmem:[#allocation102_spill] sm:$0xff] }
 0x26b   : > { %v5017_v35 = vpop.permute.xlu1 %1322 }
 0x26c   : > { %v1419_v31 = vpop.permute.xlu0 %1418 }
 0x26d   : > { %v2035_v44 = vsel %vm2021_vm8, %v2002_v20, %v1419_v31 }
 0x26f   : > { %v1449_v58 = vpop.permute.xlu1 %1448 }
 0x270   : > { %v1609_v6 = vpop.permute.xlu0 %1608  ;;  %v2050_v54 = vsel %vm2021_vm8, %v2017_v62, %v1449_v58 }
 0x271   : > { %v2795_v59 = vpop.f32.mrb[0].mxu0  ;;  %v2067_v61 = vsel %vm2054_vm9, %v2034_v46, %v1609_v6 }
 0x272   : > { %v2305_v23 = vadd.f32 %v2795_v59, %v5025_v28  ;;  %v2299_v25 = vpop.f32.mrb[1].mxu0  ;;  %v5520_v59 = vld [vmem:[#allocation83_spill] sm:$0xff] }
 0x273   : > { %v1451_v18 = vpop.permute.xlu1 %1450  ;;  %v2300_v14 = vadd.f32 %v5025_v28, %v2299_v25 }
 0x274   : > { %2459 = vst [vmem:[%s5029_s28 + $0x8] sm:$0xff] %v2305_v23  ;;  %v5032_v24 = vpop.permute.xlu0 %1116  ;;  %v1919_v23 = vsel %vm1889_vm4, %v1886_v42, %v5520_v59 }
 0x275   : > { %2458 = vst [vmem:[%s5029_s28] sm:$0xff] %v2300_v14  ;;  %v1952_v14 = vsel %vm1922_vm5, %v1919_v23, %v5521_v9  ;;  %v2965_v23 = vld [vmem:[#allocation2 + $0x170] sm:$0xff] }
 0x276   : > { %v1985_v31 = vsel %vm1955_vm6, %v1952_v14, %v4996_v27 }
 0x277   : > { %v1641_v33 = vpop.permute.xlu1 %1640  ;;  %v2018_v19 = vsel %vm1988_vm7, %v1985_v31, %v5017_v35 }
 0x278   : > { %v2819_v53 = vpop.f32.mrb[0].mxu1  ;;  %v1611_v8 = vpop.permute.xlu0 %1610  ;;  %v2083_v1 = vsel %vm2054_vm9, %v2050_v54, %v1641_v33  ;;  %v2051_v55 = vsel %vm2021_vm8, %v2018_v19, %v1451_v18  ;;  %v2962_v18 = vld [vmem:[#allocation2 + $0xa8] sm:$0xff]  ;;  %v5532_v19 = vld [vmem:[#allocation84_spill] sm:$0xff] }
 0x279   : > { %v2385_v56 = vadd.f32 %v2819_v53, %v5025_v28  ;;  %v2379_v13 = vpop.f32.mrb[1].mxu1  ;;  %v2068_v58 = vsel %vm2054_vm9, %v2035_v44, %v1611_v8 }
 0x27a   : > { %v2380_v60 = vadd.f32 %v5025_v28, %v2379_v13 }
 0x27b   : > { %2475 = vst [vmem:[%s5029_s28 + $0x88] sm:$0xff] %v2385_v56  ;;  %v5047_v51 = vpop.permute.xlu1 %1148 }
 0x27c   : > { %2474 = vst [vmem:[%s5029_s28 + $0x80] sm:$0xff] %v2380_v60  ;;  %v1785_v30 = vpop.permute.xlu0 %1784  ;;  %v5522_v60 = vld [vmem:[#allocation54_spill] sm:$0xff] }
 0x27d   : > { %v2100_v17 = vsel %vm2087_vm10, %v2067_v61, %v1785_v30  ;;  %v1871_v12 = vsel %vm188_vm0, %v2962_v18, %v5522_v60  ;;  %v5524_v61 = vld [vmem:[#allocation92_spill] sm:$0xff] }
 0x27e   : > { %2811 = vmatprep.mubr.msk.f32.mxu0 %vm2136_vm11, %v2100_v17  ;;  %v1904_v29 = vsel %vm1889_vm4, %v1871_v12, %v5523_v48 }
 0x27f   : > { %v1643_v0 = vpop.permute.xlu1 %1642  ;;  %v1937_v30 = vsel %vm1922_vm5, %v1904_v29, %v5524_v61 }
 0x280   : > { %v5063_v49 = vpop.permute.xlu0 %1118  ;;  %v2084_v33 = vsel %vm2054_vm9, %v2051_v55, %v1643_v0  ;;  %v1970_v37 = vsel %vm1955_vm6, %v1937_v30, %v5032_v24  ;;  %v2963_v0 = vld [vmem:[#allocation2 + $0xb0] sm:$0xff] }
 0x281   : > { %v1872_v62 = vsel %vm188_vm0, %v2963_v0, %v5525_v50 }
 0x282   : > { %v1905_v2 = vsel %vm1889_vm4, %v1872_v62, %v5526_v47 }
 0x283   : > { %v1817_v34 = vpop.permute.xlu1 %1816 }
 0x284   : > { %v2116_v21 = vsel %vm2087_vm10, %v2083_v1, %v1817_v34  ;;  %v1293_v16 = vpop.permute.xlu0 %1292  ;;  %v2964_v34 = vld [vmem:[#allocation2 + $0x168] sm:$0xff] }
 0x285   : > { %2835 = vmatprep.mubr.msk.f32.mxu1 %vm2136_vm11, %v2116_v21  ;;  %v2003_v54 = vsel %vm1988_vm7, %v1970_v37, %v1293_v16  ;;  %v1887_v24 = vsel %vm188_vm0, %v2964_v34, %v5527_v43  ;;  %v1938_v21 = vsel %vm1922_vm5, %v1905_v2, %v5528_v32 }
 0x286   : > { %v1920_v16 = vsel %vm1889_vm4, %v1887_v24, %v5529_v11  ;;  %v1971_v20 = vsel %vm1955_vm6, %v1938_v21, %v5063_v49 }
 0x287   : > { %v5079_v52 = vpop.permute.xlu1 %1150  ;;  %v1953_v22 = vsel %vm1922_vm5, %v1920_v16, %v5530_v15 }
 0x288   : > { %v1787_v6 = vpop.permute.xlu0 %1786 }
 0x289   : > { %v2101_v25 = vsel %vm2087_vm10, %v2068_v58, %v1787_v6  ;;  %v1986_v6 = vsel %vm1955_vm6, %v1953_v22, %v5047_v51 }
 0x28a   : > { %2812 = vmatmul.mubr.msk.f32.gmra.mrb[12].mxu0 %vm2136_vm11, %v2101_v25  ;;  %v5531_v25 = vld [vmem:[#allocation68_spill] sm:$0xff] }
 0x28b   : > { %v1325_v41 = vpop.permute.xlu1 %1324  ;;  %v1888_v9 = vsel %vm188_vm0, %v2965_v23, %v5531_v25 }
 0x28c   : > { %v1295_v57 = vpop.permute.xlu0 %1294  ;;  %v2019_v49 = vsel %vm1988_vm7, %v1986_v6, %v1325_v41 }
 0x28d   : > { %v2004_v42 = vsel %vm1988_vm7, %v1971_v20, %v1295_v57  ;;  %v1921_v57 = vsel %vm1889_vm4, %v1888_v9, %v5532_v19 }
 0x28f   : > { %v1819_v3 = vpop.permute.xlu1 %1818 }
 0x290   : > { %v2117_v7 = vsel %vm2087_vm10, %v2084_v33, %v1819_v3  ;;  %v1421_v53 = vpop.permute.xlu0 %1420  ;;  %v5533_v3 = vld [vmem:[#allocation26_spill] sm:$0xff] }
 0x291   : > { %2836 = vmatmul.mubr.msk.f32.gmra.mrb[12].mxu1 %vm2136_vm11, %v2117_v7  ;;  %v2036_v1 = vsel %vm2021_vm8, %v2003_v54, %v1421_v53  ;;  %v1954_v51 = vsel %vm1922_vm5, %v1921_v57, %v5533_v3 }
 0x292   : > { %v1987_v53 = vsel %vm1955_vm6, %v1954_v51, %v5079_v52 }
 0x293   : > { %v1327_v36 = vpop.permute.xlu1 %1326 }
 0x294   : > { %v1423_v10 = vpop.permute.xlu0 %1422 }
 0x295   : > { %v2798_v56 = vpop.f32.mrb[2].mxu0  ;;  %v2037_v59 = vsel %vm2021_vm8, %v2004_v42, %v1423_v10 }
 0x296   : > { %v2315_v27 = vadd.f32 %v2798_v56, %v5025_v28  ;;  %v2309_v8 = vpop.f32.mrb[3].mxu0  ;;  %v2020_v56 = vsel %vm1988_vm7, %v1987_v53, %v1327_v36 }
 0x297   : > { %v1453_v13 = vpop.permute.xlu1 %1452  ;;  %v2310_v35 = vadd.f32 %v5025_v28, %v2309_v8 }
 0x298   : > { %2461 = vst [vmem:[%s5029_s28 + $0x18] sm:$0xff] %v2315_v27  ;;  %v1613_v63 = vpop.permute.xlu0 %1612  ;;  %v2052_v55 = vsel %vm2021_vm8, %v2019_v49, %v1453_v13 }
 0x299   : > { %2460 = vst [vmem:[%s5029_s28 + $0x10] sm:$0xff] %v2310_v35  ;;  %v2069_v39 = vsel %vm2054_vm9, %v2036_v1, %v1613_v63 }
 0x29b   : > { %v1455_v46 = vpop.permute.xlu1 %1454 }
 0x29c   : > { %v2822_v38 = vpop.f32.mrb[2].mxu1  ;;  %v1615_v45 = vpop.permute.xlu0 %1614  ;;  %v2053_v27 = vsel %vm2021_vm8, %v2020_v56, %v1455_v46 }
 0x29d   : > { %v2395_v4 = vadd.f32 %v2822_v38, %v5025_v28  ;;  %v2389_v17 = vpop.f32.mrb[3].mxu1  ;;  %v2070_v14 = vsel %vm2054_vm9, %v2037_v59, %v1615_v45 }
 0x29e   : > { %v2390_v5 = vadd.f32 %v5025_v28, %v2389_v17 }
 0x29f   : > { %2477 = vst [vmem:[%s5029_s28 + $0x98] sm:$0xff] %v2395_v4  ;;  %v1645_v26 = vpop.permute.xlu1 %1644 }
 0x2a0   : > { %2476 = vst [vmem:[%s5029_s28 + $0x90] sm:$0xff] %v2390_v5  ;;  %v1789_v40 = vpop.permute.xlu0 %1788  ;;  %v2085_v7 = vsel %vm2054_vm9, %v2052_v55, %v1645_v26 }
 0x2a1   : > { %v2102_v44 = vsel %vm2087_vm10, %v2069_v39, %v1789_v40 }
 0x2a2   : > { %2814 = vmatprep.mubr.msk.f32.mxu0 %vm2136_vm11, %v2102_v44 }
 0x2a3   : > { %v1647_v58 = vpop.permute.xlu1 %1646 }
 0x2a4   : > { %v1791_v31 = vpop.permute.xlu0 %1790  ;;  %v2086_v8 = vsel %vm2054_vm9, %v2053_v27, %v1647_v58 }
 0x2a5   : > { %v2103_v33 = vsel %vm2087_vm10, %v2070_v14, %v1791_v31 }
 0x2a6   : > { %2815 = vmatmul.mubr.msk.f32.gmra.mrb[14].mxu0 %vm2136_vm11, %v2103_v33 }
 0x2a7   : > { %v1821_v41 = vpop.permute.xlu1 %1820 }
 0x2a8   : > { %v2118_v10 = vsel %vm2087_vm10, %v2085_v7, %v1821_v41 }
 0x2a9   : > { %2838 = vmatprep.mubr.msk.f32.mxu1 %vm2136_vm11, %v2118_v10 }
 0x2ab   : > { %v1823_v13 = vpop.permute.xlu1 %1822 }
 0x2ac   : > { %v2119_v35 = vsel %vm2087_vm10, %v2086_v8, %v1823_v13 }
 0x2ad   : > { %2839 = vmatmul.mubr.msk.f32.gmra.mrb[14].mxu1 %vm2136_vm11, %v2119_v35 }
 0x2bd   : > { %v2801_v63 = vpop.f32.mrb[4].mxu0 }
 0x2be   : > { %v2325_v52 = vadd.f32 %v2801_v63, %v5025_v28  ;;  %v2319_v18 = vpop.f32.mrb[5].mxu0 }
 0x2bf   : > { %v2320_v36 = vadd.f32 %v5025_v28, %v2319_v18 }
 0x2c0   : > { %2463 = vst [vmem:[%s5029_s28 + $0x28] sm:$0xff] %v2325_v52 }
 0x2c1   : > { %2462 = vst [vmem:[%s5029_s28 + $0x20] sm:$0xff] %v2320_v36 }
 0x2c4   : > { %v2825_v60 = vpop.f32.mrb[4].mxu1 }
 0x2c5   : > { %v2405_v12 = vadd.f32 %v2825_v60, %v5025_v28  ;;  %v2399_v46 = vpop.f32.mrb[5].mxu1 }
 0x2c6   : > { %v2400_v48 = vadd.f32 %v5025_v28, %v2399_v46 }
 0x2c7   : > { %2479 = vst [vmem:[%s5029_s28 + $0xa8] sm:$0xff] %v2405_v12 }
 0x2c8   : > { %2478 = vst [vmem:[%s5029_s28 + $0xa0] sm:$0xff] %v2400_v48 }
 0x2e5   : > { %v2804_v29 = vpop.f32.mrb[6].mxu0 }
 0x2e6   : > { %v2335_v38 = vadd.f32 %v2804_v29, %v5025_v28  ;;  %v2329_v61 = vpop.f32.mrb[7].mxu0 }
 0x2e7   : > { %v2330_v30 = vadd.f32 %v5025_v28, %v2329_v61 }
 0x2e8   : > { %2465 = vst [vmem:[%s5029_s28 + $0x38] sm:$0xff] %v2335_v38 }
 0x2e9   : > { %2464 = vst [vmem:[%s5029_s28 + $0x30] sm:$0xff] %v2330_v30 }
 0x2ec   : > { %v2828_v4 = vpop.f32.mrb[6].mxu1 }
 0x2ed   : > { %v2415_v45 = vadd.f32 %v2828_v4, %v5025_v28  ;;  %v2409_v17 = vpop.f32.mrb[7].mxu1 }
 0x2ee   : > { %v2410_v37 = vadd.f32 %v5025_v28, %v2409_v17 }
 0x2ef   : > { %2481 = vst [vmem:[%s5029_s28 + $0xb8] sm:$0xff] %v2415_v45 }
 0x2f0   : > { %2480 = vst [vmem:[%s5029_s28 + $0xb0] sm:$0xff] %v2410_v37 }
 0x30d   : > { %v2807_v5 = vpop.f32.mrb[8].mxu0 }
 0x30e   : > { %v2345_v0 = vadd.f32 %v2807_v5, %v5025_v28  ;;  %v2339_v50 = vpop.f32.mrb[9].mxu0 }
 0x30f   : > { %v2340_v62 = vadd.f32 %v5025_v28, %v2339_v50 }
 0x310   : > { %2467 = vst [vmem:[%s5029_s28 + $0x48] sm:$0xff] %v2345_v0 }
 0x311   : > { %2466 = vst [vmem:[%s5029_s28 + $0x40] sm:$0xff] %v2340_v62 }
 0x314   : > { %v2831_v54 = vpop.f32.mrb[8].mxu1 }
 0x315   : > { %v2425_v26 = vadd.f32 %v2831_v54, %v5025_v28  ;;  %v2419_v47 = vpop.f32.mrb[9].mxu1 }
 0x316   : > { %v2420_v2 = vadd.f32 %v5025_v28, %v2419_v47 }
 0x317   : > { %2483 = vst [vmem:[%s5029_s28 + $0xc8] sm:$0xff] %v2425_v26 }
 0x318   : > { %2482 = vst [vmem:[%s5029_s28 + $0xc0] sm:$0xff] %v2420_v2 }
 0x335   : > { %v2810_v1 = vpop.f32.mrb[10].mxu0 }
 0x336   : > { %v2355_v34 = vadd.f32 %v2810_v1, %v5025_v28  ;;  %v2349_v43 = vpop.f32.mrb[11].mxu0 }
 0x337   : > { %v2350_v24 = vadd.f32 %v5025_v28, %v2349_v43 }
 0x338   : > { %2469 = vst [vmem:[%s5029_s28 + $0x58] sm:$0xff] %v2355_v34 }
 0x339   : > { %2468 = vst [vmem:[%s5029_s28 + $0x50] sm:$0xff] %v2350_v24 }
 0x33c   : > { %v2834_v32 = vpop.f32.mrb[10].mxu1 }
 0x33d   : > { %v2435_v21 = vadd.f32 %v2834_v32, %v5025_v28  ;;  %v2429_v39 = vpop.f32.mrb[11].mxu1 }
 0x33e   : > { %v2430_v40 = vadd.f32 %v5025_v28, %v2429_v39 }
 0x33f   : > { %2485 = vst [vmem:[%s5029_s28 + $0xd8] sm:$0xff] %v2435_v21 }
 0x340   : > { %2484 = vst [vmem:[%s5029_s28 + $0xd0] sm:$0xff] %v2430_v40 }
 0x35d   : > { %v2813_v11 = vpop.f32.mrb[12].mxu0 }
 0x35e   : > { %v2365_v16 = vadd.f32 %v2813_v11, %v5025_v28  ;;  %v2359_v20 = vpop.f32.mrb[13].mxu0 }
 0x35f   : > { %v2360_v44 = vadd.f32 %v5025_v28, %v2359_v20 }
 0x360   : > { %2471 = vst [vmem:[%s5029_s28 + $0x68] sm:$0xff] %v2365_v16 }
 0x361   : > { %2470 = vst [vmem:[%s5029_s28 + $0x60] sm:$0xff] %v2360_v44 }
 0x364   : > { %v2837_v15 = vpop.f32.mrb[12].mxu1 }
 0x365   : > { %v2445_v22 = vadd.f32 %v2837_v15, %v5025_v28  ;;  %v2439_v42 = vpop.f32.mrb[13].mxu1 }
 0x366   : > { %v2440_v58 = vadd.f32 %v5025_v28, %v2439_v42 }
 0x367   : > { %2487 = vst [vmem:[%s5029_s28 + $0xe8] sm:$0xff] %v2445_v22 }
 0x368   : > { %2486 = vst [vmem:[%s5029_s28 + $0xe0] sm:$0xff] %v2440_v58 }
 0x379   : > { %v2816_v6 = vpop.f32.mrb[14].mxu0 }
 0x37a   : > { %v2375_v59 = vadd.f32 %v2816_v6, %v5025_v28  ;;  %v2369_v23 = vpop.f32.mrb[15].mxu0 }
 0x37b   : > { %v2370_v25 = vadd.f32 %v5025_v28, %v2369_v23 }
 0x37c   : > { %2473 = vst [vmem:[%s5029_s28 + $0x78] sm:$0xff] %v2375_v59 }
 0x37d   : > { %2472 = vst [vmem:[%s5029_s28 + $0x70] sm:$0xff] %v2370_v25 }
 0x380   : > { %v2840_v9 = vpop.f32.mrb[14].mxu1 }
 0x381   : > { %v2455_v49 = vadd.f32 %v2840_v9, %v5025_v28  ;;  %v2449_v14 = vpop.f32.mrb[15].mxu1 }
 0x382   : > { %v2450_v31 = vadd.f32 %v5025_v28, %v2449_v14 }
 0x383   : > { %2489 = vst [vmem:[%s5029_s28 + $0xf8] sm:$0xff] %v2455_v49 }
 0x384   : > { %2488 = vst [vmem:[%s5029_s28 + $0xf0] sm:$0xff] %v2450_v31 }
 0x385   : > { %2979 = shalt.err (!%p2976_p5)
}
 0x386   : > { %s2980_s21 = scalar_lea.hbm %s5209_s9, 4096  ;;  %s2984_s8 = scalar_lea.hbm %s5268_s3, 8192 }
 0x387   : > { %p2981_p6 = scmp.ne.s32.totalorder %s5209_s9, %s2980_s21  ;;  %p2985_p10 = scmp.lt.u32.totalorder %s5209_s9, %s5268_s3 }
 0x388   : > { %p2986_p11 = scmp.lt.u32.totalorder %s2984_s8, %s2980_s21  ;;  %p2988_p13 = scmp.lt.u32.totalorder %s2980_s21, %s5209_s9 }
 0x389   : > { %p2982_p7 = pnand %p2981_p6, %p3117_p4 }
 0x38a   : > { %p2987_p12 = por %p2986_p11, %p2985_p10 }
 0x38b   : > { %p2983_p9 = pneg %p2982_p7 }
 0x38c   : > { %p2989_p0 = por %p2988_p13, %p2987_p12 }
 0x38e   : > { %p2990_p1 = pnand %p2989_p0, %p2983_p9 }
 0x390   : > { %2993 = shalt.err (!%p2990_p1)
}
 0x391   : > { %s3056_s28 = smov 128  }
 0x392   : > { %2867 = dma.vmem_to_hbm [thread:$0]  (%p3117_p4), %s5212_s30, 4096, %s5209_s9, %s5218_s15, %s3056_s28, %s3056_s28, %s3047_s4  }
 0x393 PF: > { %p2873_p2 = scmp.ge.s32.totalorder %s3044_s17, 2  ;;  %s2522_s29 = sand.u32 1, %s3024_s12  }
 0x394   : > { %s2523_s5 = scalar_lea.sflag [#allocation4], %s2522_s29 }
 0x395   : > { %p2870_p3 = pnand %p2873_p2, %p3124_p8 }
 0x397   : > { %3019 = dma.done.wait (!%p2870_p3), %s2523_s5, 4096  }
 0x398   : > { %3021 = vsyncadd (!%p2870_p3), %s2523_s5, 4294963200  ;;  %s16_s17 = sadd.s32 1, %s3044_s17   ;;  %s5534_s12 = smov %s3028_s13 }
 0x399   : > { %p13_p5 = scmp.ge.s32.totalorder %s16_s17, 4   ;;  %s5535_s13 = smov %s3032_s14 }
 0x39a   : > { %s5536_s14 = smov %s3130_s25  ;;  %s5537_s15 = smov %s3040_s16 }
 0x39b   : > { %s5538_s16 = smov %s5540_s20  ;;  %15 = sbr.rel (!%p13_p5) target bundleno = 4 (0x4), region = 75 }
 0x3a2   :  { %2528 = vsyncpa [#allocation4], 1 }
 0x3a3   :  { %2530 = vsyncpa [#allocation4 + $0x1], 1 }

</bundles_post_ra>
